<compile_context>
chip_gen: v7x
topology: tpu7x:2x2x1
jax: 0.10.0
libtpu: 0.0.40
codegen_flags: <defaults>
</compile_context>

<pallas_src>
import functools

import jax
import jax.numpy as jnp
from jax import lax
from jax.experimental import pallas as pl
from jax.experimental.pallas import tpu as pltpu


def _round_up(x, m):
    return ((x + m - 1) // m) * m


def _plan_tiles(n_words, tile_words, chunk_words):
    """Pick (lane-tile, sub-chunk, padded word count); all multiples of 128."""
    align = 128
    n_al = _round_up(max(n_words, 1), align)
    chunk = max(align, min(_round_up(chunk_words, align), n_al))
    tw = max(chunk, min(_round_up(tile_words, align), n_al))
    tw = _round_up(tw, chunk)
    npad = _round_up(max(n_words, 1), tw)
    return tw, chunk, npad


def _vmem_limit_bytes(W, D1, D2, tw, chunk):
    """Size the scoped-VMEM request from the real per-tile budget."""
    blk_in = (W * D1 * 2 + D2 * 2 + W * 4) * tw          # seq bf16 + vec bf16 + mask f32
    blk_out = D1 * 4 * tw                                 # f32 output block
    wts = ((W * D1) * (W * D1) + W * D1 * D2 + W * (W * D1)) * 2 \
        + (W * D1) * 4 + (W * D1) * W * 4                 # bf16 weights + f32 bias/bsel
    tmp = 7 * (W * D1) * chunk * 4                        # live f32-ish temporaries / chunk
    need = 2 * (blk_in + blk_out) + 2 * wts + tmp + (4 << 20)
    return int(min(100 << 20, max(32 << 20, need)))


# ----------------------------- Pallas kernel --------------------------------
def attention_kernel(seq_ref, vec_ref, mask_ref, wseq_ref, wvec_ref, b_ref,
                     vsel_ref, bsel_ref, out_ref, *, chunk, bf16_tanh):
    WD1, TW = seq_ref.shape
    W = mask_ref.shape[0]
    D1 = WD1 // W
    nsub = TW // chunk

    # Grid-invariant weights: load once, hoisted out of the sub-chunk loop.
    wseq = wseq_ref[...]          # (W*D1, W*D1) bf16, block-diag of Wseq^T
    wvec = wvec_ref[...]          # (W*D1, D2)   bf16, Wvec^T tiled over chars
    b = b_ref[...]                # (W*D1, 1)    f32
    vsel = vsel_ref[...]          # (W, W*D1)    bf16, per-word score selector
    bsel = bsel_ref[...]          # (W*D1, W)    f32, alpha -> D1-row broadcast

    def body(j, carry):
        c0 = pl.multiple_of(j * chunk, chunk)
        sl = pl.ds(c0, chunk)
        seq = seq_ref[:, sl]      # (W*D1, C) bf16   lanes = words
        vec = vec_ref[:, sl]      # (D2,   C) bf16
        msk = mask_ref[:, sl]     # (W,    C) f32

        # Linear over concat([char_seq, word_vec]) for all W chars at once.
        lin = (jnp.dot(wseq, seq, preferred_element_type=jnp.float32)
               + jnp.dot(wvec, vec, preferred_element_type=jnp.float32)
               + b)               # (W*D1, C) f32
        if bf16_tanh:             # bf16 EUP on v6e/v7x; use False on v5e
            h = jnp.tanh(lin.astype(jnp.bfloat16))
        else:
            h = jnp.tanh(lin).astype(jnp.bfloat16)

        # Compact per-(word, char) score: (W, C) -- no D1-lane redundancy.
        score = jnp.dot(vsel, h, preferred_element_type=jnp.float32)
        score = jnp.where(msk == 0.0, jnp.float32(-1e9), score)
        m = jnp.max(score, axis=0, keepdims=True)          # (1, C)
        e = jnp.exp(score - m)                              # (W, C)
        denom = jnp.sum(e, axis=0, keepdims=True)           # (1, C)

        # Broadcast unnormalized weights over the D1 rows with one small
        # selector matmul (MXU is idle), weighted char-sum on the VPU,
        # normalize at the end with an EUP reciprocal.
        e_b = jnp.dot(bsel, e, preferred_element_type=jnp.float32)  # (W*D1, C)
        weighted = e_b * seq                                         # f32
        acc = jnp.sum(weighted.reshape(W, D1, chunk), axis=0)        # (D1, C)
        out = acc * pl.reciprocal(denom, approx=True)
        out_ref[:, sl] = out.astype(out_ref.dtype)
        return carry

    lax.fori_loop(0, nsub, body, 0, unroll=True)


# --------------------------- kernel wrappers ---------------------------------
def _prepare_attention_weights(w_lin, b_lin, v, W):
    """Build block-structured weights for the transposed (words-on-lanes) kernel."""
    D_in, D1 = w_lin.shape
    eye_w = jnp.eye(W, dtype=jnp.float32)
    wseq_t = w_lin[:D1].T                       # (D1, D1) = Wseq^T  (out, in)
    wvec_t = w_lin[D1:].T                       # (D1, D2) = Wvec^T
    wseq_bd = (eye_w[:, None, :, None] * wseq_t[None, :, None, :]
               ).reshape(W * D1, W * D1).astype(jnp.bfloat16)
    wvec_rep = jnp.tile(wvec_t, (W, 1)).astype(jnp.bfloat16)
    b_col = jnp.tile(b_lin, W).reshape(W * D1, 1).astype(jnp.float32)
    vsel = (eye_w[:, :, None] * v[None, None, :]
            ).reshape(W, W * D1).astype(jnp.bfloat16)
    bsel = jnp.repeat(eye_w, D1, axis=0).astype(jnp.float32)   # (W*D1, W)
    return wseq_bd, wvec_rep, b_col, vsel, bsel


def _attention_core_t(seq_t, vec_t, mask_t, w_lin, b_lin, v, *,
                      tile_words=2048, chunk_words=512, bf16_tanh=True):
    """Core Pallas call on the transposed layout.

    seq_t: (W*D1, N) bf16, vec_t: (D2, N) bf16, mask_t: (W, N) f32.
    Returns (D1, Npad) f32 (caller slices/transposes).
    tile_words=2048 is safe on v7x (64 MiB VMEM); v5e/v6e can use 4096.
    """
    WD1, n = seq_t.shape
    D2 = vec_t.shape[0]
    W = mask_t.shape[0]
    D1 = w_lin.shape[1]
    assert WD1 == W * D1
    assert w_lin.shape[0] == D1 + D2, "AttentionLayer weight must be (D1+D2, D1)"

    tw, chunk, npad = _plan_tiles(n, tile_words, chunk_words)
    assert npad % tw == 0 and tw % chunk == 0
    pad = npad - n
    if pad:   # padded word columns are fully masked -> zero output, sliced off
        seq_t = jnp.pad(seq_t, ((0, 0), (0, pad)))
        vec_t = jnp.pad(vec_t, ((0, 0), (0, pad)))
        mask_t = jnp.pad(mask_t, ((0, 0), (0, pad)))

    seq_t = seq_t.astype(jnp.bfloat16)
    vec_t = vec_t.astype(jnp.bfloat16)
    mask_t = mask_t.astype(jnp.float32)
    wseq_bd, wvec_rep, b_col, vsel, bsel = _prepare_attention_weights(
        w_lin, b_lin, v, W)

    kernel = functools.partial(attention_kernel, chunk=chunk,
                               bf16_tanh=bf16_tanh)
    out_t = pl.pallas_call(
        kernel,
        out_shape=jax.ShapeDtypeStruct((D1, npad), jnp.float32),
        grid_spec=pltpu.PrefetchScalarGridSpec(
            num_scalar_prefetch=0,
            grid=(npad // tw,),
            in_specs=[
                pl.BlockSpec((W * D1, tw), lambda i: (0, i)),
                pl.BlockSpec((D2, tw), lambda i: (0, i)),
                pl.BlockSpec((W, tw), lambda i: (0, i)),
                # Grid-invariant weights (constant index_map).
                # TODO(synk): single-buffer these (pipeline_mode=pl.Buffered(1))
                # once stable; their double-buffer cost is only ~0.6 MB here.
                pl.BlockSpec((W * D1, W * D1), lambda i: (0, 0)),
                pl.BlockSpec((W * D1, D2), lambda i: (0, 0)),
                pl.BlockSpec((W * D1, 1), lambda i: (0, 0)),
                pl.BlockSpec((W, W * D1), lambda i: (0, 0)),
                pl.BlockSpec((W * D1, W), lambda i: (0, 0)),
            ],
            out_specs=pl.BlockSpec((D1, tw), lambda i: (0, i)),
        ),
        compiler_params=pltpu.CompilerParams(
            dimension_semantics=("parallel",),
            vmem_limit_bytes=_vmem_limit_bytes(W, D1, D2, tw, chunk),
        ),
    )(seq_t, vec_t, mask_t, wseq_bd, wvec_rep, b_col, vsel, bsel)
    return out_t


def attention_layer_pallas(sequence, vector, char_masks, w_lin, b_lin, v, *,
                           tile_words=2048, chunk_words=512, bf16_tanh=True):
    """Drop-in AttentionLayer.forward.

    sequence: (B,S,W,D1) f32, vector: (B,S,D2) f32, char_masks: (B,S,W).
    NOTE: this entry point pays one explicit transpose pass over `sequence`;
    word_char_encoding_forward below fuses that packing into the producer.
    """
    B, S, W, D1 = sequence.shape
    D2 = vector.shape[-1]
    assert w_lin.shape == (D1 + D2, D1)
    N = B * S
    seq_t = (sequence.reshape(N, W, D1).transpose(1, 2, 0)
             .reshape(W * D1, N).astype(jnp.bfloat16))
    vec_t = vector.reshape(N, D2).T.astype(jnp.bfloat16)
    mask_t = char_masks.reshape(N, W).T.astype(jnp.float32)
    out_t = _attention_core_t(seq_t, vec_t, mask_t, w_lin, b_lin, v,
                              tile_words=tile_words, chunk_words=chunk_words,
                              bf16_tanh=bf16_tanh)
    return out_t[:, :N].T.reshape(B, S, D1)


# ------------------------- module glue (plain JAX) ---------------------------
def init_params(key, *, word_vocab, word_dim, char_vocab, char_dim,
                char_hidden):
    d1 = 2 * char_hidden              # char_encoding_layer.out_dim (bidirectional)
    d2 = word_dim
    ks = jax.random.split(key, 7)
    u = lambda k, shape, s=0.1: jax.random.uniform(k, shape, jnp.float32, -s, s)
    return dict(
        word_emb=u(ks[0], (word_vocab, word_dim), 0.5),
        char_emb=u(ks[1], (char_vocab, char_dim), 0.5),
        # TODO(synk): CharEncoder (BiLSTM, fw_bw_aggregation=None) source not
        # provided; approximated with a per-character linear + tanh projection
        # to 2*char_hidden (same output shape/role as the BiLSTM hidden states).
        char_proj_w=u(ks[2], (char_dim, d1)),
        char_proj_b=u(ks[3], (d1,)),
        # AttentionLayer params: Linear(D1+D2 -> D1) and v (D1,)
        attn_w=u(ks[4], (d1 + d2, d1)),
        attn_b=u(ks[5], (d1,)),
        attn_v=jax.random.uniform(ks[6], (d1,), jnp.float32, -0.01, 0.01),
    )


def word_char_encoding_forward(params, word_batch, char_batch, word_lengths,
                               char_masks, *, tile_words=2048, chunk_words=512,
                               bf16_tanh=True):
    B, S, W = char_batch.shape
    D1 = params['char_proj_w'].shape[1]
    N = B * S
    # word_lengths would feed the real BiLSTM CharEncoder (see TODO above).

    tw, chunk, npad = _plan_tiles(N, tile_words, chunk_words)
    pad = npad - N

    # Pad the tiny index / mask arrays up-front so every big activation tensor
    # is born at its padded, kernel-ready width (no post-hoc pad copy).
    word_idx = word_batch.reshape(N).astype(jnp.int32)
    char_idx_t = char_batch.reshape(N, W).T.astype(jnp.int32)     # (W, N)
    mask_t = char_masks.reshape(N, W).T.astype(jnp.float32)       # (W, N)
    if pad:
        word_idx = jnp.pad(word_idx, (0, pad))
        char_idx_t = jnp.pad(char_idx_t, ((0, 0), (0, pad)))
        mask_t = jnp.pad(mask_t, ((0, 0), (0, pad)))              # fully masked pads

    # Embedding lookups gathered straight into the transposed (feature-rows,
    # word-lanes) layout the kernel consumes; avoids a separate full-tensor
    # transpose/pack pass over the big activations (perf-review item).
    vec_t = params['word_emb'].T[:, word_idx].astype(jnp.bfloat16)    # (D2, npad)
    emb_char_t = params['char_emb'].T[:, char_idx_t]                   # (Cd, W, npad)

    # Char-level word representation (BiLSTM stand-in), emitted directly in
    # the kernel's (W*D1, npad) bf16 layout; XLA fuses tanh/mask/cast into
    # the projection's epilogue (single pass over the big tensor).
    pre = jnp.einsum('cd,cwn->wdn', params['char_proj_w'], emb_char_t)  # (W,D1,npad)
    seq_t = (jnp.tanh(pre + params['char_proj_b'][None, :, None])
             * mask_t[:, None, :]).reshape(W * D1, npad).astype(jnp.bfloat16)

    # aggregation_method == 'attention'  ->  AttentionLayer (Pallas kernel).
    out_t = _attention_core_t(seq_t, vec_t, mask_t,
                              params['attn_w'], params['attn_b'],
                              params['attn_v'],
                              tile_words=tw, chunk_words=chunk,
                              bf16_tanh=bf16_tanh)                      # (D1, npad)
    return out_t[:, :N].T.reshape(B, S, D1)


def attention_reference(sequence, vector, char_masks, w_lin, b_lin, v):
    """Pure-JAX reference mirroring the PyTorch AttentionLayer.forward."""
    B, S, W, D1 = sequence.shape
    vec = jnp.broadcast_to(vector[:, :, None, :], (B, S, W, vector.shape[-1]))
    concatted = jnp.concatenate([sequence, vec], axis=3)
    lin = jnp.tanh(concatted @ w_lin + b_lin)
    score = jnp.sum(lin * v, axis=-1)                            # (B, S, W)
    score = jnp.where(char_masks == 0, -1e9, score)
    alphas = jax.nn.softmax(score, axis=2)
    return jnp.einsum('bsw,bswd->bsd', alphas, sequence)


# ---------------------------------- main -------------------------------------
if __name__ == "__main__":
    key = jax.random.PRNGKey(0)
    B, S, W = 2, 8, 16               # batch, seq_len, word_len (chars per word)
    word_vocab, word_dim = 100, 32
    char_vocab, char_dim = 50, 24
    char_hidden = 16                 # -> D1 = 32

    kp, kw, kc, kl = jax.random.split(key, 4)
    params = init_params(kp, word_vocab=word_vocab, word_dim=word_dim,
                         char_vocab=char_vocab, char_dim=char_dim,
                         char_hidden=char_hidden)

    word_batch = jax.random.randint(kw, (B, S), 0, word_vocab, jnp.int32)
    char_batch = jax.random.randint(kc, (B, S, W), 0, char_vocab, jnp.int32)
    word_lengths = jax.random.randint(kl, (B, S), 1, W + 1, jnp.int32)
    char_masks = (jnp.arange(W)[None, None, :]
                  < word_lengths[:, :, None]).astype(jnp.int32)  # (B, S, W)

    fwd = jax.jit(word_char_encoding_forward)
    out = fwd(params, word_batch, char_batch, word_lengths, char_masks)
    out = jax.block_until_ready(out)
    assert out.shape == (B, S, 2 * char_hidden)

    # ---- check 1: fused forward (producer + kernel) vs pure-JAX reference ---
    emb_word = params['word_emb'][word_batch]
    emb_char = params['char_emb'][char_batch]
    char_lvl = jnp.tanh(emb_char @ params['char_proj_w'] + params['char_proj_b'])
    char_lvl = char_lvl * char_masks[..., None].astype(char_lvl.dtype)
    seq_bf = char_lvl.astype(jnp.bfloat16).astype(jnp.float32)
    vec_bf = emb_word.astype(jnp.bfloat16).astype(jnp.float32)
    ref = attention_reference(seq_bf, vec_bf, char_masks,
                              params['attn_w'], params['attn_b'],
                              params['attn_v'])
    err = float(jnp.max(jnp.abs(out - ref)))
    assert err < 2e-2, f"forward mismatch vs reference, max abs err = {err}"

    # ---- check 2: AttentionLayer kernel alone vs reference ------------------
    ka, kb = jax.random.split(jax.random.PRNGKey(1), 2)
    D1, D2 = 2 * char_hidden, word_dim
    seq_in = jax.random.uniform(ka, (B, S, W, D1), jnp.float32, -1.0, 1.0)
    vec_in = jax.random.uniform(kb, (B, S, D2), jnp.float32, -1.0, 1.0)
    attn = jax.jit(attention_layer_pallas)
    out2 = jax.block_until_ready(
        attn(seq_in, vec_in, char_masks, params['attn_w'],
             params['attn_b'], params['attn_v']))
    ref2 = attention_reference(seq_in.astype(jnp.bfloat16).astype(jnp.float32),
                               vec_in.astype(jnp.bfloat16).astype(jnp.float32),
                               char_masks, params['attn_w'], params['attn_b'],
                               params['attn_v'])
    err2 = float(jnp.max(jnp.abs(out2 - ref2)))
    assert err2 < 2e-2, f"attention kernel mismatch, max abs err = {err2}"

    print("KERNEL_OK")
</pallas_src>

<mosaic_0001>
module attributes {stable_mosaic.version = 11 : i64} {
  func.func @attention_kernel(%arg0: i32, %arg1: memref<512x128xbf16, #tpu.memory_space<vmem>>, %arg2: memref<32x128xbf16, #tpu.memory_space<vmem>>, %arg3: memref<16x128xf32, #tpu.memory_space<vmem>>, %arg4: memref<512x512xbf16, #tpu.memory_space<vmem>>, %arg5: memref<512x32xbf16, #tpu.memory_space<vmem>>, %arg6: memref<512x1xf32, #tpu.memory_space<vmem>>, %arg7: memref<16x512xbf16, #tpu.memory_space<vmem>>, %arg8: memref<512x16xf32, #tpu.memory_space<vmem>>, %arg9: memref<32x128xf32, #tpu.memory_space<vmem>>) attributes {dimension_semantics = [#tpu.dimension_semantics<parallel>], iteration_bounds = array<i64: 1>, scalar_prefetch = 0 : i64, scratch_operands = 0 : i64, tpu.core_type = #tpu.core_type<tc>, window_params = [{transform_indices = @transform_0, window_bounds = array<i64: 512, 128>}, {transform_indices = @transform_1, window_bounds = array<i64: 32, 128>}, {transform_indices = @transform_2, window_bounds = array<i64: 16, 128>}, {pipeline_mode = #tpu.pipeline_mode<synchronous>, transform_indices = @transform_3, window_bounds = array<i64: 512, 512>}, {pipeline_mode = #tpu.pipeline_mode<synchronous>, transform_indices = @transform_4, window_bounds = array<i64: 512, 32>}, {pipeline_mode = #tpu.pipeline_mode<synchronous>, transform_indices = @transform_5, window_bounds = array<i64: 512, 1>}, {pipeline_mode = #tpu.pipeline_mode<synchronous>, transform_indices = @transform_6, window_bounds = array<i64: 16, 512>}, {pipeline_mode = #tpu.pipeline_mode<synchronous>, transform_indices = @transform_7, window_bounds = array<i64: 512, 16>}, {transform_indices = @transform_8, window_bounds = array<i64: 32, 128>}]} {
    %c0 = arith.constant 0 : index
    %c0_0 = arith.constant 0 : index
    %0 = vector.load %arg4[%c0, %c0_0] : memref<512x512xbf16, #tpu.memory_space<vmem>>, vector<512x512xbf16>
    %c0_1 = arith.constant 0 : index
    %c0_2 = arith.constant 0 : index
    %1 = vector.load %arg5[%c0_1, %c0_2] : memref<512x32xbf16, #tpu.memory_space<vmem>>, vector<512x32xbf16>
    %c0_3 = arith.constant 0 : index
    %c0_4 = arith.constant 0 : index
    %2 = vector.load %arg6[%c0_3, %c0_4] : memref<512x1xf32, #tpu.memory_space<vmem>>, vector<512x1xf32>
    %c0_5 = arith.constant 0 : index
    %c0_6 = arith.constant 0 : index
    %3 = vector.load %arg7[%c0_5, %c0_6] : memref<16x512xbf16, #tpu.memory_space<vmem>>, vector<16x512xbf16>
    %c0_7 = arith.constant 0 : index
    %c0_8 = arith.constant 0 : index
    %4 = vector.load %arg8[%c0_7, %c0_8] : memref<512x16xf32, #tpu.memory_space<vmem>>, vector<512x16xf32>
    %c0_i32 = arith.constant 0 : i32
    %c128_i32 = arith.constant 128 : i32
    %5 = arith.muli %c0_i32, %c128_i32 : i32
    %6 = tpu.assume_multiple %5, 128 : i32
    %c0_9 = arith.constant 0 : index
    %7 = arith.index_cast %6 : i32 to index
    %8 = vector.load %arg1[%c0_9, %7] : memref<512x128xbf16, #tpu.memory_space<vmem>>, vector<512x128xbf16>
    %c0_10 = arith.constant 0 : index
    %9 = arith.index_cast %6 : i32 to index
    %10 = vector.load %arg2[%c0_10, %9] : memref<32x128xbf16, #tpu.memory_space<vmem>>, vector<32x128xbf16>
    %c0_11 = arith.constant 0 : index
    %11 = arith.index_cast %6 : i32 to index
    %12 = vector.load %arg3[%c0_11, %11] : memref<16x128xf32, #tpu.memory_space<vmem>>, vector<16x128xf32>
    %cst = arith.constant dense<0.000000e+00> : vector<512x128xf32>
    %13 = tpu.matmul %0, %8, %cst {dimension_numbers = #tpu.dot_dimension_numbers<[1], [0], [0], [1], [0, 0, 1, 1], [], []>} : vector<512x512xbf16>, vector<512x128xbf16>, vector<512x128xf32> -> vector<512x128xf32>
    %cst_12 = arith.constant dense<0.000000e+00> : vector<512x128xf32>
    %14 = tpu.matmul %1, %10, %cst_12 {dimension_numbers = #tpu.dot_dimension_numbers<[1], [0], [0], [1], [0, 0, 1, 1], [], []>} : vector<512x32xbf16>, vector<32x128xbf16>, vector<512x128xf32> -> vector<512x128xf32>
    %15 = arith.addf %13, %14 : vector<512x128xf32>
    %16 = vector.broadcast %2 : vector<512x1xf32> to vector<512x128xf32>
    %17 = arith.addf %15, %16 : vector<512x128xf32>
    %18 = arith.truncf %17 : vector<512x128xf32> to vector<512x128xbf16>
    %19 = math.tanh %18 : vector<512x128xbf16>
    %cst_13 = arith.constant dense<0.000000e+00> : vector<16x128xf32>
    %20 = tpu.matmul %3, %19, %cst_13 {dimension_numbers = #tpu.dot_dimension_numbers<[1], [0], [0], [1], [0, 0, 1, 1], [], []>} : vector<16x512xbf16>, vector<512x128xbf16>, vector<16x128xf32> -> vector<16x128xf32>
    %cst_14 = arith.constant 0.000000e+00 : f32
    %21 = vector.broadcast %cst_14 : f32 to vector<16x128xf32>
    %22 = arith.cmpf oeq, %12, %21 : vector<16x128xf32>
    %cst_15 = arith.constant -1.000000e+09 : f32
    %23 = vector.broadcast %cst_15 : f32 to vector<16x128xf32>
    %24 = arith.select %22, %23, %20 : vector<16x128xi1>, vector<16x128xf32>
    %cst_16 = arith.constant dense<0xFF800000> : vector<128xf32>
    %25 = vector.multi_reduction <maximumf>, %24, %cst_16 [0] : vector<16x128xf32> to vector<128xf32>
    %26 = vector.shape_cast %25 : vector<128xf32> to vector<1x128xf32>
    %27 = vector.broadcast %26 : vector<1x128xf32> to vector<16x128xf32>
    %28 = arith.subf %24, %27 : vector<16x128xf32>
    %29 = math.exp %28 : vector<16x128xf32>
    %cst_17 = arith.constant dense<0.000000e+00> : vector<128xf32>
    %30 = vector.multi_reduction <add>, %29, %cst_17 [0] : vector<16x128xf32> to vector<128xf32>
    %31 = vector.shape_cast %30 : vector<128xf32> to vector<1x128xf32>
    %cst_18 = arith.constant dense<0.000000e+00> : vector<512x128xf32>
    %32 = tpu.matmul %4, %29, %cst_18 {dimension_numbers = #tpu.dot_dimension_numbers<[1], [0], [0], [1], [0, 0, 1, 1], [], []>} : vector<512x16xf32>, vector<16x128xf32>, vector<512x128xf32> -> vector<512x128xf32>
    %33 = arith.extf %8 : vector<512x128xbf16> to vector<512x128xf32>
    %34 = arith.mulf %32, %33 : vector<512x128xf32>
    %35 = vector.shape_cast %34 : vector<512x128xf32> to vector<16x32x128xf32>
    %cst_19 = arith.constant dense<0.000000e+00> : vector<32x128xf32>
    %36 = vector.multi_reduction <add>, %35, %cst_19 [0] : vector<16x32x128xf32> to vector<32x128xf32>
    %37 = tpu.reciprocal %31 {approx = true} : vector<1x128xf32> -> vector<1x128xf32>
    %38 = vector.broadcast %37 : vector<1x128xf32> to vector<32x128xf32>
    %39 = arith.mulf %36, %38 : vector<32x128xf32>
    %c0_20 = arith.constant 0 : index
    %40 = arith.index_cast %6 : i32 to index
    %41 = vector.load %arg9[%c0_20, %40] : memref<32x128xf32, #tpu.memory_space<vmem>>, vector<32x128xf32>
    tpu.vector_store %arg9[%c0_20, %40], %39 {strides = array<i32>} : memref<32x128xf32, #tpu.memory_space<vmem>>, vector<32x128xf32>,
    %c1_i32 = arith.constant 1 : i32
    return
  }
  func.func @transform_0(%arg0: i32) -> (i32, i32) {
    %c0_i32 = arith.constant 0 : i32
    %c0_i32_0 = arith.constant 0 : i32
    return %c0_i32, %arg0 : i32, i32
  }
  func.func @transform_1(%arg0: i32) -> (i32, i32) {
    %c0_i32 = arith.constant 0 : i32
    %c0_i32_0 = arith.constant 0 : i32
    return %c0_i32, %arg0 : i32, i32
  }
  func.func @transform_2(%arg0: i32) -> (i32, i32) {
    %c0_i32 = arith.constant 0 : i32
    %c0_i32_0 = arith.constant 0 : i32
    return %c0_i32, %arg0 : i32, i32
  }
  func.func @transform_3(%arg0: i32) -> (i32, i32) {
    %c0_i32 = arith.constant 0 : i32
    %c0_i32_0 = arith.constant 0 : i32
    %c0_i32_1 = arith.constant 0 : i32
    return %c0_i32, %c0_i32_0 : i32, i32
  }
  func.func @transform_4(%arg0: i32) -> (i32, i32) {
    %c0_i32 = arith.constant 0 : i32
    %c0_i32_0 = arith.constant 0 : i32
    %c0_i32_1 = arith.constant 0 : i32
    return %c0_i32, %c0_i32_0 : i32, i32
  }
  func.func @transform_5(%arg0: i32) -> (i32, i32) {
    %c0_i32 = arith.constant 0 : i32
    %c0_i32_0 = arith.constant 0 : i32
    %c0_i32_1 = arith.constant 0 : i32
    return %c0_i32, %c0_i32_0 : i32, i32
  }
  func.func @transform_6(%arg0: i32) -> (i32, i32) {
    %c0_i32 = arith.constant 0 : i32
    %c0_i32_0 = arith.constant 0 : i32
    %c0_i32_1 = arith.constant 0 : i32
    return %c0_i32, %c0_i32_0 : i32, i32
  }
  func.func @transform_7(%arg0: i32) -> (i32, i32) {
    %c0_i32 = arith.constant 0 : i32
    %c0_i32_0 = arith.constant 0 : i32
    %c0_i32_1 = arith.constant 0 : i32
    return %c0_i32, %c0_i32_0 : i32, i32
  }
  func.func @transform_8(%arg0: i32) -> (i32, i32) {
    %c0_i32 = arith.constant 0 : i32
    %c0_i32_0 = arith.constant 0 : i32
    return %c0_i32, %arg0 : i32, i32
  }
}

</mosaic_0001>

<bundles_post_ra>
// kernel: tile.0
= control target key start
LH: loop header
LB: loop body
LE: loop exit
PB: predicated region body
PF: predicated region fallthrough
CT: control target
= control target key end

     0   :  { %s1883_s8 = smov 126   ;;  %s1884_s9 = smov 127   ;;  %vm3_vm0 = vcmask 7168   ;;  %s4050_s0 = inlined_call_operand.vmem [shape: f32[16,32], index: 0, kind: input, shape index: {}]   ;;  %s4051_s1 = inlined_call_operand.vmem [shape: f32[512,1], index: 1, kind: output, shape index: {}]  }
   0x1   :  { %v1927_v0 = vld [vmem:[%s4050_s0] sm:$0xff]   ;;  %v1934_v1 = vld [vmem:[%s4050_s0 + $0x8] sm:$0xff]   ;;  %s1885_s12 = smov 125   ;;  %s1886_s13 = smov 124  }
   0x2   :  { %80 = vrot.lane.b32.xlu1 %v1927_v0, %s1883_s8  ;;  %39 = vrot.lane.b32.xlu0 %v1927_v0, %s1884_s9  ;;  %s1887_s14 = smov 123   ;;  %s1888_s15 = smov 122   ;;  %v2_v2 = vld [vmem:[%s4050_s0] sm:$0xff]   ;;  %v1316_v3 = vld [vmem:[%s4050_s0 + $0x8] sm:$0xff]  }
   0x3   :  { %s1889_s16 = smov 121   ;;  %s1890_s17 = smov 120   ;;  %4 = vst.msk [vmem:[%s4051_s1] sm:$0x1] %vm3_vm0, %v2_v2   ;;  %1309 = vst.msk [vmem:[%s4051_s1 + $0x1f] sm:$0x2] %vm3_vm0, %v2_v2  }
   0x4   :  { %s1891_s18 = smov 119   ;;  %s1892_s19 = smov 118   ;;  %1310 = vst.msk [vmem:[%s4051_s1 + $0x3e] sm:$0x4] %vm3_vm0, %v2_v2   ;;  %1311 = vst.msk [vmem:[%s4051_s1 + $0x5d] sm:$0x8] %vm3_vm0, %v2_v2  }
   0x5   :  { %s1893_s20 = smov 117   ;;  %s1894_s21 = smov 116   ;;  %1312 = vst.msk [vmem:[%s4051_s1 + $0x7c] sm:$0x10] %vm3_vm0, %v2_v2   ;;  %1313 = vst.msk [vmem:[%s4051_s1 + $0x9b] sm:$0x20] %vm3_vm0, %v2_v2  }
   0x6   :  { %101 = vrot.lane.b32.xlu1 %v1934_v1, %s1883_s8  ;;  %60 = vrot.lane.b32.xlu0 %v1934_v1, %s1884_s9  ;;  %s1895_s22 = smov 115   ;;  %s1896_s23 = smov 114   ;;  %1314 = vst.msk [vmem:[%s4051_s1 + $0xba] sm:$0x40] %vm3_vm0, %v2_v2   ;;  %1315 = vst.msk [vmem:[%s4051_s1 + $0xd9] sm:$0x80] %vm3_vm0, %v2_v2  }
   0x7   :  { %s1897_s24 = smov 113   ;;  %s1898_s25 = smov 112   ;;  %1317 = vst.msk [vmem:[%s4051_s1 + $0x100] sm:$0x1] %vm3_vm0, %v1316_v3   ;;  %1318 = vst.msk [vmem:[%s4051_s1 + $0x11f] sm:$0x2] %vm3_vm0, %v1316_v3  }
   0x8   :  { %s1899_s26 = smov 111   ;;  %s1900_s27 = smov 110   ;;  %1319 = vst.msk [vmem:[%s4051_s1 + $0x13e] sm:$0x4] %vm3_vm0, %v1316_v3   ;;  %1320 = vst.msk [vmem:[%s4051_s1 + $0x15d] sm:$0x8] %vm3_vm0, %v1316_v3  }
   0x9   :  { %s1901_s28 = smov 109   ;;  %s1902_s29 = smov 108   ;;  %1321 = vst.msk [vmem:[%s4051_s1 + $0x17c] sm:$0x10] %vm3_vm0, %v1316_v3   ;;  %1322 = vst.msk [vmem:[%s4051_s1 + $0x19b] sm:$0x20] %vm3_vm0, %v1316_v3  }
   0xa   :  { %142 = vrot.lane.b32.xlu1 %v1934_v1, %s1885_s12  ;;  %121 = vrot.lane.b32.xlu0 %v1927_v0, %s1885_s12  ;;  %s1903_s30 = smov 107   ;;  %s1904_s2 = smov 106   ;;  %1323 = vst.msk [vmem:[%s4051_s1 + $0x1ba] sm:$0x40] %vm3_vm0, %v1316_v3   ;;  %1324 = vst.msk [vmem:[%s4051_s1 + $0x1d9] sm:$0x80] %vm3_vm0, %v1316_v3  }
   0xb   :  { %s1905_s3 = smov 105   ;;  %s1906_s4 = smov 104  }
   0xc   :  { %s1907_s5 = smov 103   ;;  %s1908_s6 = smov 102  }
   0xd   :  { %s1909_s7 = smov 101  }
   0xe   :  { %183 = vrot.lane.b32.xlu1 %v1934_v1, %s1886_s13  ;;  %162 = vrot.lane.b32.xlu0 %v1927_v0, %s1886_s13  ;;  %s1910_s13 = smov 100  }
  0x12   :  { %224 = vrot.lane.b32.xlu1 %v1934_v1, %s1887_s14  ;;  %203 = vrot.lane.b32.xlu0 %v1927_v0, %s1887_s14  ;;  %s1911_s14 = smov 99  }
  0x16   :  { %265 = vrot.lane.b32.xlu1 %v1934_v1, %s1888_s15  ;;  %244 = vrot.lane.b32.xlu0 %v1927_v0, %s1888_s15 }
  0x1a   :  { %306 = vrot.lane.b32.xlu1 %v1934_v1, %s1889_s16  ;;  %285 = vrot.lane.b32.xlu0 %v1927_v0, %s1889_s16 }
  0x1e   :  { %347 = vrot.lane.b32.xlu1 %v1934_v1, %s1890_s17  ;;  %326 = vrot.lane.b32.xlu0 %v1927_v0, %s1890_s17  ;;  %s1912_s17 = smov 98  }
  0x22   :  { %388 = vrot.lane.b32.xlu1 %v1934_v1, %s1891_s18  ;;  %367 = vrot.lane.b32.xlu0 %v1927_v0, %s1891_s18 }
  0x26   :  { %429 = vrot.lane.b32.xlu1 %v1934_v1, %s1892_s19  ;;  %408 = vrot.lane.b32.xlu0 %v1927_v0, %s1892_s19 }
  0x2a   :  { %470 = vrot.lane.b32.xlu1 %v1934_v1, %s1893_s20  ;;  %449 = vrot.lane.b32.xlu0 %v1927_v0, %s1893_s20  ;;  %s1913_s20 = smov 97  }
  0x2e   :  { %511 = vrot.lane.b32.xlu1 %v1934_v1, %s1894_s21  ;;  %490 = vrot.lane.b32.xlu0 %v1927_v0, %s1894_s21 }
  0x32   :  { %552 = vrot.lane.b32.xlu1 %v1934_v1, %s1895_s22  ;;  %531 = vrot.lane.b32.xlu0 %v1927_v0, %s1895_s22 }
  0x36   :  { %593 = vrot.lane.b32.xlu1 %v1934_v1, %s1896_s23  ;;  %572 = vrot.lane.b32.xlu0 %v1927_v0, %s1896_s23 }
  0x3a   :  { %634 = vrot.lane.b32.xlu1 %v1934_v1, %s1897_s24  ;;  %613 = vrot.lane.b32.xlu0 %v1927_v0, %s1897_s24 }
  0x3e   :  { %675 = vrot.lane.b32.xlu1 %v1934_v1, %s1898_s25  ;;  %654 = vrot.lane.b32.xlu0 %v1927_v0, %s1898_s25 }
  0x42   :  { %716 = vrot.lane.b32.xlu1 %v1934_v1, %s1899_s26  ;;  %695 = vrot.lane.b32.xlu0 %v1927_v0, %s1899_s26 }
  0x46   :  { %757 = vrot.lane.b32.xlu1 %v1934_v1, %s1900_s27  ;;  %736 = vrot.lane.b32.xlu0 %v1927_v0, %s1900_s27 }
  0x4a   :  { %798 = vrot.lane.b32.xlu1 %v1934_v1, %s1901_s28  ;;  %777 = vrot.lane.b32.xlu0 %v1927_v0, %s1901_s28 }
  0x4e   :  { %839 = vrot.lane.b32.xlu1 %v1934_v1, %s1902_s29  ;;  %818 = vrot.lane.b32.xlu0 %v1927_v0, %s1902_s29 }
  0x52   :  { %880 = vrot.lane.b32.xlu1 %v1934_v1, %s1903_s30  ;;  %859 = vrot.lane.b32.xlu0 %v1927_v0, %s1903_s30 }
  0x56   :  { %921 = vrot.lane.b32.xlu1 %v1934_v1, %s1904_s2  ;;  %900 = vrot.lane.b32.xlu0 %v1927_v0, %s1904_s2 }
  0x5a   :  { %962 = vrot.lane.b32.xlu1 %v1934_v1, %s1905_s3  ;;  %941 = vrot.lane.b32.xlu0 %v1927_v0, %s1905_s3 }
  0x5e   :  { %1003 = vrot.lane.b32.xlu1 %v1934_v1, %s1906_s4  ;;  %982 = vrot.lane.b32.xlu0 %v1927_v0, %s1906_s4 }
  0x62   :  { %1044 = vrot.lane.b32.xlu1 %v1934_v1, %s1907_s5  ;;  %1023 = vrot.lane.b32.xlu0 %v1927_v0, %s1907_s5 }
  0x66   :  { %1085 = vrot.lane.b32.xlu1 %v1934_v1, %s1908_s6  ;;  %1064 = vrot.lane.b32.xlu0 %v1927_v0, %s1908_s6 }
  0x6a   :  { %1126 = vrot.lane.b32.xlu1 %v1934_v1, %s1909_s7  ;;  %1105 = vrot.lane.b32.xlu0 %v1927_v0, %s1909_s7 }
  0x6e   :  { %1167 = vrot.lane.b32.xlu1 %v1934_v1, %s1910_s13  ;;  %1146 = vrot.lane.b32.xlu0 %v1927_v0, %s1910_s13 }
  0x72   :  { %1208 = vrot.lane.b32.xlu1 %v1934_v1, %s1911_s14  ;;  %1187 = vrot.lane.b32.xlu0 %v1927_v0, %s1911_s14 }
  0x74   :  { %v81_v4 = vpop.permute.xlu1 %80   ;;  %v40_v5 = vpop.permute.xlu0 %39  }
  0x75   :  { %1342 = vst.msk [vmem:[%s4051_s1 + $0x2] sm:$0x1] %vm3_vm0, %v81_v4   ;;  %1343 = vst.msk [vmem:[%s4051_s1 + $0x21] sm:$0x2] %vm3_vm0, %v81_v4  }
  0x76   :  { %1344 = vst.msk [vmem:[%s4051_s1 + $0x40] sm:$0x4] %vm3_vm0, %v81_v4   ;;  %1345 = vst.msk [vmem:[%s4051_s1 + $0x5f] sm:$0x8] %vm3_vm0, %v81_v4   ;;  %1249 = vrot.lane.b32.xlu1 %v1934_v1, %s1912_s17  ;;  %1228 = vrot.lane.b32.xlu0 %v1927_v0, %s1912_s17 }
  0x77   :  { %1346 = vst.msk [vmem:[%s4051_s1 + $0x7e] sm:$0x10] %vm3_vm0, %v81_v4   ;;  %1347 = vst.msk [vmem:[%s4051_s1 + $0x9d] sm:$0x20] %vm3_vm0, %v81_v4  }
  0x78   :  { %1348 = vst.msk [vmem:[%s4051_s1 + $0xbc] sm:$0x40] %vm3_vm0, %v81_v4   ;;  %1349 = vst.msk [vmem:[%s4051_s1 + $0xdb] sm:$0x80] %vm3_vm0, %v81_v4   ;;  %v102_v6 = vpop.permute.xlu1 %101   ;;  %v61_v7 = vpop.permute.xlu0 %60  }
  0x79   :  { %1325 = vst.msk [vmem:[%s4051_s1 + $0x1] sm:$0x1] %vm3_vm0, %v40_v5   ;;  %1326 = vst.msk [vmem:[%s4051_s1 + $0x20] sm:$0x2] %vm3_vm0, %v40_v5  }
  0x7a   :  { %1327 = vst.msk [vmem:[%s4051_s1 + $0x3f] sm:$0x4] %vm3_vm0, %v40_v5   ;;  %1328 = vst.msk [vmem:[%s4051_s1 + $0x5e] sm:$0x8] %vm3_vm0, %v40_v5   ;;  %1290 = vrot.lane.b32.xlu1 %v1934_v1, %s1913_s20  ;;  %1269 = vrot.lane.b32.xlu0 %v1927_v0, %s1913_s20 }
  0x7b   :  { %1329 = vst.msk [vmem:[%s4051_s1 + $0x7d] sm:$0x10] %vm3_vm0, %v40_v5   ;;  %1330 = vst.msk [vmem:[%s4051_s1 + $0x9c] sm:$0x20] %vm3_vm0, %v40_v5  }
  0x7c   :  { %1331 = vst.msk [vmem:[%s4051_s1 + $0xbb] sm:$0x40] %vm3_vm0, %v40_v5   ;;  %1332 = vst.msk [vmem:[%s4051_s1 + $0xda] sm:$0x80] %vm3_vm0, %v40_v5   ;;  %v143_v8 = vpop.permute.xlu1 %142   ;;  %v122_v9 = vpop.permute.xlu0 %121  }
  0x7d   :  { %1351 = vst.msk [vmem:[%s4051_s1 + $0x102] sm:$0x1] %vm3_vm0, %v102_v6   ;;  %1352 = vst.msk [vmem:[%s4051_s1 + $0x121] sm:$0x2] %vm3_vm0, %v102_v6  }
  0x7e   :  { %1353 = vst.msk [vmem:[%s4051_s1 + $0x140] sm:$0x4] %vm3_vm0, %v102_v6   ;;  %1354 = vst.msk [vmem:[%s4051_s1 + $0x15f] sm:$0x8] %vm3_vm0, %v102_v6  }
  0x7f   :  { %1355 = vst.msk [vmem:[%s4051_s1 + $0x17e] sm:$0x10] %vm3_vm0, %v102_v6   ;;  %1356 = vst.msk [vmem:[%s4051_s1 + $0x19d] sm:$0x20] %vm3_vm0, %v102_v6  }
  0x80   :  { %1357 = vst.msk [vmem:[%s4051_s1 + $0x1bc] sm:$0x40] %vm3_vm0, %v102_v6   ;;  %1358 = vst.msk [vmem:[%s4051_s1 + $0x1db] sm:$0x80] %vm3_vm0, %v102_v6   ;;  %v184_v10 = vpop.permute.xlu1 %183   ;;  %v163_v11 = vpop.permute.xlu0 %162  }
  0x81   :  { %1334 = vst.msk [vmem:[%s4051_s1 + $0x101] sm:$0x1] %vm3_vm0, %v61_v7   ;;  %1335 = vst.msk [vmem:[%s4051_s1 + $0x120] sm:$0x2] %vm3_vm0, %v61_v7  }
  0x82   :  { %1336 = vst.msk [vmem:[%s4051_s1 + $0x13f] sm:$0x4] %vm3_vm0, %v61_v7   ;;  %1337 = vst.msk [vmem:[%s4051_s1 + $0x15e] sm:$0x8] %vm3_vm0, %v61_v7  }
  0x83   :  { %1338 = vst.msk [vmem:[%s4051_s1 + $0x17d] sm:$0x10] %vm3_vm0, %v61_v7   ;;  %1339 = vst.msk [vmem:[%s4051_s1 + $0x19c] sm:$0x20] %vm3_vm0, %v61_v7  }
  0x84   :  { %1340 = vst.msk [vmem:[%s4051_s1 + $0x1bb] sm:$0x40] %vm3_vm0, %v61_v7   ;;  %1341 = vst.msk [vmem:[%s4051_s1 + $0x1da] sm:$0x80] %vm3_vm0, %v61_v7   ;;  %v225_v12 = vpop.permute.xlu1 %224   ;;  %v204_v13 = vpop.permute.xlu0 %203  }
  0x85   :  { %1368 = vst.msk [vmem:[%s4051_s1 + $0x103] sm:$0x1] %vm3_vm0, %v143_v8   ;;  %1369 = vst.msk [vmem:[%s4051_s1 + $0x122] sm:$0x2] %vm3_vm0, %v143_v8  }
  0x86   :  { %1370 = vst.msk [vmem:[%s4051_s1 + $0x141] sm:$0x4] %vm3_vm0, %v143_v8   ;;  %1371 = vst.msk [vmem:[%s4051_s1 + $0x160] sm:$0x8] %vm3_vm0, %v143_v8  }
  0x87   :  { %1372 = vst.msk [vmem:[%s4051_s1 + $0x17f] sm:$0x10] %vm3_vm0, %v143_v8   ;;  %1373 = vst.msk [vmem:[%s4051_s1 + $0x19e] sm:$0x20] %vm3_vm0, %v143_v8  }
  0x88   :  { %1374 = vst.msk [vmem:[%s4051_s1 + $0x1bd] sm:$0x40] %vm3_vm0, %v143_v8   ;;  %1375 = vst.msk [vmem:[%s4051_s1 + $0x1dc] sm:$0x80] %vm3_vm0, %v143_v8   ;;  %v266_v14 = vpop.permute.xlu1 %265   ;;  %v245_v15 = vpop.permute.xlu0 %244  }
  0x89   :  { %1359 = vst.msk [vmem:[%s4051_s1 + $0x3] sm:$0x1] %vm3_vm0, %v122_v9   ;;  %1360 = vst.msk [vmem:[%s4051_s1 + $0x22] sm:$0x2] %vm3_vm0, %v122_v9  }
  0x8a   :  { %1361 = vst.msk [vmem:[%s4051_s1 + $0x41] sm:$0x4] %vm3_vm0, %v122_v9   ;;  %1362 = vst.msk [vmem:[%s4051_s1 + $0x60] sm:$0x8] %vm3_vm0, %v122_v9  }
  0x8b   :  { %1363 = vst.msk [vmem:[%s4051_s1 + $0x7f] sm:$0x10] %vm3_vm0, %v122_v9   ;;  %1364 = vst.msk [vmem:[%s4051_s1 + $0x9e] sm:$0x20] %vm3_vm0, %v122_v9  }
  0x8c   :  { %1365 = vst.msk [vmem:[%s4051_s1 + $0xbd] sm:$0x40] %vm3_vm0, %v122_v9   ;;  %1366 = vst.msk [vmem:[%s4051_s1 + $0xdc] sm:$0x80] %vm3_vm0, %v122_v9   ;;  %v307_v16 = vpop.permute.xlu1 %306   ;;  %v286_v17 = vpop.permute.xlu0 %285  }
  0x8d   :  { %1385 = vst.msk [vmem:[%s4051_s1 + $0x104] sm:$0x1] %vm3_vm0, %v184_v10   ;;  %1386 = vst.msk [vmem:[%s4051_s1 + $0x123] sm:$0x2] %vm3_vm0, %v184_v10  }
  0x8e   :  { %1387 = vst.msk [vmem:[%s4051_s1 + $0x142] sm:$0x4] %vm3_vm0, %v184_v10   ;;  %1388 = vst.msk [vmem:[%s4051_s1 + $0x161] sm:$0x8] %vm3_vm0, %v184_v10  }
  0x8f   :  { %1389 = vst.msk [vmem:[%s4051_s1 + $0x180] sm:$0x10] %vm3_vm0, %v184_v10   ;;  %1390 = vst.msk [vmem:[%s4051_s1 + $0x19f] sm:$0x20] %vm3_vm0, %v184_v10  }
  0x90   :  { %1391 = vst.msk [vmem:[%s4051_s1 + $0x1be] sm:$0x40] %vm3_vm0, %v184_v10   ;;  %1392 = vst.msk [vmem:[%s4051_s1 + $0x1dd] sm:$0x80] %vm3_vm0, %v184_v10   ;;  %v348_v18 = vpop.permute.xlu1 %347   ;;  %v327_v19 = vpop.permute.xlu0 %326  }
  0x91   :  { %1376 = vst.msk [vmem:[%s4051_s1 + $0x4] sm:$0x1] %vm3_vm0, %v163_v11   ;;  %1377 = vst.msk [vmem:[%s4051_s1 + $0x23] sm:$0x2] %vm3_vm0, %v163_v11  }
  0x92   :  { %1378 = vst.msk [vmem:[%s4051_s1 + $0x42] sm:$0x4] %vm3_vm0, %v163_v11   ;;  %1379 = vst.msk [vmem:[%s4051_s1 + $0x61] sm:$0x8] %vm3_vm0, %v163_v11  }
  0x93   :  { %1380 = vst.msk [vmem:[%s4051_s1 + $0x80] sm:$0x10] %vm3_vm0, %v163_v11   ;;  %1381 = vst.msk [vmem:[%s4051_s1 + $0x9f] sm:$0x20] %vm3_vm0, %v163_v11  }
  0x94   :  { %1382 = vst.msk [vmem:[%s4051_s1 + $0xbe] sm:$0x40] %vm3_vm0, %v163_v11   ;;  %1383 = vst.msk [vmem:[%s4051_s1 + $0xdd] sm:$0x80] %vm3_vm0, %v163_v11   ;;  %v389_v20 = vpop.permute.xlu1 %388   ;;  %v368_v21 = vpop.permute.xlu0 %367  }
  0x95   :  { %1402 = vst.msk [vmem:[%s4051_s1 + $0x105] sm:$0x1] %vm3_vm0, %v225_v12   ;;  %1403 = vst.msk [vmem:[%s4051_s1 + $0x124] sm:$0x2] %vm3_vm0, %v225_v12  }
  0x96   :  { %1404 = vst.msk [vmem:[%s4051_s1 + $0x143] sm:$0x4] %vm3_vm0, %v225_v12   ;;  %1405 = vst.msk [vmem:[%s4051_s1 + $0x162] sm:$0x8] %vm3_vm0, %v225_v12  }
  0x97   :  { %1406 = vst.msk [vmem:[%s4051_s1 + $0x181] sm:$0x10] %vm3_vm0, %v225_v12   ;;  %1407 = vst.msk [vmem:[%s4051_s1 + $0x1a0] sm:$0x20] %vm3_vm0, %v225_v12  }
  0x98   :  { %1408 = vst.msk [vmem:[%s4051_s1 + $0x1bf] sm:$0x40] %vm3_vm0, %v225_v12   ;;  %1409 = vst.msk [vmem:[%s4051_s1 + $0x1de] sm:$0x80] %vm3_vm0, %v225_v12   ;;  %v430_v22 = vpop.permute.xlu1 %429   ;;  %v409_v23 = vpop.permute.xlu0 %408  }
  0x99   :  { %1393 = vst.msk [vmem:[%s4051_s1 + $0x5] sm:$0x1] %vm3_vm0, %v204_v13   ;;  %1394 = vst.msk [vmem:[%s4051_s1 + $0x24] sm:$0x2] %vm3_vm0, %v204_v13  }
  0x9a   :  { %1395 = vst.msk [vmem:[%s4051_s1 + $0x43] sm:$0x4] %vm3_vm0, %v204_v13   ;;  %1396 = vst.msk [vmem:[%s4051_s1 + $0x62] sm:$0x8] %vm3_vm0, %v204_v13  }
  0x9b   :  { %1397 = vst.msk [vmem:[%s4051_s1 + $0x81] sm:$0x10] %vm3_vm0, %v204_v13   ;;  %1398 = vst.msk [vmem:[%s4051_s1 + $0xa0] sm:$0x20] %vm3_vm0, %v204_v13  }
  0x9c   :  { %1399 = vst.msk [vmem:[%s4051_s1 + $0xbf] sm:$0x40] %vm3_vm0, %v204_v13   ;;  %1400 = vst.msk [vmem:[%s4051_s1 + $0xde] sm:$0x80] %vm3_vm0, %v204_v13   ;;  %v471_v24 = vpop.permute.xlu1 %470   ;;  %v450_v25 = vpop.permute.xlu0 %449  }
  0x9d   :  { %1419 = vst.msk [vmem:[%s4051_s1 + $0x106] sm:$0x1] %vm3_vm0, %v266_v14   ;;  %1420 = vst.msk [vmem:[%s4051_s1 + $0x125] sm:$0x2] %vm3_vm0, %v266_v14  }
  0x9e   :  { %1421 = vst.msk [vmem:[%s4051_s1 + $0x144] sm:$0x4] %vm3_vm0, %v266_v14   ;;  %1422 = vst.msk [vmem:[%s4051_s1 + $0x163] sm:$0x8] %vm3_vm0, %v266_v14  }
  0x9f   :  { %1423 = vst.msk [vmem:[%s4051_s1 + $0x182] sm:$0x10] %vm3_vm0, %v266_v14   ;;  %1424 = vst.msk [vmem:[%s4051_s1 + $0x1a1] sm:$0x20] %vm3_vm0, %v266_v14  }
  0xa0   :  { %1425 = vst.msk [vmem:[%s4051_s1 + $0x1c0] sm:$0x40] %vm3_vm0, %v266_v14   ;;  %1426 = vst.msk [vmem:[%s4051_s1 + $0x1df] sm:$0x80] %vm3_vm0, %v266_v14   ;;  %v512_v26 = vpop.permute.xlu1 %511   ;;  %v491_v27 = vpop.permute.xlu0 %490  }
  0xa1   :  { %1410 = vst.msk [vmem:[%s4051_s1 + $0x6] sm:$0x1] %vm3_vm0, %v245_v15   ;;  %1411 = vst.msk [vmem:[%s4051_s1 + $0x25] sm:$0x2] %vm3_vm0, %v245_v15  }
  0xa2   :  { %1412 = vst.msk [vmem:[%s4051_s1 + $0x44] sm:$0x4] %vm3_vm0, %v245_v15   ;;  %1413 = vst.msk [vmem:[%s4051_s1 + $0x63] sm:$0x8] %vm3_vm0, %v245_v15  }
  0xa3   :  { %1414 = vst.msk [vmem:[%s4051_s1 + $0x82] sm:$0x10] %vm3_vm0, %v245_v15   ;;  %1415 = vst.msk [vmem:[%s4051_s1 + $0xa1] sm:$0x20] %vm3_vm0, %v245_v15  }
  0xa4   :  { %1416 = vst.msk [vmem:[%s4051_s1 + $0xc0] sm:$0x40] %vm3_vm0, %v245_v15   ;;  %1417 = vst.msk [vmem:[%s4051_s1 + $0xdf] sm:$0x80] %vm3_vm0, %v245_v15   ;;  %v553_v28 = vpop.permute.xlu1 %552   ;;  %v532_v29 = vpop.permute.xlu0 %531  }
  0xa5   :  { %1436 = vst.msk [vmem:[%s4051_s1 + $0x107] sm:$0x1] %vm3_vm0, %v307_v16   ;;  %1437 = vst.msk [vmem:[%s4051_s1 + $0x126] sm:$0x2] %vm3_vm0, %v307_v16  }
  0xa6   :  { %1438 = vst.msk [vmem:[%s4051_s1 + $0x145] sm:$0x4] %vm3_vm0, %v307_v16   ;;  %1439 = vst.msk [vmem:[%s4051_s1 + $0x164] sm:$0x8] %vm3_vm0, %v307_v16  }
  0xa7   :  { %1440 = vst.msk [vmem:[%s4051_s1 + $0x183] sm:$0x10] %vm3_vm0, %v307_v16   ;;  %1441 = vst.msk [vmem:[%s4051_s1 + $0x1a2] sm:$0x20] %vm3_vm0, %v307_v16  }
  0xa8   :  { %1442 = vst.msk [vmem:[%s4051_s1 + $0x1c1] sm:$0x40] %vm3_vm0, %v307_v16   ;;  %1443 = vst.msk [vmem:[%s4051_s1 + $0x1e0] sm:$0x80] %vm3_vm0, %v307_v16   ;;  %v594_v30 = vpop.permute.xlu1 %593   ;;  %v573_v31 = vpop.permute.xlu0 %572  }
  0xa9   :  { %1427 = vst.msk [vmem:[%s4051_s1 + $0x7] sm:$0x1] %vm3_vm0, %v286_v17   ;;  %1428 = vst.msk [vmem:[%s4051_s1 + $0x26] sm:$0x2] %vm3_vm0, %v286_v17  }
  0xaa   :  { %1429 = vst.msk [vmem:[%s4051_s1 + $0x45] sm:$0x4] %vm3_vm0, %v286_v17   ;;  %1430 = vst.msk [vmem:[%s4051_s1 + $0x64] sm:$0x8] %vm3_vm0, %v286_v17  }
  0xab   :  { %1431 = vst.msk [vmem:[%s4051_s1 + $0x83] sm:$0x10] %vm3_vm0, %v286_v17   ;;  %1432 = vst.msk [vmem:[%s4051_s1 + $0xa2] sm:$0x20] %vm3_vm0, %v286_v17  }
  0xac   :  { %1433 = vst.msk [vmem:[%s4051_s1 + $0xc1] sm:$0x40] %vm3_vm0, %v286_v17   ;;  %1434 = vst.msk [vmem:[%s4051_s1 + $0xe0] sm:$0x80] %vm3_vm0, %v286_v17   ;;  %v635_v32 = vpop.permute.xlu1 %634   ;;  %v614_v33 = vpop.permute.xlu0 %613  }
  0xad   :  { %1453 = vst.msk [vmem:[%s4051_s1 + $0x108] sm:$0x1] %vm3_vm0, %v348_v18   ;;  %1454 = vst.msk [vmem:[%s4051_s1 + $0x127] sm:$0x2] %vm3_vm0, %v348_v18  }
  0xae   :  { %1455 = vst.msk [vmem:[%s4051_s1 + $0x146] sm:$0x4] %vm3_vm0, %v348_v18   ;;  %1456 = vst.msk [vmem:[%s4051_s1 + $0x165] sm:$0x8] %vm3_vm0, %v348_v18  }
  0xaf   :  { %1457 = vst.msk [vmem:[%s4051_s1 + $0x184] sm:$0x10] %vm3_vm0, %v348_v18   ;;  %1458 = vst.msk [vmem:[%s4051_s1 + $0x1a3] sm:$0x20] %vm3_vm0, %v348_v18  }
  0xb0   :  { %1459 = vst.msk [vmem:[%s4051_s1 + $0x1c2] sm:$0x40] %vm3_vm0, %v348_v18   ;;  %1460 = vst.msk [vmem:[%s4051_s1 + $0x1e1] sm:$0x80] %vm3_vm0, %v348_v18   ;;  %v676_v34 = vpop.permute.xlu1 %675   ;;  %v655_v35 = vpop.permute.xlu0 %654  }
  0xb1   :  { %1444 = vst.msk [vmem:[%s4051_s1 + $0x8] sm:$0x1] %vm3_vm0, %v327_v19   ;;  %1445 = vst.msk [vmem:[%s4051_s1 + $0x27] sm:$0x2] %vm3_vm0, %v327_v19  }
  0xb2   :  { %1446 = vst.msk [vmem:[%s4051_s1 + $0x46] sm:$0x4] %vm3_vm0, %v327_v19   ;;  %1447 = vst.msk [vmem:[%s4051_s1 + $0x65] sm:$0x8] %vm3_vm0, %v327_v19  }
  0xb3   :  { %1448 = vst.msk [vmem:[%s4051_s1 + $0x84] sm:$0x10] %vm3_vm0, %v327_v19   ;;  %1449 = vst.msk [vmem:[%s4051_s1 + $0xa3] sm:$0x20] %vm3_vm0, %v327_v19  }
  0xb4   :  { %1450 = vst.msk [vmem:[%s4051_s1 + $0xc2] sm:$0x40] %vm3_vm0, %v327_v19   ;;  %1451 = vst.msk [vmem:[%s4051_s1 + $0xe1] sm:$0x80] %vm3_vm0, %v327_v19   ;;  %v717_v36 = vpop.permute.xlu1 %716   ;;  %v696_v37 = vpop.permute.xlu0 %695  }
  0xb5   :  { %1470 = vst.msk [vmem:[%s4051_s1 + $0x109] sm:$0x1] %vm3_vm0, %v389_v20   ;;  %1471 = vst.msk [vmem:[%s4051_s1 + $0x128] sm:$0x2] %vm3_vm0, %v389_v20  }
  0xb6   :  { %1472 = vst.msk [vmem:[%s4051_s1 + $0x147] sm:$0x4] %vm3_vm0, %v389_v20   ;;  %1473 = vst.msk [vmem:[%s4051_s1 + $0x166] sm:$0x8] %vm3_vm0, %v389_v20  }
  0xb7   :  { %1474 = vst.msk [vmem:[%s4051_s1 + $0x185] sm:$0x10] %vm3_vm0, %v389_v20   ;;  %1475 = vst.msk [vmem:[%s4051_s1 + $0x1a4] sm:$0x20] %vm3_vm0, %v389_v20  }
  0xb8   :  { %1476 = vst.msk [vmem:[%s4051_s1 + $0x1c3] sm:$0x40] %vm3_vm0, %v389_v20   ;;  %1477 = vst.msk [vmem:[%s4051_s1 + $0x1e2] sm:$0x80] %vm3_vm0, %v389_v20   ;;  %v758_v38 = vpop.permute.xlu1 %757   ;;  %v737_v39 = vpop.permute.xlu0 %736  }
  0xb9   :  { %1461 = vst.msk [vmem:[%s4051_s1 + $0x9] sm:$0x1] %vm3_vm0, %v368_v21   ;;  %1462 = vst.msk [vmem:[%s4051_s1 + $0x28] sm:$0x2] %vm3_vm0, %v368_v21  }
  0xba   :  { %1463 = vst.msk [vmem:[%s4051_s1 + $0x47] sm:$0x4] %vm3_vm0, %v368_v21   ;;  %1464 = vst.msk [vmem:[%s4051_s1 + $0x66] sm:$0x8] %vm3_vm0, %v368_v21  }
  0xbb   :  { %1465 = vst.msk [vmem:[%s4051_s1 + $0x85] sm:$0x10] %vm3_vm0, %v368_v21   ;;  %1466 = vst.msk [vmem:[%s4051_s1 + $0xa4] sm:$0x20] %vm3_vm0, %v368_v21  }
  0xbc   :  { %1467 = vst.msk [vmem:[%s4051_s1 + $0xc3] sm:$0x40] %vm3_vm0, %v368_v21   ;;  %1468 = vst.msk [vmem:[%s4051_s1 + $0xe2] sm:$0x80] %vm3_vm0, %v368_v21   ;;  %v799_v40 = vpop.permute.xlu1 %798   ;;  %v778_v41 = vpop.permute.xlu0 %777  }
  0xbd   :  { %1487 = vst.msk [vmem:[%s4051_s1 + $0x10a] sm:$0x1] %vm3_vm0, %v430_v22   ;;  %1488 = vst.msk [vmem:[%s4051_s1 + $0x129] sm:$0x2] %vm3_vm0, %v430_v22  }
  0xbe   :  { %1489 = vst.msk [vmem:[%s4051_s1 + $0x148] sm:$0x4] %vm3_vm0, %v430_v22   ;;  %1490 = vst.msk [vmem:[%s4051_s1 + $0x167] sm:$0x8] %vm3_vm0, %v430_v22  }
  0xbf   :  { %1491 = vst.msk [vmem:[%s4051_s1 + $0x186] sm:$0x10] %vm3_vm0, %v430_v22   ;;  %1492 = vst.msk [vmem:[%s4051_s1 + $0x1a5] sm:$0x20] %vm3_vm0, %v430_v22  }
  0xc0   :  { %1493 = vst.msk [vmem:[%s4051_s1 + $0x1c4] sm:$0x40] %vm3_vm0, %v430_v22   ;;  %1494 = vst.msk [vmem:[%s4051_s1 + $0x1e3] sm:$0x80] %vm3_vm0, %v430_v22   ;;  %v840_v42 = vpop.permute.xlu1 %839   ;;  %v819_v43 = vpop.permute.xlu0 %818  }
  0xc1   :  { %1478 = vst.msk [vmem:[%s4051_s1 + $0xa] sm:$0x1] %vm3_vm0, %v409_v23   ;;  %1479 = vst.msk [vmem:[%s4051_s1 + $0x29] sm:$0x2] %vm3_vm0, %v409_v23  }
  0xc2   :  { %1480 = vst.msk [vmem:[%s4051_s1 + $0x48] sm:$0x4] %vm3_vm0, %v409_v23   ;;  %1481 = vst.msk [vmem:[%s4051_s1 + $0x67] sm:$0x8] %vm3_vm0, %v409_v23  }
  0xc3   :  { %1482 = vst.msk [vmem:[%s4051_s1 + $0x86] sm:$0x10] %vm3_vm0, %v409_v23   ;;  %1483 = vst.msk [vmem:[%s4051_s1 + $0xa5] sm:$0x20] %vm3_vm0, %v409_v23  }
  0xc4   :  { %1484 = vst.msk [vmem:[%s4051_s1 + $0xc4] sm:$0x40] %vm3_vm0, %v409_v23   ;;  %1485 = vst.msk [vmem:[%s4051_s1 + $0xe3] sm:$0x80] %vm3_vm0, %v409_v23   ;;  %v881_v44 = vpop.permute.xlu1 %880   ;;  %v860_v45 = vpop.permute.xlu0 %859  }
  0xc5   :  { %1504 = vst.msk [vmem:[%s4051_s1 + $0x10b] sm:$0x1] %vm3_vm0, %v471_v24   ;;  %1505 = vst.msk [vmem:[%s4051_s1 + $0x12a] sm:$0x2] %vm3_vm0, %v471_v24  }
  0xc6   :  { %1506 = vst.msk [vmem:[%s4051_s1 + $0x149] sm:$0x4] %vm3_vm0, %v471_v24   ;;  %1507 = vst.msk [vmem:[%s4051_s1 + $0x168] sm:$0x8] %vm3_vm0, %v471_v24  }
  0xc7   :  { %1508 = vst.msk [vmem:[%s4051_s1 + $0x187] sm:$0x10] %vm3_vm0, %v471_v24   ;;  %1509 = vst.msk [vmem:[%s4051_s1 + $0x1a6] sm:$0x20] %vm3_vm0, %v471_v24  }
  0xc8   :  { %1510 = vst.msk [vmem:[%s4051_s1 + $0x1c5] sm:$0x40] %vm3_vm0, %v471_v24   ;;  %1511 = vst.msk [vmem:[%s4051_s1 + $0x1e4] sm:$0x80] %vm3_vm0, %v471_v24   ;;  %v922_v46 = vpop.permute.xlu1 %921   ;;  %v901_v47 = vpop.permute.xlu0 %900  }
  0xc9   :  { %1495 = vst.msk [vmem:[%s4051_s1 + $0xb] sm:$0x1] %vm3_vm0, %v450_v25   ;;  %1496 = vst.msk [vmem:[%s4051_s1 + $0x2a] sm:$0x2] %vm3_vm0, %v450_v25  }
  0xca   :  { %1497 = vst.msk [vmem:[%s4051_s1 + $0x49] sm:$0x4] %vm3_vm0, %v450_v25   ;;  %1498 = vst.msk [vmem:[%s4051_s1 + $0x68] sm:$0x8] %vm3_vm0, %v450_v25  }
  0xcb   :  { %1499 = vst.msk [vmem:[%s4051_s1 + $0x87] sm:$0x10] %vm3_vm0, %v450_v25   ;;  %1500 = vst.msk [vmem:[%s4051_s1 + $0xa6] sm:$0x20] %vm3_vm0, %v450_v25  }
  0xcc   :  { %1501 = vst.msk [vmem:[%s4051_s1 + $0xc5] sm:$0x40] %vm3_vm0, %v450_v25   ;;  %1502 = vst.msk [vmem:[%s4051_s1 + $0xe4] sm:$0x80] %vm3_vm0, %v450_v25   ;;  %v963_v48 = vpop.permute.xlu1 %962   ;;  %v942_v49 = vpop.permute.xlu0 %941  }
  0xcd   :  { %1521 = vst.msk [vmem:[%s4051_s1 + $0x10c] sm:$0x1] %vm3_vm0, %v512_v26   ;;  %1522 = vst.msk [vmem:[%s4051_s1 + $0x12b] sm:$0x2] %vm3_vm0, %v512_v26  }
  0xce   :  { %1523 = vst.msk [vmem:[%s4051_s1 + $0x14a] sm:$0x4] %vm3_vm0, %v512_v26   ;;  %1524 = vst.msk [vmem:[%s4051_s1 + $0x169] sm:$0x8] %vm3_vm0, %v512_v26  }
  0xcf   :  { %1525 = vst.msk [vmem:[%s4051_s1 + $0x188] sm:$0x10] %vm3_vm0, %v512_v26   ;;  %1526 = vst.msk [vmem:[%s4051_s1 + $0x1a7] sm:$0x20] %vm3_vm0, %v512_v26  }
  0xd0   :  { %1527 = vst.msk [vmem:[%s4051_s1 + $0x1c6] sm:$0x40] %vm3_vm0, %v512_v26   ;;  %1528 = vst.msk [vmem:[%s4051_s1 + $0x1e5] sm:$0x80] %vm3_vm0, %v512_v26   ;;  %v1004_v50 = vpop.permute.xlu1 %1003   ;;  %v983_v51 = vpop.permute.xlu0 %982  }
  0xd1   :  { %1512 = vst.msk [vmem:[%s4051_s1 + $0xc] sm:$0x1] %vm3_vm0, %v491_v27   ;;  %1513 = vst.msk [vmem:[%s4051_s1 + $0x2b] sm:$0x2] %vm3_vm0, %v491_v27  }
  0xd2   :  { %1514 = vst.msk [vmem:[%s4051_s1 + $0x4a] sm:$0x4] %vm3_vm0, %v491_v27   ;;  %1515 = vst.msk [vmem:[%s4051_s1 + $0x69] sm:$0x8] %vm3_vm0, %v491_v27  }
  0xd3   :  { %1516 = vst.msk [vmem:[%s4051_s1 + $0x88] sm:$0x10] %vm3_vm0, %v491_v27   ;;  %1517 = vst.msk [vmem:[%s4051_s1 + $0xa7] sm:$0x20] %vm3_vm0, %v491_v27  }
  0xd4   :  { %1518 = vst.msk [vmem:[%s4051_s1 + $0xc6] sm:$0x40] %vm3_vm0, %v491_v27   ;;  %1519 = vst.msk [vmem:[%s4051_s1 + $0xe5] sm:$0x80] %vm3_vm0, %v491_v27   ;;  %v1045_v52 = vpop.permute.xlu1 %1044   ;;  %v1024_v53 = vpop.permute.xlu0 %1023  }
  0xd5   :  { %1538 = vst.msk [vmem:[%s4051_s1 + $0x10d] sm:$0x1] %vm3_vm0, %v553_v28   ;;  %1539 = vst.msk [vmem:[%s4051_s1 + $0x12c] sm:$0x2] %vm3_vm0, %v553_v28  }
  0xd6   :  { %1540 = vst.msk [vmem:[%s4051_s1 + $0x14b] sm:$0x4] %vm3_vm0, %v553_v28   ;;  %1541 = vst.msk [vmem:[%s4051_s1 + $0x16a] sm:$0x8] %vm3_vm0, %v553_v28  }
  0xd7   :  { %1542 = vst.msk [vmem:[%s4051_s1 + $0x189] sm:$0x10] %vm3_vm0, %v553_v28   ;;  %1543 = vst.msk [vmem:[%s4051_s1 + $0x1a8] sm:$0x20] %vm3_vm0, %v553_v28  }
  0xd8   :  { %1544 = vst.msk [vmem:[%s4051_s1 + $0x1c7] sm:$0x40] %vm3_vm0, %v553_v28   ;;  %1545 = vst.msk [vmem:[%s4051_s1 + $0x1e6] sm:$0x80] %vm3_vm0, %v553_v28   ;;  %v1086_v54 = vpop.permute.xlu1 %1085   ;;  %v1065_v55 = vpop.permute.xlu0 %1064  }
  0xd9   :  { %1529 = vst.msk [vmem:[%s4051_s1 + $0xd] sm:$0x1] %vm3_vm0, %v532_v29   ;;  %1530 = vst.msk [vmem:[%s4051_s1 + $0x2c] sm:$0x2] %vm3_vm0, %v532_v29  }
  0xda   :  { %1531 = vst.msk [vmem:[%s4051_s1 + $0x4b] sm:$0x4] %vm3_vm0, %v532_v29   ;;  %1532 = vst.msk [vmem:[%s4051_s1 + $0x6a] sm:$0x8] %vm3_vm0, %v532_v29  }
  0xdb   :  { %1533 = vst.msk [vmem:[%s4051_s1 + $0x89] sm:$0x10] %vm3_vm0, %v532_v29   ;;  %1534 = vst.msk [vmem:[%s4051_s1 + $0xa8] sm:$0x20] %vm3_vm0, %v532_v29  }
  0xdc   :  { %1535 = vst.msk [vmem:[%s4051_s1 + $0xc7] sm:$0x40] %vm3_vm0, %v532_v29   ;;  %1536 = vst.msk [vmem:[%s4051_s1 + $0xe6] sm:$0x80] %vm3_vm0, %v532_v29   ;;  %v1127_v56 = vpop.permute.xlu1 %1126   ;;  %v1106_v57 = vpop.permute.xlu0 %1105  }
  0xdd   :  { %1555 = vst.msk [vmem:[%s4051_s1 + $0x10e] sm:$0x1] %vm3_vm0, %v594_v30   ;;  %1556 = vst.msk [vmem:[%s4051_s1 + $0x12d] sm:$0x2] %vm3_vm0, %v594_v30  }
  0xde   :  { %1557 = vst.msk [vmem:[%s4051_s1 + $0x14c] sm:$0x4] %vm3_vm0, %v594_v30   ;;  %1558 = vst.msk [vmem:[%s4051_s1 + $0x16b] sm:$0x8] %vm3_vm0, %v594_v30  }
  0xdf   :  { %1559 = vst.msk [vmem:[%s4051_s1 + $0x18a] sm:$0x10] %vm3_vm0, %v594_v30   ;;  %1560 = vst.msk [vmem:[%s4051_s1 + $0x1a9] sm:$0x20] %vm3_vm0, %v594_v30  }
  0xe0   :  { %1561 = vst.msk [vmem:[%s4051_s1 + $0x1c8] sm:$0x40] %vm3_vm0, %v594_v30   ;;  %1562 = vst.msk [vmem:[%s4051_s1 + $0x1e7] sm:$0x80] %vm3_vm0, %v594_v30   ;;  %v1168_v58 = vpop.permute.xlu1 %1167   ;;  %v1147_v59 = vpop.permute.xlu0 %1146  }
  0xe1   :  { %1546 = vst.msk [vmem:[%s4051_s1 + $0xe] sm:$0x1] %vm3_vm0, %v573_v31   ;;  %1547 = vst.msk [vmem:[%s4051_s1 + $0x2d] sm:$0x2] %vm3_vm0, %v573_v31  }
  0xe2   :  { %1548 = vst.msk [vmem:[%s4051_s1 + $0x4c] sm:$0x4] %vm3_vm0, %v573_v31   ;;  %1549 = vst.msk [vmem:[%s4051_s1 + $0x6b] sm:$0x8] %vm3_vm0, %v573_v31  }
  0xe3   :  { %1550 = vst.msk [vmem:[%s4051_s1 + $0x8a] sm:$0x10] %vm3_vm0, %v573_v31   ;;  %1551 = vst.msk [vmem:[%s4051_s1 + $0xa9] sm:$0x20] %vm3_vm0, %v573_v31  }
  0xe4   :  { %1552 = vst.msk [vmem:[%s4051_s1 + $0xc8] sm:$0x40] %vm3_vm0, %v573_v31   ;;  %1553 = vst.msk [vmem:[%s4051_s1 + $0xe7] sm:$0x80] %vm3_vm0, %v573_v31   ;;  %v1209_v60 = vpop.permute.xlu1 %1208   ;;  %v1188_v61 = vpop.permute.xlu0 %1187  }
  0xe5   :  { %1572 = vst.msk [vmem:[%s4051_s1 + $0x10f] sm:$0x1] %vm3_vm0, %v635_v32   ;;  %1573 = vst.msk [vmem:[%s4051_s1 + $0x12e] sm:$0x2] %vm3_vm0, %v635_v32  }
  0xe6   :  { %1574 = vst.msk [vmem:[%s4051_s1 + $0x14d] sm:$0x4] %vm3_vm0, %v635_v32   ;;  %1575 = vst.msk [vmem:[%s4051_s1 + $0x16c] sm:$0x8] %vm3_vm0, %v635_v32  }
  0xe7   :  { %1576 = vst.msk [vmem:[%s4051_s1 + $0x18b] sm:$0x10] %vm3_vm0, %v635_v32   ;;  %1577 = vst.msk [vmem:[%s4051_s1 + $0x1aa] sm:$0x20] %vm3_vm0, %v635_v32  }
  0xe8   :  { %1578 = vst.msk [vmem:[%s4051_s1 + $0x1c9] sm:$0x40] %vm3_vm0, %v635_v32   ;;  %1579 = vst.msk [vmem:[%s4051_s1 + $0x1e8] sm:$0x80] %vm3_vm0, %v635_v32   ;;  %v1250_v62 = vpop.permute.xlu1 %1249   ;;  %v1229_v63 = vpop.permute.xlu0 %1228  }
  0xe9   :  { %1563 = vst.msk [vmem:[%s4051_s1 + $0xf] sm:$0x1] %vm3_vm0, %v614_v33   ;;  %1564 = vst.msk [vmem:[%s4051_s1 + $0x2e] sm:$0x2] %vm3_vm0, %v614_v33  }
  0xea   :  { %1565 = vst.msk [vmem:[%s4051_s1 + $0x4d] sm:$0x4] %vm3_vm0, %v614_v33   ;;  %1566 = vst.msk [vmem:[%s4051_s1 + $0x6c] sm:$0x8] %vm3_vm0, %v614_v33  }
  0xeb   :  { %1567 = vst.msk [vmem:[%s4051_s1 + $0x8b] sm:$0x10] %vm3_vm0, %v614_v33   ;;  %1568 = vst.msk [vmem:[%s4051_s1 + $0xaa] sm:$0x20] %vm3_vm0, %v614_v33  }
  0xec   :  { %1569 = vst.msk [vmem:[%s4051_s1 + $0xc9] sm:$0x40] %vm3_vm0, %v614_v33   ;;  %1570 = vst.msk [vmem:[%s4051_s1 + $0xe8] sm:$0x80] %vm3_vm0, %v614_v33   ;;  %v1291_v0 = vpop.permute.xlu1 %1290   ;;  %v1270_v1 = vpop.permute.xlu0 %1269  }
  0xed   :  { %1589 = vst.msk [vmem:[%s4051_s1 + $0x110] sm:$0x1] %vm3_vm0, %v676_v34   ;;  %1590 = vst.msk [vmem:[%s4051_s1 + $0x12f] sm:$0x2] %vm3_vm0, %v676_v34  }
  0xee   :  { %1591 = vst.msk [vmem:[%s4051_s1 + $0x14e] sm:$0x4] %vm3_vm0, %v676_v34   ;;  %1592 = vst.msk [vmem:[%s4051_s1 + $0x16d] sm:$0x8] %vm3_vm0, %v676_v34  }
  0xef   :  { %1593 = vst.msk [vmem:[%s4051_s1 + $0x18c] sm:$0x10] %vm3_vm0, %v676_v34   ;;  %1594 = vst.msk [vmem:[%s4051_s1 + $0x1ab] sm:$0x20] %vm3_vm0, %v676_v34  }
  0xf0   :  { %1595 = vst.msk [vmem:[%s4051_s1 + $0x1ca] sm:$0x40] %vm3_vm0, %v676_v34   ;;  %1596 = vst.msk [vmem:[%s4051_s1 + $0x1e9] sm:$0x80] %vm3_vm0, %v676_v34  }
  0xf1   :  { %1580 = vst.msk [vmem:[%s4051_s1 + $0x10] sm:$0x1] %vm3_vm0, %v655_v35   ;;  %1581 = vst.msk [vmem:[%s4051_s1 + $0x2f] sm:$0x2] %vm3_vm0, %v655_v35  }
  0xf2   :  { %1582 = vst.msk [vmem:[%s4051_s1 + $0x4e] sm:$0x4] %vm3_vm0, %v655_v35   ;;  %1583 = vst.msk [vmem:[%s4051_s1 + $0x6d] sm:$0x8] %vm3_vm0, %v655_v35  }
  0xf3   :  { %1584 = vst.msk [vmem:[%s4051_s1 + $0x8c] sm:$0x10] %vm3_vm0, %v655_v35   ;;  %1585 = vst.msk [vmem:[%s4051_s1 + $0xab] sm:$0x20] %vm3_vm0, %v655_v35  }
  0xf4   :  { %1586 = vst.msk [vmem:[%s4051_s1 + $0xca] sm:$0x40] %vm3_vm0, %v655_v35   ;;  %1587 = vst.msk [vmem:[%s4051_s1 + $0xe9] sm:$0x80] %vm3_vm0, %v655_v35  }
  0xf5   :  { %1606 = vst.msk [vmem:[%s4051_s1 + $0x111] sm:$0x1] %vm3_vm0, %v717_v36   ;;  %1607 = vst.msk [vmem:[%s4051_s1 + $0x130] sm:$0x2] %vm3_vm0, %v717_v36  }
  0xf6   :  { %1608 = vst.msk [vmem:[%s4051_s1 + $0x14f] sm:$0x4] %vm3_vm0, %v717_v36   ;;  %1609 = vst.msk [vmem:[%s4051_s1 + $0x16e] sm:$0x8] %vm3_vm0, %v717_v36  }
  0xf7   :  { %1610 = vst.msk [vmem:[%s4051_s1 + $0x18d] sm:$0x10] %vm3_vm0, %v717_v36   ;;  %1611 = vst.msk [vmem:[%s4051_s1 + $0x1ac] sm:$0x20] %vm3_vm0, %v717_v36  }
  0xf8   :  { %1612 = vst.msk [vmem:[%s4051_s1 + $0x1cb] sm:$0x40] %vm3_vm0, %v717_v36   ;;  %1613 = vst.msk [vmem:[%s4051_s1 + $0x1ea] sm:$0x80] %vm3_vm0, %v717_v36  }
  0xf9   :  { %1597 = vst.msk [vmem:[%s4051_s1 + $0x11] sm:$0x1] %vm3_vm0, %v696_v37   ;;  %1598 = vst.msk [vmem:[%s4051_s1 + $0x30] sm:$0x2] %vm3_vm0, %v696_v37  }
  0xfa   :  { %1599 = vst.msk [vmem:[%s4051_s1 + $0x4f] sm:$0x4] %vm3_vm0, %v696_v37   ;;  %1600 = vst.msk [vmem:[%s4051_s1 + $0x6e] sm:$0x8] %vm3_vm0, %v696_v37  }
  0xfb   :  { %1601 = vst.msk [vmem:[%s4051_s1 + $0x8d] sm:$0x10] %vm3_vm0, %v696_v37   ;;  %1602 = vst.msk [vmem:[%s4051_s1 + $0xac] sm:$0x20] %vm3_vm0, %v696_v37  }
  0xfc   :  { %1603 = vst.msk [vmem:[%s4051_s1 + $0xcb] sm:$0x40] %vm3_vm0, %v696_v37   ;;  %1604 = vst.msk [vmem:[%s4051_s1 + $0xea] sm:$0x80] %vm3_vm0, %v696_v37  }
  0xfd   :  { %1623 = vst.msk [vmem:[%s4051_s1 + $0x112] sm:$0x1] %vm3_vm0, %v758_v38   ;;  %1624 = vst.msk [vmem:[%s4051_s1 + $0x131] sm:$0x2] %vm3_vm0, %v758_v38  }
  0xfe   :  { %1625 = vst.msk [vmem:[%s4051_s1 + $0x150] sm:$0x4] %vm3_vm0, %v758_v38   ;;  %1626 = vst.msk [vmem:[%s4051_s1 + $0x16f] sm:$0x8] %vm3_vm0, %v758_v38  }
  0xff   :  { %1627 = vst.msk [vmem:[%s4051_s1 + $0x18e] sm:$0x10] %vm3_vm0, %v758_v38   ;;  %1628 = vst.msk [vmem:[%s4051_s1 + $0x1ad] sm:$0x20] %vm3_vm0, %v758_v38  }
 0x100   :  { %1629 = vst.msk [vmem:[%s4051_s1 + $0x1cc] sm:$0x40] %vm3_vm0, %v758_v38   ;;  %1630 = vst.msk [vmem:[%s4051_s1 + $0x1eb] sm:$0x80] %vm3_vm0, %v758_v38  }
 0x101   :  { %1614 = vst.msk [vmem:[%s4051_s1 + $0x12] sm:$0x1] %vm3_vm0, %v737_v39   ;;  %1615 = vst.msk [vmem:[%s4051_s1 + $0x31] sm:$0x2] %vm3_vm0, %v737_v39  }
 0x102   :  { %1616 = vst.msk [vmem:[%s4051_s1 + $0x50] sm:$0x4] %vm3_vm0, %v737_v39   ;;  %1617 = vst.msk [vmem:[%s4051_s1 + $0x6f] sm:$0x8] %vm3_vm0, %v737_v39  }
 0x103   :  { %1618 = vst.msk [vmem:[%s4051_s1 + $0x8e] sm:$0x10] %vm3_vm0, %v737_v39   ;;  %1619 = vst.msk [vmem:[%s4051_s1 + $0xad] sm:$0x20] %vm3_vm0, %v737_v39  }
 0x104   :  { %1620 = vst.msk [vmem:[%s4051_s1 + $0xcc] sm:$0x40] %vm3_vm0, %v737_v39   ;;  %1621 = vst.msk [vmem:[%s4051_s1 + $0xeb] sm:$0x80] %vm3_vm0, %v737_v39  }
 0x105   :  { %1640 = vst.msk [vmem:[%s4051_s1 + $0x113] sm:$0x1] %vm3_vm0, %v799_v40   ;;  %1641 = vst.msk [vmem:[%s4051_s1 + $0x132] sm:$0x2] %vm3_vm0, %v799_v40  }
 0x106   :  { %1642 = vst.msk [vmem:[%s4051_s1 + $0x151] sm:$0x4] %vm3_vm0, %v799_v40   ;;  %1643 = vst.msk [vmem:[%s4051_s1 + $0x170] sm:$0x8] %vm3_vm0, %v799_v40  }
 0x107   :  { %1644 = vst.msk [vmem:[%s4051_s1 + $0x18f] sm:$0x10] %vm3_vm0, %v799_v40   ;;  %1645 = vst.msk [vmem:[%s4051_s1 + $0x1ae] sm:$0x20] %vm3_vm0, %v799_v40  }
 0x108   :  { %1646 = vst.msk [vmem:[%s4051_s1 + $0x1cd] sm:$0x40] %vm3_vm0, %v799_v40   ;;  %1647 = vst.msk [vmem:[%s4051_s1 + $0x1ec] sm:$0x80] %vm3_vm0, %v799_v40  }
 0x109   :  { %1631 = vst.msk [vmem:[%s4051_s1 + $0x13] sm:$0x1] %vm3_vm0, %v778_v41   ;;  %1632 = vst.msk [vmem:[%s4051_s1 + $0x32] sm:$0x2] %vm3_vm0, %v778_v41  }
 0x10a   :  { %1633 = vst.msk [vmem:[%s4051_s1 + $0x51] sm:$0x4] %vm3_vm0, %v778_v41   ;;  %1634 = vst.msk [vmem:[%s4051_s1 + $0x70] sm:$0x8] %vm3_vm0, %v778_v41  }
 0x10b   :  { %1635 = vst.msk [vmem:[%s4051_s1 + $0x8f] sm:$0x10] %vm3_vm0, %v778_v41   ;;  %1636 = vst.msk [vmem:[%s4051_s1 + $0xae] sm:$0x20] %vm3_vm0, %v778_v41  }
 0x10c   :  { %1637 = vst.msk [vmem:[%s4051_s1 + $0xcd] sm:$0x40] %vm3_vm0, %v778_v41   ;;  %1638 = vst.msk [vmem:[%s4051_s1 + $0xec] sm:$0x80] %vm3_vm0, %v778_v41  }
 0x10d   :  { %1657 = vst.msk [vmem:[%s4051_s1 + $0x114] sm:$0x1] %vm3_vm0, %v840_v42   ;;  %1658 = vst.msk [vmem:[%s4051_s1 + $0x133] sm:$0x2] %vm3_vm0, %v840_v42  }
 0x10e   :  { %1659 = vst.msk [vmem:[%s4051_s1 + $0x152] sm:$0x4] %vm3_vm0, %v840_v42   ;;  %1660 = vst.msk [vmem:[%s4051_s1 + $0x171] sm:$0x8] %vm3_vm0, %v840_v42  }
 0x10f   :  { %1661 = vst.msk [vmem:[%s4051_s1 + $0x190] sm:$0x10] %vm3_vm0, %v840_v42   ;;  %1662 = vst.msk [vmem:[%s4051_s1 + $0x1af] sm:$0x20] %vm3_vm0, %v840_v42  }
 0x110   :  { %1663 = vst.msk [vmem:[%s4051_s1 + $0x1ce] sm:$0x40] %vm3_vm0, %v840_v42   ;;  %1664 = vst.msk [vmem:[%s4051_s1 + $0x1ed] sm:$0x80] %vm3_vm0, %v840_v42  }
 0x111   :  { %1648 = vst.msk [vmem:[%s4051_s1 + $0x14] sm:$0x1] %vm3_vm0, %v819_v43   ;;  %1649 = vst.msk [vmem:[%s4051_s1 + $0x33] sm:$0x2] %vm3_vm0, %v819_v43  }
 0x112   :  { %1650 = vst.msk [vmem:[%s4051_s1 + $0x52] sm:$0x4] %vm3_vm0, %v819_v43   ;;  %1651 = vst.msk [vmem:[%s4051_s1 + $0x71] sm:$0x8] %vm3_vm0, %v819_v43  }
 0x113   :  { %1652 = vst.msk [vmem:[%s4051_s1 + $0x90] sm:$0x10] %vm3_vm0, %v819_v43   ;;  %1653 = vst.msk [vmem:[%s4051_s1 + $0xaf] sm:$0x20] %vm3_vm0, %v819_v43  }
 0x114   :  { %1654 = vst.msk [vmem:[%s4051_s1 + $0xce] sm:$0x40] %vm3_vm0, %v819_v43   ;;  %1655 = vst.msk [vmem:[%s4051_s1 + $0xed] sm:$0x80] %vm3_vm0, %v819_v43  }
 0x115   :  { %1674 = vst.msk [vmem:[%s4051_s1 + $0x115] sm:$0x1] %vm3_vm0, %v881_v44   ;;  %1675 = vst.msk [vmem:[%s4051_s1 + $0x134] sm:$0x2] %vm3_vm0, %v881_v44  }
 0x116   :  { %1676 = vst.msk [vmem:[%s4051_s1 + $0x153] sm:$0x4] %vm3_vm0, %v881_v44   ;;  %1677 = vst.msk [vmem:[%s4051_s1 + $0x172] sm:$0x8] %vm3_vm0, %v881_v44  }
 0x117   :  { %1678 = vst.msk [vmem:[%s4051_s1 + $0x191] sm:$0x10] %vm3_vm0, %v881_v44   ;;  %1679 = vst.msk [vmem:[%s4051_s1 + $0x1b0] sm:$0x20] %vm3_vm0, %v881_v44  }
 0x118   :  { %1680 = vst.msk [vmem:[%s4051_s1 + $0x1cf] sm:$0x40] %vm3_vm0, %v881_v44   ;;  %1681 = vst.msk [vmem:[%s4051_s1 + $0x1ee] sm:$0x80] %vm3_vm0, %v881_v44  }
 0x119   :  { %1665 = vst.msk [vmem:[%s4051_s1 + $0x15] sm:$0x1] %vm3_vm0, %v860_v45   ;;  %1666 = vst.msk [vmem:[%s4051_s1 + $0x34] sm:$0x2] %vm3_vm0, %v860_v45  }
 0x11a   :  { %1667 = vst.msk [vmem:[%s4051_s1 + $0x53] sm:$0x4] %vm3_vm0, %v860_v45   ;;  %1668 = vst.msk [vmem:[%s4051_s1 + $0x72] sm:$0x8] %vm3_vm0, %v860_v45  }
 0x11b   :  { %1669 = vst.msk [vmem:[%s4051_s1 + $0x91] sm:$0x10] %vm3_vm0, %v860_v45   ;;  %1670 = vst.msk [vmem:[%s4051_s1 + $0xb0] sm:$0x20] %vm3_vm0, %v860_v45  }
 0x11c   :  { %1671 = vst.msk [vmem:[%s4051_s1 + $0xcf] sm:$0x40] %vm3_vm0, %v860_v45   ;;  %1672 = vst.msk [vmem:[%s4051_s1 + $0xee] sm:$0x80] %vm3_vm0, %v860_v45  }
 0x11d   :  { %1691 = vst.msk [vmem:[%s4051_s1 + $0x116] sm:$0x1] %vm3_vm0, %v922_v46   ;;  %1692 = vst.msk [vmem:[%s4051_s1 + $0x135] sm:$0x2] %vm3_vm0, %v922_v46  }
 0x11e   :  { %1693 = vst.msk [vmem:[%s4051_s1 + $0x154] sm:$0x4] %vm3_vm0, %v922_v46   ;;  %1694 = vst.msk [vmem:[%s4051_s1 + $0x173] sm:$0x8] %vm3_vm0, %v922_v46  }
 0x11f   :  { %1695 = vst.msk [vmem:[%s4051_s1 + $0x192] sm:$0x10] %vm3_vm0, %v922_v46   ;;  %1696 = vst.msk [vmem:[%s4051_s1 + $0x1b1] sm:$0x20] %vm3_vm0, %v922_v46  }
 0x120   :  { %1697 = vst.msk [vmem:[%s4051_s1 + $0x1d0] sm:$0x40] %vm3_vm0, %v922_v46   ;;  %1698 = vst.msk [vmem:[%s4051_s1 + $0x1ef] sm:$0x80] %vm3_vm0, %v922_v46  }
 0x121   :  { %1682 = vst.msk [vmem:[%s4051_s1 + $0x16] sm:$0x1] %vm3_vm0, %v901_v47   ;;  %1683 = vst.msk [vmem:[%s4051_s1 + $0x35] sm:$0x2] %vm3_vm0, %v901_v47  }
 0x122   :  { %1684 = vst.msk [vmem:[%s4051_s1 + $0x54] sm:$0x4] %vm3_vm0, %v901_v47   ;;  %1685 = vst.msk [vmem:[%s4051_s1 + $0x73] sm:$0x8] %vm3_vm0, %v901_v47  }
 0x123   :  { %1686 = vst.msk [vmem:[%s4051_s1 + $0x92] sm:$0x10] %vm3_vm0, %v901_v47   ;;  %1687 = vst.msk [vmem:[%s4051_s1 + $0xb1] sm:$0x20] %vm3_vm0, %v901_v47  }
 0x124   :  { %1688 = vst.msk [vmem:[%s4051_s1 + $0xd0] sm:$0x40] %vm3_vm0, %v901_v47   ;;  %1689 = vst.msk [vmem:[%s4051_s1 + $0xef] sm:$0x80] %vm3_vm0, %v901_v47  }
 0x125   :  { %1708 = vst.msk [vmem:[%s4051_s1 + $0x117] sm:$0x1] %vm3_vm0, %v963_v48   ;;  %1709 = vst.msk [vmem:[%s4051_s1 + $0x136] sm:$0x2] %vm3_vm0, %v963_v48  }
 0x126   :  { %1710 = vst.msk [vmem:[%s4051_s1 + $0x155] sm:$0x4] %vm3_vm0, %v963_v48   ;;  %1711 = vst.msk [vmem:[%s4051_s1 + $0x174] sm:$0x8] %vm3_vm0, %v963_v48  }
 0x127   :  { %1712 = vst.msk [vmem:[%s4051_s1 + $0x193] sm:$0x10] %vm3_vm0, %v963_v48   ;;  %1713 = vst.msk [vmem:[%s4051_s1 + $0x1b2] sm:$0x20] %vm3_vm0, %v963_v48  }
 0x128   :  { %1714 = vst.msk [vmem:[%s4051_s1 + $0x1d1] sm:$0x40] %vm3_vm0, %v963_v48   ;;  %1715 = vst.msk [vmem:[%s4051_s1 + $0x1f0] sm:$0x80] %vm3_vm0, %v963_v48  }
 0x129   :  { %1699 = vst.msk [vmem:[%s4051_s1 + $0x17] sm:$0x1] %vm3_vm0, %v942_v49   ;;  %1700 = vst.msk [vmem:[%s4051_s1 + $0x36] sm:$0x2] %vm3_vm0, %v942_v49  }
 0x12a   :  { %1701 = vst.msk [vmem:[%s4051_s1 + $0x55] sm:$0x4] %vm3_vm0, %v942_v49   ;;  %1702 = vst.msk [vmem:[%s4051_s1 + $0x74] sm:$0x8] %vm3_vm0, %v942_v49  }
 0x12b   :  { %1703 = vst.msk [vmem:[%s4051_s1 + $0x93] sm:$0x10] %vm3_vm0, %v942_v49   ;;  %1704 = vst.msk [vmem:[%s4051_s1 + $0xb2] sm:$0x20] %vm3_vm0, %v942_v49  }
 0x12c   :  { %1705 = vst.msk [vmem:[%s4051_s1 + $0xd1] sm:$0x40] %vm3_vm0, %v942_v49   ;;  %1706 = vst.msk [vmem:[%s4051_s1 + $0xf0] sm:$0x80] %vm3_vm0, %v942_v49  }
 0x12d   :  { %1725 = vst.msk [vmem:[%s4051_s1 + $0x118] sm:$0x1] %vm3_vm0, %v1004_v50   ;;  %1726 = vst.msk [vmem:[%s4051_s1 + $0x137] sm:$0x2] %vm3_vm0, %v1004_v50  }
 0x12e   :  { %1727 = vst.msk [vmem:[%s4051_s1 + $0x156] sm:$0x4] %vm3_vm0, %v1004_v50   ;;  %1728 = vst.msk [vmem:[%s4051_s1 + $0x175] sm:$0x8] %vm3_vm0, %v1004_v50  }
 0x12f   :  { %1729 = vst.msk [vmem:[%s4051_s1 + $0x194] sm:$0x10] %vm3_vm0, %v1004_v50   ;;  %1730 = vst.msk [vmem:[%s4051_s1 + $0x1b3] sm:$0x20] %vm3_vm0, %v1004_v50  }
 0x130   :  { %1731 = vst.msk [vmem:[%s4051_s1 + $0x1d2] sm:$0x40] %vm3_vm0, %v1004_v50   ;;  %1732 = vst.msk [vmem:[%s4051_s1 + $0x1f1] sm:$0x80] %vm3_vm0, %v1004_v50  }
 0x131   :  { %1716 = vst.msk [vmem:[%s4051_s1 + $0x18] sm:$0x1] %vm3_vm0, %v983_v51   ;;  %1717 = vst.msk [vmem:[%s4051_s1 + $0x37] sm:$0x2] %vm3_vm0, %v983_v51  }
 0x132   :  { %1718 = vst.msk [vmem:[%s4051_s1 + $0x56] sm:$0x4] %vm3_vm0, %v983_v51   ;;  %1719 = vst.msk [vmem:[%s4051_s1 + $0x75] sm:$0x8] %vm3_vm0, %v983_v51  }
 0x133   :  { %1720 = vst.msk [vmem:[%s4051_s1 + $0x94] sm:$0x10] %vm3_vm0, %v983_v51   ;;  %1721 = vst.msk [vmem:[%s4051_s1 + $0xb3] sm:$0x20] %vm3_vm0, %v983_v51  }
 0x134   :  { %1722 = vst.msk [vmem:[%s4051_s1 + $0xd2] sm:$0x40] %vm3_vm0, %v983_v51   ;;  %1723 = vst.msk [vmem:[%s4051_s1 + $0xf1] sm:$0x80] %vm3_vm0, %v983_v51  }
 0x135   :  { %1742 = vst.msk [vmem:[%s4051_s1 + $0x119] sm:$0x1] %vm3_vm0, %v1045_v52   ;;  %1743 = vst.msk [vmem:[%s4051_s1 + $0x138] sm:$0x2] %vm3_vm0, %v1045_v52  }
 0x136   :  { %1744 = vst.msk [vmem:[%s4051_s1 + $0x157] sm:$0x4] %vm3_vm0, %v1045_v52   ;;  %1745 = vst.msk [vmem:[%s4051_s1 + $0x176] sm:$0x8] %vm3_vm0, %v1045_v52  }
 0x137   :  { %1746 = vst.msk [vmem:[%s4051_s1 + $0x195] sm:$0x10] %vm3_vm0, %v1045_v52   ;;  %1747 = vst.msk [vmem:[%s4051_s1 + $0x1b4] sm:$0x20] %vm3_vm0, %v1045_v52  }
 0x138   :  { %1748 = vst.msk [vmem:[%s4051_s1 + $0x1d3] sm:$0x40] %vm3_vm0, %v1045_v52   ;;  %1749 = vst.msk [vmem:[%s4051_s1 + $0x1f2] sm:$0x80] %vm3_vm0, %v1045_v52  }
 0x139   :  { %1733 = vst.msk [vmem:[%s4051_s1 + $0x19] sm:$0x1] %vm3_vm0, %v1024_v53   ;;  %1734 = vst.msk [vmem:[%s4051_s1 + $0x38] sm:$0x2] %vm3_vm0, %v1024_v53  }
 0x13a   :  { %1735 = vst.msk [vmem:[%s4051_s1 + $0x57] sm:$0x4] %vm3_vm0, %v1024_v53   ;;  %1736 = vst.msk [vmem:[%s4051_s1 + $0x76] sm:$0x8] %vm3_vm0, %v1024_v53  }
 0x13b   :  { %1737 = vst.msk [vmem:[%s4051_s1 + $0x95] sm:$0x10] %vm3_vm0, %v1024_v53   ;;  %1738 = vst.msk [vmem:[%s4051_s1 + $0xb4] sm:$0x20] %vm3_vm0, %v1024_v53  }
 0x13c   :  { %1739 = vst.msk [vmem:[%s4051_s1 + $0xd3] sm:$0x40] %vm3_vm0, %v1024_v53   ;;  %1740 = vst.msk [vmem:[%s4051_s1 + $0xf2] sm:$0x80] %vm3_vm0, %v1024_v53  }
 0x13d   :  { %1759 = vst.msk [vmem:[%s4051_s1 + $0x11a] sm:$0x1] %vm3_vm0, %v1086_v54   ;;  %1760 = vst.msk [vmem:[%s4051_s1 + $0x139] sm:$0x2] %vm3_vm0, %v1086_v54  }
 0x13e   :  { %1761 = vst.msk [vmem:[%s4051_s1 + $0x158] sm:$0x4] %vm3_vm0, %v1086_v54   ;;  %1762 = vst.msk [vmem:[%s4051_s1 + $0x177] sm:$0x8] %vm3_vm0, %v1086_v54  }
 0x13f   :  { %1763 = vst.msk [vmem:[%s4051_s1 + $0x196] sm:$0x10] %vm3_vm0, %v1086_v54   ;;  %1764 = vst.msk [vmem:[%s4051_s1 + $0x1b5] sm:$0x20] %vm3_vm0, %v1086_v54  }
 0x140   :  { %1765 = vst.msk [vmem:[%s4051_s1 + $0x1d4] sm:$0x40] %vm3_vm0, %v1086_v54   ;;  %1766 = vst.msk [vmem:[%s4051_s1 + $0x1f3] sm:$0x80] %vm3_vm0, %v1086_v54  }
 0x141   :  { %1750 = vst.msk [vmem:[%s4051_s1 + $0x1a] sm:$0x1] %vm3_vm0, %v1065_v55   ;;  %1751 = vst.msk [vmem:[%s4051_s1 + $0x39] sm:$0x2] %vm3_vm0, %v1065_v55  }
 0x142   :  { %1752 = vst.msk [vmem:[%s4051_s1 + $0x58] sm:$0x4] %vm3_vm0, %v1065_v55   ;;  %1753 = vst.msk [vmem:[%s4051_s1 + $0x77] sm:$0x8] %vm3_vm0, %v1065_v55  }
 0x143   :  { %1754 = vst.msk [vmem:[%s4051_s1 + $0x96] sm:$0x10] %vm3_vm0, %v1065_v55   ;;  %1755 = vst.msk [vmem:[%s4051_s1 + $0xb5] sm:$0x20] %vm3_vm0, %v1065_v55  }
 0x144   :  { %1756 = vst.msk [vmem:[%s4051_s1 + $0xd4] sm:$0x40] %vm3_vm0, %v1065_v55   ;;  %1757 = vst.msk [vmem:[%s4051_s1 + $0xf3] sm:$0x80] %vm3_vm0, %v1065_v55  }
 0x145   :  { %1776 = vst.msk [vmem:[%s4051_s1 + $0x11b] sm:$0x1] %vm3_vm0, %v1127_v56   ;;  %1777 = vst.msk [vmem:[%s4051_s1 + $0x13a] sm:$0x2] %vm3_vm0, %v1127_v56  }
 0x146   :  { %1778 = vst.msk [vmem:[%s4051_s1 + $0x159] sm:$0x4] %vm3_vm0, %v1127_v56   ;;  %1779 = vst.msk [vmem:[%s4051_s1 + $0x178] sm:$0x8] %vm3_vm0, %v1127_v56  }
 0x147   :  { %1780 = vst.msk [vmem:[%s4051_s1 + $0x197] sm:$0x10] %vm3_vm0, %v1127_v56   ;;  %1781 = vst.msk [vmem:[%s4051_s1 + $0x1b6] sm:$0x20] %vm3_vm0, %v1127_v56  }
 0x148   :  { %1782 = vst.msk [vmem:[%s4051_s1 + $0x1d5] sm:$0x40] %vm3_vm0, %v1127_v56   ;;  %1783 = vst.msk [vmem:[%s4051_s1 + $0x1f4] sm:$0x80] %vm3_vm0, %v1127_v56  }
 0x149   :  { %1767 = vst.msk [vmem:[%s4051_s1 + $0x1b] sm:$0x1] %vm3_vm0, %v1106_v57   ;;  %1768 = vst.msk [vmem:[%s4051_s1 + $0x3a] sm:$0x2] %vm3_vm0, %v1106_v57  }
 0x14a   :  { %1769 = vst.msk [vmem:[%s4051_s1 + $0x59] sm:$0x4] %vm3_vm0, %v1106_v57   ;;  %1770 = vst.msk [vmem:[%s4051_s1 + $0x78] sm:$0x8] %vm3_vm0, %v1106_v57  }
 0x14b   :  { %1771 = vst.msk [vmem:[%s4051_s1 + $0x97] sm:$0x10] %vm3_vm0, %v1106_v57   ;;  %1772 = vst.msk [vmem:[%s4051_s1 + $0xb6] sm:$0x20] %vm3_vm0, %v1106_v57  }
 0x14c   :  { %1773 = vst.msk [vmem:[%s4051_s1 + $0xd5] sm:$0x40] %vm3_vm0, %v1106_v57   ;;  %1774 = vst.msk [vmem:[%s4051_s1 + $0xf4] sm:$0x80] %vm3_vm0, %v1106_v57  }
 0x14d   :  { %1793 = vst.msk [vmem:[%s4051_s1 + $0x11c] sm:$0x1] %vm3_vm0, %v1168_v58   ;;  %1794 = vst.msk [vmem:[%s4051_s1 + $0x13b] sm:$0x2] %vm3_vm0, %v1168_v58  }
 0x14e   :  { %1795 = vst.msk [vmem:[%s4051_s1 + $0x15a] sm:$0x4] %vm3_vm0, %v1168_v58   ;;  %1796 = vst.msk [vmem:[%s4051_s1 + $0x179] sm:$0x8] %vm3_vm0, %v1168_v58  }
 0x14f   :  { %1797 = vst.msk [vmem:[%s4051_s1 + $0x198] sm:$0x10] %vm3_vm0, %v1168_v58   ;;  %1798 = vst.msk [vmem:[%s4051_s1 + $0x1b7] sm:$0x20] %vm3_vm0, %v1168_v58  }
 0x150   :  { %1799 = vst.msk [vmem:[%s4051_s1 + $0x1d6] sm:$0x40] %vm3_vm0, %v1168_v58   ;;  %1800 = vst.msk [vmem:[%s4051_s1 + $0x1f5] sm:$0x80] %vm3_vm0, %v1168_v58  }
 0x151   :  { %1784 = vst.msk [vmem:[%s4051_s1 + $0x1c] sm:$0x1] %vm3_vm0, %v1147_v59   ;;  %1785 = vst.msk [vmem:[%s4051_s1 + $0x3b] sm:$0x2] %vm3_vm0, %v1147_v59  }
 0x152   :  { %1786 = vst.msk [vmem:[%s4051_s1 + $0x5a] sm:$0x4] %vm3_vm0, %v1147_v59   ;;  %1787 = vst.msk [vmem:[%s4051_s1 + $0x79] sm:$0x8] %vm3_vm0, %v1147_v59  }
 0x153   :  { %1788 = vst.msk [vmem:[%s4051_s1 + $0x98] sm:$0x10] %vm3_vm0, %v1147_v59   ;;  %1789 = vst.msk [vmem:[%s4051_s1 + $0xb7] sm:$0x20] %vm3_vm0, %v1147_v59  }
 0x154   :  { %1790 = vst.msk [vmem:[%s4051_s1 + $0xd6] sm:$0x40] %vm3_vm0, %v1147_v59   ;;  %1791 = vst.msk [vmem:[%s4051_s1 + $0xf5] sm:$0x80] %vm3_vm0, %v1147_v59  }
 0x155   :  { %1810 = vst.msk [vmem:[%s4051_s1 + $0x11d] sm:$0x1] %vm3_vm0, %v1209_v60   ;;  %1811 = vst.msk [vmem:[%s4051_s1 + $0x13c] sm:$0x2] %vm3_vm0, %v1209_v60  }
 0x156   :  { %1812 = vst.msk [vmem:[%s4051_s1 + $0x15b] sm:$0x4] %vm3_vm0, %v1209_v60   ;;  %1813 = vst.msk [vmem:[%s4051_s1 + $0x17a] sm:$0x8] %vm3_vm0, %v1209_v60  }
 0x157   :  { %1814 = vst.msk [vmem:[%s4051_s1 + $0x199] sm:$0x10] %vm3_vm0, %v1209_v60   ;;  %1815 = vst.msk [vmem:[%s4051_s1 + $0x1b8] sm:$0x20] %vm3_vm0, %v1209_v60  }
 0x158   :  { %1816 = vst.msk [vmem:[%s4051_s1 + $0x1d7] sm:$0x40] %vm3_vm0, %v1209_v60   ;;  %1817 = vst.msk [vmem:[%s4051_s1 + $0x1f6] sm:$0x80] %vm3_vm0, %v1209_v60  }
 0x159   :  { %1801 = vst.msk [vmem:[%s4051_s1 + $0x1d] sm:$0x1] %vm3_vm0, %v1188_v61   ;;  %1802 = vst.msk [vmem:[%s4051_s1 + $0x3c] sm:$0x2] %vm3_vm0, %v1188_v61  }
 0x15a   :  { %1803 = vst.msk [vmem:[%s4051_s1 + $0x5b] sm:$0x4] %vm3_vm0, %v1188_v61   ;;  %1804 = vst.msk [vmem:[%s4051_s1 + $0x7a] sm:$0x8] %vm3_vm0, %v1188_v61  }
 0x15b   :  { %1805 = vst.msk [vmem:[%s4051_s1 + $0x99] sm:$0x10] %vm3_vm0, %v1188_v61   ;;  %1806 = vst.msk [vmem:[%s4051_s1 + $0xb8] sm:$0x20] %vm3_vm0, %v1188_v61  }
 0x15c   :  { %1807 = vst.msk [vmem:[%s4051_s1 + $0xd7] sm:$0x40] %vm3_vm0, %v1188_v61   ;;  %1808 = vst.msk [vmem:[%s4051_s1 + $0xf6] sm:$0x80] %vm3_vm0, %v1188_v61  }
 0x15d   :  { %1827 = vst.msk [vmem:[%s4051_s1 + $0x11e] sm:$0x1] %vm3_vm0, %v1250_v62   ;;  %1828 = vst.msk [vmem:[%s4051_s1 + $0x13d] sm:$0x2] %vm3_vm0, %v1250_v62  }
 0x15e   :  { %1829 = vst.msk [vmem:[%s4051_s1 + $0x15c] sm:$0x4] %vm3_vm0, %v1250_v62   ;;  %1830 = vst.msk [vmem:[%s4051_s1 + $0x17b] sm:$0x8] %vm3_vm0, %v1250_v62  }
 0x15f   :  { %1831 = vst.msk [vmem:[%s4051_s1 + $0x19a] sm:$0x10] %vm3_vm0, %v1250_v62   ;;  %1832 = vst.msk [vmem:[%s4051_s1 + $0x1b9] sm:$0x20] %vm3_vm0, %v1250_v62  }
 0x160   :  { %1833 = vst.msk [vmem:[%s4051_s1 + $0x1d8] sm:$0x40] %vm3_vm0, %v1250_v62   ;;  %1834 = vst.msk [vmem:[%s4051_s1 + $0x1f7] sm:$0x80] %vm3_vm0, %v1250_v62  }
 0x161   :  { %1818 = vst.msk [vmem:[%s4051_s1 + $0x1e] sm:$0x1] %vm3_vm0, %v1229_v63   ;;  %1819 = vst.msk [vmem:[%s4051_s1 + $0x3d] sm:$0x2] %vm3_vm0, %v1229_v63  }
 0x162   :  { %1820 = vst.msk [vmem:[%s4051_s1 + $0x5c] sm:$0x4] %vm3_vm0, %v1229_v63   ;;  %1821 = vst.msk [vmem:[%s4051_s1 + $0x7b] sm:$0x8] %vm3_vm0, %v1229_v63  }
 0x163   :  { %1822 = vst.msk [vmem:[%s4051_s1 + $0x9a] sm:$0x10] %vm3_vm0, %v1229_v63   ;;  %1823 = vst.msk [vmem:[%s4051_s1 + $0xb9] sm:$0x20] %vm3_vm0, %v1229_v63  }
 0x164   :  { %1824 = vst.msk [vmem:[%s4051_s1 + $0xd8] sm:$0x40] %vm3_vm0, %v1229_v63   ;;  %1825 = vst.msk [vmem:[%s4051_s1 + $0xf7] sm:$0x80] %vm3_vm0, %v1229_v63  }
 0x165   :  { %1844 = vst.msk [vmem:[%s4051_s1 + $0x11f] sm:$0x1] %vm3_vm0, %v1291_v0   ;;  %1845 = vst.msk [vmem:[%s4051_s1 + $0x13e] sm:$0x2] %vm3_vm0, %v1291_v0  }
 0x166   :  { %1846 = vst.msk [vmem:[%s4051_s1 + $0x15d] sm:$0x4] %vm3_vm0, %v1291_v0   ;;  %1847 = vst.msk [vmem:[%s4051_s1 + $0x17c] sm:$0x8] %vm3_vm0, %v1291_v0  }
 0x167   :  { %1848 = vst.msk [vmem:[%s4051_s1 + $0x19b] sm:$0x10] %vm3_vm0, %v1291_v0   ;;  %1849 = vst.msk [vmem:[%s4051_s1 + $0x1ba] sm:$0x20] %vm3_vm0, %v1291_v0  }
 0x168   :  { %1850 = vst.msk [vmem:[%s4051_s1 + $0x1d9] sm:$0x40] %vm3_vm0, %v1291_v0   ;;  %1851 = vst.msk [vmem:[%s4051_s1 + $0x1f8] sm:$0x80] %vm3_vm0, %v1291_v0  }
 0x169   :  { %1835 = vst.msk [vmem:[%s4051_s1 + $0x1f] sm:$0x1] %vm3_vm0, %v1270_v1   ;;  %1836 = vst.msk [vmem:[%s4051_s1 + $0x3e] sm:$0x2] %vm3_vm0, %v1270_v1  }
 0x16a   :  { %1837 = vst.msk [vmem:[%s4051_s1 + $0x5d] sm:$0x4] %vm3_vm0, %v1270_v1   ;;  %1838 = vst.msk [vmem:[%s4051_s1 + $0x7c] sm:$0x8] %vm3_vm0, %v1270_v1  }
 0x16b   :  { %1839 = vst.msk [vmem:[%s4051_s1 + $0x9b] sm:$0x10] %vm3_vm0, %v1270_v1   ;;  %1840 = vst.msk [vmem:[%s4051_s1 + $0xba] sm:$0x20] %vm3_vm0, %v1270_v1  }
 0x16c   :  { %1841 = vst.msk [vmem:[%s4051_s1 + $0xd9] sm:$0x40] %vm3_vm0, %v1270_v1   ;;  %1842 = vst.msk [vmem:[%s4051_s1 + $0xf8] sm:$0x80] %vm3_vm0, %v1270_v1  }

// kernel: word_char_encoding_forward.1
= control target key start
LH: loop header
LB: loop body
LE: loop exit
PB: predicated region body
PF: predicated region fallthrough
CT: control target
= control target key end

     0   :  { %v4758_v0 = vmov 0   ;;  %vm596_vm0 = vcmask 261120   ;;  %vm2966_vm1 = vcmask 130048   ;;  %s6906_s1 = inlined_call_operand.vmem [shape: bf16[32,128], index: 1, kind: input, shape index: {}]   ;;  %s6907_s0 = inlined_call_operand.vmem [shape: bf16[512,128], index: 0, kind: input, shape index: {}]   ;;  %s6908_s4 = inlined_call_operand.vmem [shape: bf16[512,32], index: 4, kind: input, shape index: {}]   ;;  %s6909_s3 = inlined_call_operand.vmem [shape: bf16[512,512], index: 3, kind: input, shape index: {}]   ;;  %s6910_s5 = inlined_call_operand.vmem [shape: f32[512,1], index: 5, kind: input, shape index: {}]   ;;  %s6911_s6 = inlined_call_operand.vmem [shape: bf16[16,512], index: 6, kind: input, shape index: {}]   ;;  %s6912_s7 = inlined_call_operand.vmem [shape: f32[512,16], index: 7, kind: input, shape index: {}]   ;;  %s6913_s2 = inlined_call_operand.vmem [shape: f32[16,128], index: 2, kind: input, shape index: {}]   ;;  %s6914_s8 = inlined_call_operand.vmem [shape: f32[32,128], index: 8, kind: output, shape index: {}]  }
   0x1   :  { %1814 = vmatprep.subr.bf16.mxu1 %v4758_v0  ;;  %v4360_v1 = vld [vmem:[%s6906_s1] sm:$0xff]   ;;  %4358 = vset.pattern.permute.xlu0 %v4758_v0  ;;  %v4362_v3 = vld [vmem:[%s6906_s1 + $0x8] sm:$0xff]   ;;  %v358_v6 = vld [vmem:[%s6907_s0 + $0x10] sm:$0xff]  }
   0x2   :  { %v354_v2 = vld [vmem:[%s6907_s0] sm:$0xff]   ;;  %4359 = vset.pattern.permute.xlu1 %v4758_v0  ;;  %4183 = vmatprep.subr.bf16.mxu0 %v4360_v1  ;;  %v356_v4 = vld [vmem:[%s6907_s0 + $0x8] sm:$0xff]   ;;  %v4368_v8 = vld [vmem:[%s6908_s4 + $0x10] sm:$0xff]  }
   0x3   :  { %4184 = vmatpush3.bf16.msra.mxu0 %v4360_v1  ;;  %v4364_v5 = vld [vmem:[%s6908_s4] sm:$0xff]   ;;  %1815 = vmatpush1.bf16.msra.mxu1 %v354_v2  ;;  %v4365_v7 = vld [vmem:[%s6908_s4 + $0x8] sm:$0xff]   ;;  %v360_v9 = vld [vmem:[%s6907_s0 + $0x18] sm:$0xff]  }
   0x4   :  { %4185 = vmatprep.subr.bf16.mxu0 %v4362_v3  ;;  %1816 = vmatprep.subr.bf16.mxu1 %v4758_v0  ;;  %v362_v10 = vld [vmem:[%s6907_s0 + $0x20] sm:$0xff]   ;;  %v4369_v11 = vld [vmem:[%s6908_s4 + $0x18] sm:$0xff]   ;;  %v364_v13 = vld [vmem:[%s6907_s0 + $0x28] sm:$0xff]  }
   0x5   :  { %4187 = vmatprep.mubr.msk.bf16.mxu0 %vm596_vm0, %v4364_v5  ;;  %v4372_v12 = vld [vmem:[%s6908_s4 + $0x20] sm:$0xff]   ;;  %v366_v14 = vld [vmem:[%s6907_s0 + $0x30] sm:$0xff]   ;;  %v4373_v15 = vld [vmem:[%s6908_s4 + $0x28] sm:$0xff]  }
   0x6   :  { %v4394_v16 = vld [vmem:[%s6909_s3 + $0x4] ss:$16 sps:$4 sm:$0xff]   ;;  %v368_v18 = vld [vmem:[%s6907_s0 + $0x38] sm:$0xff]   ;;  %v388_v20 = vld [vmem:[%s6907_s0 + $0x88] sm:$0xff]  }
   0x7   :  { %4186 = vmatpush3.bf16.msra.mxu0 %v4362_v3  ;;  %1817 = vmatpush1.bf16.msra.mxu1 %v356_v4  ;;  %v4376_v17 = vld [vmem:[%s6908_s4 + $0x30] sm:$0xff]   ;;  %v386_v19 = vld [vmem:[%s6907_s0 + $0x80] sm:$0xff]   ;;  %v4377_v22 = vld [vmem:[%s6908_s4 + $0x38] sm:$0xff]  }
   0x8   :  { %2103 = vmatprep.subr.bf16.mxu0 %v4758_v0  ;;  %1818 = vmatprep.subr.bf16.mxu1 %v4758_v0  ;;  %v370_v21 = vld [vmem:[%s6907_s0 + $0x40] sm:$0xff]   ;;  %v390_v24 = vld [vmem:[%s6907_s0 + $0x90] sm:$0xff]   ;;  %v372_v25 = vld [vmem:[%s6907_s0 + $0x48] sm:$0xff]  }
   0x9   :  { %1846 = vmatprep.mubr.bf16.mxu1 %v4394_v16  ;;  %v4380_v23 = vld [vmem:[%s6908_s4 + $0x40] sm:$0xff]   ;;  %v392_v26 = vld [vmem:[%s6907_s0 + $0x98] sm:$0xff]   ;;  %v374_v27 = vld [vmem:[%s6907_s0 + $0x50] sm:$0xff]  }
   0xa   :  { %4188 = vmatmul.mubr.msk.bf16.vlgmr.msra.gmra.mrb[0].mxu0 %vm596_vm0, %v4365_v7  ;;  %v4381_v28 = vld [vmem:[%s6908_s4 + $0x48] sm:$0xff]   ;;  %v4384_v29 = vld [vmem:[%s6908_s4 + $0x50] sm:$0xff]   ;;  %v394_v30 = vld [vmem:[%s6907_s0 + $0xa0] sm:$0xff]  }
   0xb   :  { %4191 = vmatprep.mubr.msk.bf16.mxu0 %vm596_vm0, %v4368_v8  ;;  %1819 = vmatpush1.bf16.msra.mxu1 %v358_v6  ;;  %v376_v31 = vld [vmem:[%s6907_s0 + $0x58] sm:$0xff]   ;;  %v396_v32 = vld [vmem:[%s6907_s0 + $0xa8] sm:$0xff]   ;;  %v378_v33 = vld [vmem:[%s6907_s0 + $0x60] sm:$0xff]  }
   0xc   :  { %1820 = vmatprep.subr.bf16.mxu1 %v4758_v0  ;;  %2104 = vmatpush1.bf16.msra.mxu0 %v386_v19  ;;  %v4385_v34 = vld [vmem:[%s6908_s4 + $0x58] sm:$0xff]   ;;  %v4388_v35 = vld [vmem:[%s6908_s4 + $0x60] sm:$0xff]   ;;  %v398_v36 = vld [vmem:[%s6907_s0 + $0xb0] sm:$0xff]  }
   0xd   :  { %2105 = vmatprep.subr.bf16.mxu0 %v4758_v0  ;;  %v380_v37 = vld [vmem:[%s6907_s0 + $0x68] sm:$0xff]   ;;  %v400_v38 = vld [vmem:[%s6907_s0 + $0xb8] sm:$0xff]   ;;  %v382_v39 = vld [vmem:[%s6907_s0 + $0x70] sm:$0xff]  }
   0xe   :  { %v4389_v40 = vld [vmem:[%s6908_s4 + $0x68] sm:$0xff]   ;;  %v4395_v41 = vld [vmem:[%s6908_s4 + $0x70] sm:$0xff]   ;;  %v402_v42 = vld [vmem:[%s6907_s0 + $0xc0] sm:$0xff]  }
   0xf   :  { %1821 = vmatpush1.bf16.msra.mxu1 %v360_v9  ;;  %v384_v43 = vld [vmem:[%s6907_s0 + $0x78] sm:$0xff]   ;;  %v4392_v44 = vld [vmem:[%s6909_s3] ss:$16 sps:$4 sm:$0xff]   ;;  %v404_v45 = vld [vmem:[%s6907_s0 + $0xc8] sm:$0xff]  }
  0x10   :  { %1822 = vmatprep.subr.bf16.mxu1 %v4758_v0  ;;  %2106 = vmatpush1.bf16.msra.mxu0 %v388_v20  ;;  %v4396_v46 = vld [vmem:[%s6908_s4 + $0x78] sm:$0xff]   ;;  %v4399_v47 = vld [vmem:[%s6908_s4 + $0x80] sm:$0xff]   ;;  %v406_v49 = vld [vmem:[%s6907_s0 + $0xd0] sm:$0xff]  }
  0x11   :  { %2107 = vmatprep.subr.bf16.mxu0 %v4758_v0  ;;  %v4397_v48 = vld [vmem:[%s6909_s3 + $0x24] ss:$16 sps:$4 sm:$0xff]   ;;  %v4400_v50 = vld [vmem:[%s6909_s3 + $0x20] ss:$16 sps:$4 sm:$0xff]   ;;  %v408_v51 = vld [vmem:[%s6907_s0 + $0xd8] sm:$0xff]  }
  0x12   :  { %4192 = vmatmul.mubr.msk.bf16.gmra.mrb[4].mxu0 %vm596_vm0, %v4369_v11  ;;  %v4401_v52 = vld [vmem:[%s6908_s4 + $0x88] sm:$0xff]   ;;  %v4406_v53 = vld [vmem:[%s6908_s4 + $0x90] sm:$0xff]   ;;  %v410_v55 = vld [vmem:[%s6907_s0 + $0xe0] sm:$0xff]  }
  0x13   :  { %4195 = vmatprep.mubr.msk.bf16.mxu0 %vm596_vm0, %v4372_v12  ;;  %1823 = vmatpush1.bf16.msra.mxu1 %v362_v10  ;;  %v4404_v54 = vld [vmem:[%s6909_s3 + $0x44] ss:$16 sps:$4 sm:$0xff]   ;;  %v4407_v56 = vld [vmem:[%s6909_s3 + $0x40] ss:$16 sps:$4 sm:$0xff]   ;;  %v412_v57 = vld [vmem:[%s6907_s0 + $0xe8] sm:$0xff]  }
  0x14   :  { %1824 = vmatprep.subr.bf16.mxu1 %v4758_v0  ;;  %2108 = vmatpush1.bf16.msra.mxu0 %v390_v24  ;;  %v4408_v58 = vld [vmem:[%s6908_s4 + $0x98] sm:$0xff]   ;;  %v4413_v59 = vld [vmem:[%s6908_s4 + $0xa0] sm:$0xff]   ;;  %v414_v61 = vld [vmem:[%s6907_s0 + $0xf0] sm:$0xff]  }
  0x15   :  { %2109 = vmatprep.subr.bf16.mxu0 %v4758_v0  ;;  %v4411_v60 = vld [vmem:[%s6909_s3 + $0x64] ss:$16 sps:$4 sm:$0xff]   ;;  %v4415_v62 = vld [vmem:[%s6908_s4 + $0xa8] sm:$0xff]   ;;  %v416_v63 = vld [vmem:[%s6907_s0 + $0xf8] sm:$0xff]  }
  0x16   :  { %v4414_v1 = vld [vmem:[%s6909_s3 + $0x60] ss:$16 sps:$4 sm:$0xff]   ;;  %v4418_v3 = vld [vmem:[%s6909_s3 + $0x84] ss:$16 sps:$4 sm:$0xff]   ;;  %v4422_v4 = vld [vmem:[%s6908_s4 + $0xb8] sm:$0xff]  }
  0x17   :  { %1825 = vmatpush1.bf16.msra.mxu1 %v364_v13  ;;  %v4420_v2 = vld [vmem:[%s6908_s4 + $0xb0] sm:$0xff]   ;;  %v238_v5 = vld [vmem:[%s6910_s5 + $0x80] sm:$0xff]  ;;  %v239_v8 = vld [vmem:[%s6910_s5 + $0x88] sm:$0xff] }
  0x18   :  { %1826 = vmatprep.subr.bf16.mxu1 %v4758_v0  ;;  %2110 = vmatpush1.bf16.msra.mxu0 %v392_v26  ;;  %v4421_v6 = vld [vmem:[%s6909_s3 + $0x80] ss:$16 sps:$4 sm:$0xff]   ;;  %v4425_v9 = vld [vmem:[%s6909_s3 + $0xa4] ss:$16 sps:$4 sm:$0xff]   ;;  %v223_v10 = vld [vmem:[%s6910_s5 + $0x8] sm:$0xff] }
  0x19   :  { %2111 = vmatprep.subr.bf16.mxu0 %v4758_v0  ;;  %2474 = vperm.xlu0 %4358, %v238_v5   ;;  %v222_v7 = vld [vmem:[%s6910_s5] sm:$0xff]  ;;  %v240_v11 = vld [vmem:[%s6910_s5 + $0x90] sm:$0xff]  ;;  %v4429_v12 = vld [vmem:[%s6908_s4 + $0xc8] sm:$0xff]  }
  0x1a   :  { %4196 = vmatmul.mubr.msk.bf16.gmra.mrb[8].mxu0 %vm596_vm0, %v4373_v15  ;;  %2394 = vperm.xlu1 %4359, %v222_v7   ;;  %v4428_v13 = vld [vmem:[%s6909_s3 + $0xa0] ss:$16 sps:$4 sm:$0xff]   ;;  %v241_v15 = vld [vmem:[%s6910_s5 + $0x98] sm:$0xff]  ;;  %v227_v26 = vld [vmem:[%s6910_s5 + $0x28] sm:$0xff] }
  0x1b   :  { %4199 = vmatprep.mubr.msk.bf16.mxu0 %vm596_vm0, %v4376_v17  ;;  %1827 = vmatpush1.bf16.msra.mxu1 %v366_v14  ;;  %v4434_v14 = vld [vmem:[%s6908_s4 + $0xd0] sm:$0xff]   ;;  %v242_v19 = vld [vmem:[%s6910_s5 + $0xa0] sm:$0xff]  ;;  %v4436_v20 = vld [vmem:[%s6908_s4 + $0xd8] sm:$0xff]  }
  0x1c   :  { %1828 = vmatprep.subr.bf16.mxu1 %v4758_v0  ;;  %2112 = vmatpush1.bf16.msra.mxu0 %v394_v30  ;;  %v224_v16 = vld [vmem:[%s6910_s5 + $0x10] sm:$0xff]  ;;  %v226_v24 = vld [vmem:[%s6910_s5 + $0x20] sm:$0xff] }
  0x1d   :  { %2113 = vmatprep.subr.bf16.mxu0 %v4758_v0  ;;  %2479 = vperm.xlu0 %4358, %v239_v8   ;;  %v4432_v17 = vld [vmem:[%s6909_s3 + $0xc4] ss:$16 sps:$4 sm:$0xff]   ;;  %v4442_v30 = vld [vmem:[%s6909_s3 + $0xe0] ss:$16 sps:$4 sm:$0xff]   ;;  %v271_v8 = vld [vmem:[%s6910_s5 + $0x188] sm:$0xff] }
  0x1e   :  { %2399 = vperm.xlu1 %4359, %v223_v10   ;;  %v4473_v5 = vld [vmem:[%s6909_s3 + $0x180] ss:$16 sps:$4 sm:$0xff]   ;;  %v4482_v10 = vld [vmem:[%s6909_s3 + $0x88] ss:$16 sps:$4 sm:$0xff]  }
  0x1f   :  { %1829 = vmatpush1.bf16.msra.mxu1 %v368_v18  ;;  %v225_v18 = vld [vmem:[%s6910_s5 + $0x18] sm:$0xff]  ;;  %v270_v7 = vld [vmem:[%s6910_s5 + $0x180] sm:$0xff] }
  0x20   :  { %1830 = vmatprep.subr.bf16.mxu1 %v4758_v0  ;;  %2114 = vmatpush1.bf16.msra.mxu0 %v396_v32  ;;  %v228_v32 = vld [vmem:[%s6910_s5 + $0x30] sm:$0xff] }
  0x21   :  { %2115 = vmatprep.subr.bf16.mxu0 %v4758_v0  ;;  %2484 = vperm.xlu0 %4358, %v240_v11   ;;  %v4486_v11 = vld [vmem:[%s6909_s3 + $0xac] ss:$16 sps:$4 sm:$0xff]  }
  0x22   :  { %4200 = vmatmul.mubr.msk.bf16.gmra.mrb[12].mxu0 %vm596_vm0, %v4377_v22  ;;  %2489 = vperm.xlu1 %4359, %v241_v15   ;;  %v4441_v22 = vld [vmem:[%s6908_s4 + $0xe0] sm:$0xff]   ;;  %v272_v15 = vld [vmem:[%s6910_s5 + $0x190] sm:$0xff] }
  0x23   :  { %4203 = vmatprep.mubr.msk.bf16.mxu0 %vm596_vm0, %v4380_v23  ;;  %1831 = vmatpush1.bf16.msra.mxu1 %v370_v21  ;;  %v4435_v21 = vld [vmem:[%s6909_s3 + $0xc0] ss:$16 sps:$4 sm:$0xff]   ;;  %v243_v23 = vld [vmem:[%s6910_s5 + $0xa8] sm:$0xff] }
  0x24   :  { %1832 = vmatprep.subr.bf16.mxu1 %v4758_v0  ;;  %2116 = vmatpush1.bf16.msra.mxu0 %v398_v36  ;;  %v247_v36 = vld [vmem:[%s6910_s5 + $0xc8] sm:$0xff] }
  0x25   :  { %2117 = vmatprep.subr.bf16.mxu0 %v4758_v0  ;;  %2404 = vperm.xlu0 %4358, %v224_v16   ;;  %v273_v16 = vld [vmem:[%s6910_s5 + $0x198] sm:$0xff] }
  0x26   :  { %2409 = vperm.xlu1 %4359, %v225_v18   ;;  %v4488_v18 = vld [vmem:[%s6909_s3 + $0xa8] ss:$16 sps:$4 sm:$0xff]  }
  0x27   :  { %1833 = vmatpush1.bf16.msra.mxu1 %v372_v25  ;;  %v4439_v25 = vld [vmem:[%s6909_s3 + $0xe4] ss:$16 sps:$4 sm:$0xff]  }
  0x28   :  { %1834 = vmatprep.subr.bf16.mxu1 %v4758_v0  ;;  %2118 = vmatpush1.bf16.msra.mxu0 %v400_v38  ;;  %v4449_v38 = vld [vmem:[%s6909_s3 + $0x100] ss:$16 sps:$4 sm:$0xff]  }
  0x29   :  { %2119 = vmatprep.subr.bf16.mxu0 %v4758_v0  ;;  %2494 = vperm.xlu0 %4358, %v242_v19   ;;  %v4492_v19 = vld [vmem:[%s6909_s3 + $0xcc] ss:$16 sps:$4 sm:$0xff]  }
  0x2a   :  { %4204 = vmatmul.mubr.msk.bf16.gmra.mrb[16].mxu0 %vm596_vm0, %v4381_v28  ;;  %2499 = vperm.xlu1 %4359, %v243_v23   ;;  %v245_v28 = vld [vmem:[%s6910_s5 + $0xb8] sm:$0xff]  ;;  %v274_v23 = vld [vmem:[%s6910_s5 + $0x1a0] sm:$0xff] }
  0x2b   :  { %4207 = vmatprep.mubr.msk.bf16.mxu0 %vm596_vm0, %v4384_v29  ;;  %1835 = vmatpush1.bf16.msra.mxu1 %v374_v27  ;;  %v244_v27 = vld [vmem:[%s6910_s5 + $0xb0] sm:$0xff]  ;;  %v4443_v29 = vld [vmem:[%s6908_s4 + $0xe8] sm:$0xff]  }
  0x2c   :  { %1836 = vmatprep.subr.bf16.mxu1 %v4758_v0  ;;  %2120 = vmatpush1.bf16.msra.mxu0 %v402_v42  ;;  %v231_v42 = vld [vmem:[%s6910_s5 + $0x48] sm:$0xff] }
  0x2d   :  { %2121 = vmatprep.subr.bf16.mxu0 %v4758_v0  ;;  %2414 = vperm.xlu0 %4358, %v226_v24   ;;  %v275_v24 = vld [vmem:[%s6910_s5 + $0x1a8] sm:$0xff] }
  0x2e   :  { %2419 = vperm.xlu1 %4359, %v227_v26   ;;  %v4494_v26 = vld [vmem:[%s6909_s3 + $0xc8] ss:$16 sps:$4 sm:$0xff]  }
  0x2f   :  { %1837 = vmatpush1.bf16.msra.mxu1 %v376_v31  ;;  %v4448_v31 = vld [vmem:[%s6908_s4 + $0xf0] sm:$0xff]  }
  0x30   :  { %1838 = vmatprep.subr.bf16.mxu1 %v4758_v0  ;;  %2122 = vmatpush1.bf16.msra.mxu0 %v404_v45  ;;  %v4456_v45 = vld [vmem:[%s6909_s3 + $0x8] ss:$16 sps:$4 sm:$0xff]  }
  0x31   :  { %2123 = vmatprep.subr.bf16.mxu0 %v4758_v0  ;;  %2504 = vperm.xlu0 %4358, %v244_v27   ;;  %v4498_v27 = vld [vmem:[%s6909_s3 + $0xec] ss:$16 sps:$4 sm:$0xff]  }
  0x32   :  { %4208 = vmatmul.mubr.msk.bf16.gmra.mrb[20].mxu0 %vm596_vm0, %v4385_v34  ;;  %2509 = vperm.xlu1 %4359, %v245_v28   ;;  %v229_v34 = vld [vmem:[%s6910_s5 + $0x38] sm:$0xff]  ;;  %v258_v28 = vld [vmem:[%s6910_s5 + $0x120] sm:$0xff] }
  0x33   :  { %4211 = vmatprep.mubr.msk.bf16.mxu0 %vm596_vm0, %v4388_v35  ;;  %1839 = vmatpush1.bf16.msra.mxu1 %v378_v33  ;;  %v4446_v33 = vld [vmem:[%s6909_s3 + $0x104] ss:$16 sps:$4 sm:$0xff]  }
  0x34   :  { %1840 = vmatprep.subr.bf16.mxu1 %v4758_v0  ;;  %2124 = vmatpush1.bf16.msra.mxu0 %v406_v49  ;;  %v246_v35 = vld [vmem:[%s6910_s5 + $0xc0] sm:$0xff] }
  0x35   :  { %2125 = vmatprep.subr.bf16.mxu0 %v4758_v0  ;;  %2424 = vperm.xlu0 %4358, %v228_v32   ;;  %v4459_v49 = vld [vmem:[%s6909_s3 + $0x144] ss:$16 sps:$4 sm:$0xff]   ;;  %v277_v32 = vld [vmem:[%s6910_s5 + $0x1b8] sm:$0xff] }
  0x36   :  { %2429 = vperm.xlu1 %4359, %v229_v34   ;;  %v4500_v34 = vld [vmem:[%s6909_s3 + $0xe8] ss:$16 sps:$4 sm:$0xff]  }
  0x37   :  { %1841 = vmatpush1.bf16.msra.mxu1 %v380_v37  ;;  %v4450_v37 = vld [vmem:[%s6908_s4 + $0xf8] sm:$0xff]  }
  0x38   :  { %1842 = vmatprep.subr.bf16.mxu1 %v4758_v0  ;;  %2126 = vmatpush1.bf16.msra.mxu0 %v408_v51  ;;  %v250_v51 = vld [vmem:[%s6910_s5 + $0xe0] sm:$0xff] }
  0x39   :  { %2127 = vmatprep.subr.bf16.mxu0 %v4758_v0  ;;  %2514 = vperm.xlu0 %4358, %v246_v35   ;;  %v4504_v35 = vld [vmem:[%s6909_s3 + $0x10c] ss:$16 sps:$4 sm:$0xff]  }
  0x3a   :  { %4212 = vmatmul.mubr.msk.bf16.gmra.mrb[24].mxu0 %vm596_vm0, %v4389_v40  ;;  %v230_v40 = vld [vmem:[%s6910_s5 + $0x40] sm:$0xff]  ;;  %2519 = vperm.xlu1 %4359, %v247_v36   ;;  %v260_v36 = vld [vmem:[%s6910_s5 + $0x130] sm:$0xff] }
  0x3b   :  { %4215 = vmatprep.mubr.msk.bf16.mxu0 %vm596_vm0, %v4395_v41  ;;  %1843 = vmatpush1.bf16.msra.mxu1 %v382_v39  ;;  %v4458_v39 = vld [vmem:[%s6909_s3 + $0xc] ss:$16 sps:$4 sm:$0xff]   ;;  %v4453_v41 = vld [vmem:[%s6909_s3 + $0x124] ss:$16 sps:$4 sm:$0xff]  }
  0x3c   :  { %1844 = vmatprep.subr.bf16.mxu1 %v4758_v0  ;;  %2128 = vmatpush1.bf16.msra.mxu0 %v410_v55  ;;  %v4468_v55 = vld [vmem:[%s6909_s3 + $0x4c] ss:$16 sps:$4 sm:$0xff]  }
  0x3d   :  { %2129 = vmatprep.subr.bf16.mxu0 %v4758_v0  ;;  %2434 = vperm.xlu0 %4358, %v230_v40   ;;  %v279_v40 = vld [vmem:[%s6910_s5 + $0x1c8] sm:$0xff] }
  0x3e   :  { %2439 = vperm.xlu1 %4359, %v231_v42   ;;  %v4506_v42 = vld [vmem:[%s6909_s3 + $0x108] ss:$16 sps:$4 sm:$0xff]  }
  0x3f   :  { %1845 = vmatpush1.bf16.msra.mxu1 %v384_v43  ;;  %v248_v43 = vld [vmem:[%s6910_s5 + $0xd0] sm:$0xff] }
  0x40   :  { %2130 = vmatpush1.bf16.msra.mxu0 %v412_v57  ;;  %v4465_v57 = vld [vmem:[%s6909_s3 + $0x164] ss:$16 sps:$4 sm:$0xff]  }
  0x41   :  { %2131 = vmatprep.subr.bf16.mxu0 %v4758_v0  ;;  %2524 = vperm.xlu0 %4358, %v248_v43   ;;  %v4510_v43 = vld [vmem:[%s6909_s3 + $0x12c] ss:$16 sps:$4 sm:$0xff]  }
  0x42   :  { %4216 = vmatmul.mubr.msk.bf16.gmra.mrb[28].mxu0 %vm596_vm0, %v4396_v46  ;;  %1847 = vmatmul.mubr.bf16.vlgmr.msra.gmra.mrb[0].mxu1 %v4392_v44  ;;  %v249_v44 = vld [vmem:[%s6910_s5 + $0xd8] sm:$0xff]  ;;  %v4455_v46 = vld [vmem:[%s6909_s3 + $0x120] ss:$16 sps:$4 sm:$0xff]  }
  0x43   :  { %4219 = vmatprep.mubr.msk.bf16.mxu0 %vm596_vm0, %v4399_v47  ;;  %1854 = vmatprep.mubr.bf16.mxu1 %v4397_v48  ;;  %v4462_v47 = vld [vmem:[%s6909_s3 + $0x2c] ss:$16 sps:$4 sm:$0xff]   ;;  %v232_v48 = vld [vmem:[%s6910_s5 + $0x50] sm:$0xff] }
  0x44   :  { %2132 = vmatpush1.bf16.msra.mxu0 %v414_v61  ;;  %2529 = vperm.xlu1 %4359, %v249_v44   ;;  %v253_v61 = vld [vmem:[%s6910_s5 + $0xf8] sm:$0xff]  ;;  %v262_v44 = vld [vmem:[%s6910_s5 + $0x140] sm:$0xff] }
  0x45   :  { %2133 = vmatprep.subr.bf16.mxu0 %v4758_v0  ;;  %v4427_v0 = vld [vmem:[%s6908_s4 + $0xc0] sm:$0xff]   ;;  %2444 = vperm.xlu0 %4358, %v232_v48   ;;  %v281_v48 = vld [vmem:[%s6910_s5 + $0x1d8] sm:$0xff] }
  0x48   :  { %2134 = vmatpush1.bf16.msra.mxu0 %v416_v63  ;;  %v4474_v63 = vld [vmem:[%s6909_s3 + $0x6c] ss:$16 sps:$4 sm:$0xff]  }
  0x49   :  { %2534 = vperm.xlu0 %4358, %v250_v51   ;;  %v4516_v51 = vld [vmem:[%s6909_s3 + $0x14c] ss:$16 sps:$4 sm:$0xff]  }
  0x4a   :  { %4220 = vmatmul.mubr.msk.bf16.gmra.mrb[32].mxu0 %vm596_vm0, %v4401_v52  ;;  %1855 = vmatmul.mubr.bf16.gmra.mrb[4].mxu1 %v4400_v50  ;;  %v233_v50 = vld [vmem:[%s6910_s5 + $0x58] sm:$0xff]  ;;  %v251_v52 = vld [vmem:[%s6910_s5 + $0xe8] sm:$0xff] }
  0x4b   :  { %4223 = vmatprep.mubr.msk.bf16.mxu0 %vm596_vm0, %v4406_v53  ;;  %1862 = vmatprep.mubr.bf16.mxu1 %v4404_v54  ;;  %v4464_v53 = vld [vmem:[%s6909_s3 + $0x28] ss:$16 sps:$4 sm:$0xff]   ;;  %v4461_v54 = vld [vmem:[%s6909_s3 + $0x140] ss:$16 sps:$4 sm:$0xff]  }
  0x4c   :  { %2449 = vperm.xlu1 %4359, %v233_v50   ;;  %v4512_v50 = vld [vmem:[%s6909_s3 + $0x128] ss:$16 sps:$4 sm:$0xff]  }
  0x50   :  { %2539 = vperm.xlu1 %4359, %v251_v52   ;;  %v264_v52 = vld [vmem:[%s6910_s5 + $0x150] sm:$0xff] }
  0x52   :  { %4224 = vmatmul.mubr.msk.bf16.gmra.mrb[36].mxu0 %vm596_vm0, %v4408_v58  ;;  %1863 = vmatmul.mubr.bf16.gmra.mrb[8].mxu1 %v4407_v56  ;;  %v234_v56 = vld [vmem:[%s6910_s5 + $0x60] sm:$0xff]  ;;  %v235_v58 = vld [vmem:[%s6910_s5 + $0x68] sm:$0xff] }
  0x53   :  { %4227 = vmatprep.mubr.msk.bf16.mxu0 %vm596_vm0, %v4413_v59  ;;  %1870 = vmatprep.mubr.bf16.mxu1 %v4411_v60  ;;  %v252_v59 = vld [vmem:[%s6910_s5 + $0xf0] sm:$0xff]  ;;  %v4470_v60 = vld [vmem:[%s6909_s3 + $0x48] ss:$16 sps:$4 sm:$0xff]  }
  0x54   :  { %2454 = vperm.xlu0 %4358, %v234_v56   ;;  %2459 = vperm.xlu1 %4359, %v235_v58   ;;  %v283_v56 = vld [vmem:[%s6910_s5 + $0x1e8] sm:$0xff] }
  0x55   :  { %v4518_v58 = vld [vmem:[%s6909_s3 + $0x148] ss:$16 sps:$4 sm:$0xff]  }
  0x58   :  { %2544 = vperm.xlu0 %4358, %v252_v59   ;;  %2549 = vperm.xlu1 %4359, %v253_v61   ;;  %v4522_v59 = vld [vmem:[%s6909_s3 + $0x16c] ss:$16 sps:$4 sm:$0xff]  }
  0x59   :  { %v267_v61 = vld [vmem:[%s6910_s5 + $0x168] sm:$0xff] }
  0x5a   :  { %4228 = vmatmul.mubr.msk.bf16.gmra.mrb[40].mxu0 %vm596_vm0, %v4415_v62  ;;  %1871 = vmatmul.mubr.bf16.gmra.mrb[12].mxu1 %v4414_v1  ;;  %v4467_v62 = vld [vmem:[%s6909_s3 + $0x160] ss:$16 sps:$4 sm:$0xff]   ;;  %v4471_v1 = vld [vmem:[%s6909_s3 + $0x184] ss:$16 sps:$4 sm:$0xff]  }
  0x5b   :  { %4231 = vmatprep.mubr.msk.bf16.mxu0 %vm596_vm0, %v4420_v2  ;;  %1878 = vmatprep.mubr.bf16.mxu1 %v4418_v3  ;;  %v236_v2 = vld [vmem:[%s6910_s5 + $0x70] sm:$0xff]  ;;  %v237_v3 = vld [vmem:[%s6910_s5 + $0x78] sm:$0xff] }
  0x5c   :  { %2464 = vperm.xlu0 %4358, %v236_v2   ;;  %2469 = vperm.xlu1 %4359, %v237_v3  }
  0x60   :  { %2634 = vperm.xlu0 %4358, %v270_v7   ;;  %2639 = vperm.xlu1 %4359, %v271_v8   ;;  %v268_v7 = vld [vmem:[%s6910_s5 + $0x170] sm:$0xff]  ;;  %v269_v8 = vld [vmem:[%s6910_s5 + $0x178] sm:$0xff] }
  0x62   :  { %4232 = vmatmul.mubr.msk.bf16.gmra.mrb[44].mxu0 %vm596_vm0, %v4422_v4  ;;  %1879 = vmatmul.mubr.bf16.gmra.mrb[16].mxu1 %v4421_v6  ;;  %v4476_v4 = vld [vmem:[%s6909_s3 + $0x68] ss:$16 sps:$4 sm:$0xff]   ;;  %v4480_v6 = vld [vmem:[%s6909_s3 + $0x8c] ss:$16 sps:$4 sm:$0xff]  }
  0x63   :  { %4235 = vmatprep.mubr.msk.bf16.mxu0 %vm596_vm0, %v4427_v0  ;;  %1886 = vmatprep.mubr.bf16.mxu1 %v4425_v9  ;;  %v4477_v0 = vld [vmem:[%s6909_s3 + $0x1a4] ss:$16 sps:$4 sm:$0xff]   ;;  %v4479_v9 = vld [vmem:[%s6909_s3 + $0x1a0] ss:$16 sps:$4 sm:$0xff]  }
  0x6a   :  { %4236 = vmatmul.mubr.msk.bf16.gmra.mrb[48].mxu0 %vm596_vm0, %v4429_v12  ;;  %1887 = vmatmul.mubr.bf16.gmra.mrb[20].mxu1 %v4428_v13  ;;  %v254_v12 = vld [vmem:[%s6910_s5 + $0x100] sm:$0xff]  ;;  %v255_v13 = vld [vmem:[%s6910_s5 + $0x108] sm:$0xff] }
  0x6b   :  { %4239 = vmatprep.mubr.msk.bf16.mxu0 %vm596_vm0, %v4434_v14  ;;  %1894 = vmatprep.mubr.bf16.mxu1 %v4432_v17  ;;  %v4483_v14 = vld [vmem:[%s6909_s3 + $0x1c4] ss:$16 sps:$4 sm:$0xff]   ;;  %v4485_v17 = vld [vmem:[%s6909_s3 + $0x1c0] ss:$16 sps:$4 sm:$0xff]  }
  0x6c   :  { %2554 = vperm.xlu0 %4358, %v254_v12   ;;  %2559 = vperm.xlu1 %4359, %v255_v13   ;;  %v4530_v13 = vld [vmem:[%s6909_s3 + $0x188] ss:$16 sps:$4 sm:$0xff]  }
  0x70   :  { %2644 = vperm.xlu0 %4358, %v272_v15   ;;  %2649 = vperm.xlu1 %4359, %v273_v16   ;;  %v4527_v15 = vld [vmem:[%s6909_s3 + $0x2a0] ss:$16 sps:$4 sm:$0xff]   ;;  %v4534_v16 = vld [vmem:[%s6909_s3 + $0x1ac] ss:$16 sps:$4 sm:$0xff]  }
  0x72   :  { %4240 = vmatmul.mubr.msk.bf16.gmra.mrb[52].mxu0 %vm596_vm0, %v4436_v20  ;;  %1895 = vmatmul.mubr.bf16.gmra.mrb[24].mxu1 %v4435_v21  ;;  %v256_v20 = vld [vmem:[%s6910_s5 + $0x110] sm:$0xff]  ;;  %v257_v21 = vld [vmem:[%s6910_s5 + $0x118] sm:$0xff] }
  0x73   :  { %4243 = vmatprep.mubr.msk.bf16.mxu0 %vm596_vm0, %v4441_v22  ;;  %1902 = vmatprep.mubr.bf16.mxu1 %v4439_v25  ;;  %v4489_v22 = vld [vmem:[%s6909_s3 + $0x1e4] ss:$16 sps:$4 sm:$0xff]   ;;  %v4491_v25 = vld [vmem:[%s6909_s3 + $0x1e0] ss:$16 sps:$4 sm:$0xff]  }
  0x74   :  { %2564 = vperm.xlu0 %4358, %v256_v20   ;;  %2569 = vperm.xlu1 %4359, %v257_v21   ;;  %v4536_v21 = vld [vmem:[%s6909_s3 + $0x1a8] ss:$16 sps:$4 sm:$0xff]  }
  0x78   :  { %2654 = vperm.xlu0 %4358, %v274_v23   ;;  %2659 = vperm.xlu1 %4359, %v275_v24   ;;  %v4533_v23 = vld [vmem:[%s6909_s3 + $0x2c0] ss:$16 sps:$4 sm:$0xff]   ;;  %v4540_v24 = vld [vmem:[%s6909_s3 + $0x1cc] ss:$16 sps:$4 sm:$0xff]  }
  0x7a   :  { %4244 = vmatmul.mubr.msk.bf16.gmra.mrb[56].mxu0 %vm596_vm0, %v4443_v29  ;;  %1903 = vmatmul.mubr.bf16.gmra.mrb[28].mxu1 %v4442_v30  ;;  %v259_v29 = vld [vmem:[%s6910_s5 + $0x128] sm:$0xff]  ;;  %v4495_v30 = vld [vmem:[%s6909_s3 + $0x204] ss:$16 sps:$4 sm:$0xff]  }
  0x7b   :  { %4247 = vmatprep.mubr.msk.bf16.mxu0 %vm596_vm0, %v4448_v31  ;;  %1910 = vmatprep.mubr.bf16.mxu1 %v4446_v33  ;;  %v276_v31 = vld [vmem:[%s6910_s5 + $0x1b0] sm:$0xff] }
  0x7c   :  { %2574 = vperm.xlu0 %4358, %v258_v28   ;;  %2579 = vperm.xlu1 %4359, %v259_v29   ;;  %v4497_v33 = vld [vmem:[%s6909_s3 + $0x200] ss:$16 sps:$4 sm:$0xff]   ;;  %v4542_v29 = vld [vmem:[%s6909_s3 + $0x1c8] ss:$16 sps:$4 sm:$0xff]  }
  0x80   :  { %2664 = vperm.xlu0 %4358, %v276_v31   ;;  %2669 = vperm.xlu1 %4359, %v277_v32   ;;  %v4539_v31 = vld [vmem:[%s6909_s3 + $0x2e0] ss:$16 sps:$4 sm:$0xff]   ;;  %v4546_v32 = vld [vmem:[%s6909_s3 + $0x1ec] ss:$16 sps:$4 sm:$0xff]  }
  0x82   :  { %4248 = vmatmul.mubr.msk.bf16.gmra.mrb[60].mxu0 %vm596_vm0, %v4450_v37  ;;  %1911 = vmatmul.mubr.bf16.gmra.mrb[32].mxu1 %v4449_v38  ;;  %v261_v37 = vld [vmem:[%s6910_s5 + $0x138] sm:$0xff]  ;;  %v4501_v38 = vld [vmem:[%s6909_s3 + $0x224] ss:$16 sps:$4 sm:$0xff]  }
  0x83   :  { %2135 = vmatprep.mubr.bf16.mxu0 %v4458_v39  ;;  %1918 = vmatprep.mubr.bf16.mxu1 %v4453_v41  ;;  %v278_v39 = vld [vmem:[%s6910_s5 + $0x1c0] sm:$0xff] }
  0x84   :  { %2584 = vperm.xlu0 %4358, %v260_v36   ;;  %2589 = vperm.xlu1 %4359, %v261_v37   ;;  %v4503_v41 = vld [vmem:[%s6909_s3 + $0x220] ss:$16 sps:$4 sm:$0xff]   ;;  %v4548_v37 = vld [vmem:[%s6909_s3 + $0x1e8] ss:$16 sps:$4 sm:$0xff]  }
  0x88   :  { %2674 = vperm.xlu0 %4358, %v278_v39   ;;  %2679 = vperm.xlu1 %4359, %v279_v40   ;;  %v4545_v39 = vld [vmem:[%s6909_s3 + $0x300] ss:$16 sps:$4 sm:$0xff]   ;;  %v4552_v40 = vld [vmem:[%s6909_s3 + $0x20c] ss:$16 sps:$4 sm:$0xff]  }
  0x8a   :  { %2136 = vmatmul.mubr.bf16.vlgmr.msra.gmra.mrb[64].mxu0 %v4456_v45  ;;  %1919 = vmatmul.mubr.bf16.gmra.mrb[36].mxu1 %v4455_v46  ;;  %v263_v45 = vld [vmem:[%s6910_s5 + $0x148] sm:$0xff]  ;;  %v4507_v46 = vld [vmem:[%s6909_s3 + $0x244] ss:$16 sps:$4 sm:$0xff]  }
  0x8b   :  { %2143 = vmatprep.mubr.bf16.mxu0 %v4462_v47  ;;  %1926 = vmatprep.mubr.bf16.mxu1 %v4459_v49  ;;  %v280_v47 = vld [vmem:[%s6910_s5 + $0x1d0] sm:$0xff] }
  0x8c   :  { %2594 = vperm.xlu0 %4358, %v262_v44   ;;  %2599 = vperm.xlu1 %4359, %v263_v45   ;;  %v4509_v49 = vld [vmem:[%s6909_s3 + $0x240] ss:$16 sps:$4 sm:$0xff]   ;;  %v4554_v45 = vld [vmem:[%s6909_s3 + $0x208] ss:$16 sps:$4 sm:$0xff]  }
  0x90   :  { %2684 = vperm.xlu0 %4358, %v280_v47   ;;  %2689 = vperm.xlu1 %4359, %v281_v48   ;;  %v4551_v47 = vld [vmem:[%s6909_s3 + $0x320] ss:$16 sps:$4 sm:$0xff]   ;;  %v4558_v48 = vld [vmem:[%s6909_s3 + $0x22c] ss:$16 sps:$4 sm:$0xff]  }
  0x92   :  { %2144 = vmatmul.mubr.bf16.gmra.mrb[68].mxu0 %v4464_v53  ;;  %1927 = vmatmul.mubr.bf16.gmra.mrb[40].mxu1 %v4461_v54  ;;  %v265_v53 = vld [vmem:[%s6910_s5 + $0x158] sm:$0xff]  ;;  %v4513_v54 = vld [vmem:[%s6909_s3 + $0x264] ss:$16 sps:$4 sm:$0xff]  }
  0x93   :  { %2151 = vmatprep.mubr.bf16.mxu0 %v4468_v55  ;;  %1934 = vmatprep.mubr.bf16.mxu1 %v4465_v57  ;;  %v282_v55 = vld [vmem:[%s6910_s5 + $0x1e0] sm:$0xff] }
  0x94   :  { %2604 = vperm.xlu0 %4358, %v264_v52   ;;  %2609 = vperm.xlu1 %4359, %v265_v53   ;;  %v4515_v57 = vld [vmem:[%s6909_s3 + $0x260] ss:$16 sps:$4 sm:$0xff]   ;;  %v4560_v53 = vld [vmem:[%s6909_s3 + $0x228] ss:$16 sps:$4 sm:$0xff]  }
  0x98   :  { %2694 = vperm.xlu0 %4358, %v282_v55   ;;  %2699 = vperm.xlu1 %4359, %v283_v56   ;;  %v4557_v55 = vld [vmem:[%s6909_s3 + $0x340] ss:$16 sps:$4 sm:$0xff]   ;;  %v4564_v56 = vld [vmem:[%s6909_s3 + $0x24c] ss:$16 sps:$4 sm:$0xff]  }
  0x9a   :  { %2152 = vmatmul.mubr.bf16.gmra.mrb[72].mxu0 %v4470_v60  ;;  %1935 = vmatmul.mubr.bf16.gmra.mrb[44].mxu1 %v4467_v62  ;;  %v266_v60 = vld [vmem:[%s6910_s5 + $0x160] sm:$0xff] }
  0x9b   :  { %2159 = vmatprep.mubr.bf16.mxu0 %v4474_v63  ;;  %1942 = vmatprep.mubr.bf16.mxu1 %v4471_v1  ;;  %v4519_v62 = vld [vmem:[%s6909_s3 + $0x284] ss:$16 sps:$4 sm:$0xff]   ;;  %v285_v1 = vld [vmem:[%s6910_s5 + $0x1f8] sm:$0xff] }
  0x9c   :  { %2614 = vperm.xlu0 %4358, %v266_v60   ;;  %2619 = vperm.xlu1 %4359, %v267_v61   ;;  %v284_v63 = vld [vmem:[%s6910_s5 + $0x1f0] sm:$0xff] }
  0xa0   :  { %2704 = vperm.xlu0 %4358, %v284_v63   ;;  %2709 = vperm.xlu1 %4359, %v285_v1  }
  0xa2   :  { %2160 = vmatmul.mubr.bf16.gmra.mrb[76].mxu0 %v4476_v4  ;;  %1943 = vmatmul.mubr.bf16.gmra.mrb[48].mxu1 %v4473_v5  ;;  %v4521_v4 = vld [vmem:[%s6909_s3 + $0x280] ss:$16 sps:$4 sm:$0xff]   ;;  %v4524_v5 = vld [vmem:[%s6909_s3 + $0x168] ss:$16 sps:$4 sm:$0xff]  }
  0xa3   :  { %2167 = vmatprep.mubr.bf16.mxu0 %v4480_v6  ;;  %1950 = vmatprep.mubr.bf16.mxu1 %v4477_v0  ;;  %v4528_v0 = vld [vmem:[%s6909_s3 + $0x18c] ss:$16 sps:$4 sm:$0xff]  }
  0xa4   :  { %2624 = vperm.xlu0 %4358, %v268_v7   ;;  %2629 = vperm.xlu1 %4359, %v269_v8  }
  0xaa   :  { %2168 = vmatmul.mubr.bf16.gmra.mrb[80].mxu0 %v4482_v10  ;;  %1951 = vmatmul.mubr.bf16.gmra.mrb[52].mxu1 %v4479_v9  ;;  %v4525_v10 = vld [vmem:[%s6909_s3 + $0x2a4] ss:$16 sps:$4 sm:$0xff]  }
  0xab   :  { %2175 = vmatprep.mubr.bf16.mxu0 %v4486_v11  ;;  %1958 = vmatprep.mubr.bf16.mxu1 %v4483_v14 }
  0xb2   :  { %2176 = vmatmul.mubr.bf16.gmra.mrb[84].mxu0 %v4488_v18  ;;  %1959 = vmatmul.mubr.bf16.gmra.mrb[56].mxu1 %v4485_v17  ;;  %v4531_v18 = vld [vmem:[%s6909_s3 + $0x2c4] ss:$16 sps:$4 sm:$0xff]  }
  0xb3   :  { %2183 = vmatprep.mubr.bf16.mxu0 %v4492_v19  ;;  %1966 = vmatprep.mubr.bf16.mxu1 %v4489_v22 }
  0xba   :  { %2184 = vmatmul.mubr.bf16.gmra.mrb[88].mxu0 %v4494_v26  ;;  %1967 = vmatmul.mubr.bf16.gmra.mrb[60].mxu1 %v4491_v25  ;;  %v4537_v26 = vld [vmem:[%s6909_s3 + $0x2e4] ss:$16 sps:$4 sm:$0xff]  }
  0xbb   :  { %2191 = vmatprep.mubr.bf16.mxu0 %v4498_v27  ;;  %1974 = vmatprep.mubr.bf16.mxu1 %v4495_v30 }
  0xc2   :  { %2192 = vmatmul.mubr.bf16.gmra.mrb[92].mxu0 %v4500_v34  ;;  %1975 = vmatmul.mubr.bf16.gmra.mrb[64].mxu1 %v4497_v33  ;;  %v4543_v34 = vld [vmem:[%s6909_s3 + $0x304] ss:$16 sps:$4 sm:$0xff]  }
  0xc3   :  { %2199 = vmatprep.mubr.bf16.mxu0 %v4504_v35  ;;  %1982 = vmatprep.mubr.bf16.mxu1 %v4501_v38 }
  0xca   :  { %2200 = vmatmul.mubr.bf16.gmra.mrb[96].mxu0 %v4506_v42  ;;  %1983 = vmatmul.mubr.bf16.gmra.mrb[68].mxu1 %v4503_v41  ;;  %v4549_v42 = vld [vmem:[%s6909_s3 + $0x324] ss:$16 sps:$4 sm:$0xff]  }
  0xcb   :  { %2207 = vmatprep.mubr.bf16.mxu0 %v4510_v43  ;;  %1990 = vmatprep.mubr.bf16.mxu1 %v4507_v46 }
  0xd2   :  { %2208 = vmatmul.mubr.bf16.gmra.mrb[100].mxu0 %v4512_v50  ;;  %1991 = vmatmul.mubr.bf16.gmra.mrb[72].mxu1 %v4509_v49  ;;  %v4555_v50 = vld [vmem:[%s6909_s3 + $0x344] ss:$16 sps:$4 sm:$0xff]  }
  0xd3   :  { %2215 = vmatprep.mubr.bf16.mxu0 %v4516_v51  ;;  %1998 = vmatprep.mubr.bf16.mxu1 %v4513_v54 }
  0xda   :  { %2216 = vmatmul.mubr.bf16.gmra.mrb[104].mxu0 %v4518_v58  ;;  %1999 = vmatmul.mubr.bf16.gmra.mrb[76].mxu1 %v4515_v57  ;;  %v4561_v58 = vld [vmem:[%s6909_s3 + $0x364] ss:$16 sps:$4 sm:$0xff]  }
  0xdb   :  { %2223 = vmatprep.mubr.bf16.mxu0 %v4522_v59  ;;  %2006 = vmatprep.mubr.bf16.mxu1 %v4519_v62  ;;  %v4566_v62 = vld [vmem:[%s6909_s3 + $0x248] ss:$16 sps:$4 sm:$0xff]  }
  0xdd   :  { %v5446_v2 = vpop.f32.mrb[0].mxu0 }
  0xde   :  { %v5448_v3 = vpop.f32.mrb[1].mxu0 }
  0xdf   :  { %v5456_v6 = vpop.f32.mrb[2].mxu0 }
  0xe0   :  { %v5467_v9 = vpop.f32.mrb[3].mxu0 }
  0xe2   :  { %2224 = vmatmul.mubr.bf16.gmra.mrb[108].mxu0 %v4524_v5  ;;  %2007 = vmatmul.mubr.bf16.gmra.mrb[80].mxu1 %v4521_v4  ;;  %v4563_v5 = vld [vmem:[%s6909_s3 + $0x360] ss:$16 sps:$4 sm:$0xff]  }
  0xe3   :  { %2231 = vmatprep.mubr.bf16.mxu0 %v4528_v0  ;;  %2014 = vmatprep.mubr.bf16.mxu1 %v4525_v10  ;;  %v4570_v0 = vld [vmem:[%s6909_s3 + $0x26c] ss:$16 sps:$4 sm:$0xff]   ;;  %v4567_v10 = vld [vmem:[%s6909_s3 + $0x384] ss:$16 sps:$4 sm:$0xff]  }
  0xe5   :  { %v5472_v11 = vpop.f32.mrb[4].mxu0 }
  0xe6   :  { %v5474_v12 = vpop.f32.mrb[5].mxu0 }
  0xe7   :  { %v5479_v14 = vpop.f32.mrb[6].mxu0 }
  0xe8   :  { %v5487_v17 = vpop.f32.mrb[7].mxu0 }
  0xea   :  { %2232 = vmatmul.mubr.bf16.gmra.mrb[112].mxu0 %v4530_v13  ;;  %2015 = vmatmul.mubr.bf16.gmra.mrb[84].mxu1 %v4527_v15  ;;  %v5618_v15 = vpop.permute.xlu0 %2474 }
  0xeb   :  { %2239 = vmatprep.mubr.bf16.mxu0 %v4534_v16  ;;  %2022 = vmatprep.mubr.bf16.mxu1 %v4531_v18  ;;  %v5622_v18 = vpop.permute.xlu1 %2394 }
  0xed   :  { %v5492_v19 = vpop.f32.mrb[8].mxu0 }
  0xee   :  { %v5494_v20 = vpop.f32.mrb[9].mxu0 }
  0xef   :  { %v5499_v22 = vpop.f32.mrb[10].mxu0 }
  0xf0   :  { %v5507_v25 = vpop.f32.mrb[11].mxu0 }
  0xf2   :  { %2240 = vmatmul.mubr.bf16.gmra.mrb[116].mxu0 %v4536_v21  ;;  %2023 = vmatmul.mubr.bf16.gmra.mrb[88].mxu1 %v4533_v23 }
  0xf3   :  { %2247 = vmatprep.mubr.bf16.mxu0 %v4540_v24  ;;  %2030 = vmatprep.mubr.bf16.mxu1 %v4537_v26  ;;  %v4572_v24 = vld [vmem:[%s6909_s3 + $0x268] ss:$16 sps:$4 sm:$0xff]  }
  0xf5   :  { %v5512_v27 = vpop.f32.mrb[12].mxu0 }
  0xf6   :  { %v5514_v28 = vpop.f32.mrb[13].mxu0 }
  0xf7   :  { %v5519_v30 = vpop.f32.mrb[14].mxu0 }
  0xf8   :  { %v5527_v33 = vpop.f32.mrb[15].mxu0 }
  0xfa   :  { %2248 = vmatmul.mubr.bf16.gmra.mrb[120].mxu0 %v4542_v29  ;;  %2031 = vmatmul.mubr.bf16.gmra.mrb[92].mxu1 %v4539_v31  ;;  %v4569_v31 = vld [vmem:[%s6909_s3 + $0x380] ss:$16 sps:$4 sm:$0xff]  }
  0xfb   :  { %2255 = vmatprep.mubr.bf16.mxu0 %v4546_v32  ;;  %2038 = vmatprep.mubr.bf16.mxu1 %v4543_v34  ;;  %v4576_v32 = vld [vmem:[%s6909_s3 + $0x28c] ss:$16 sps:$4 sm:$0xff]  }
  0xfd   :  { %v5532_v35 = vpop.f32.mrb[16].mxu0 }
  0xfe   :  { %v5534_v36 = vpop.f32.mrb[17].mxu0 }
  0xff   :  { %v5539_v38 = vpop.f32.mrb[18].mxu0 }
 0x100   :  { %v5547_v41 = vpop.f32.mrb[19].mxu0 }
 0x102   :  { %2256 = vmatmul.mubr.bf16.gmra.mrb[124].mxu0 %v4548_v37  ;;  %2039 = vmatmul.mubr.bf16.gmra.mrb[96].mxu1 %v4545_v39  ;;  %v4573_v39 = vld [vmem:[%s6909_s3 + $0x3a4] ss:$16 sps:$4 sm:$0xff]  }
 0x103   :  { %2263 = vmatprep.mubr.bf16.mxu0 %v4552_v40  ;;  %2046 = vmatprep.mubr.bf16.mxu1 %v4549_v42  ;;  %v5648_v42 = vpop.permute.xlu0 %2479 }
 0x105   :  { %v5552_v43 = vpop.f32.mrb[20].mxu0 }
 0x106   :  { %v5554_v44 = vpop.f32.mrb[21].mxu0 }
 0x107   :  { %v5559_v46 = vpop.f32.mrb[22].mxu0 }
 0x108   :  { %v5567_v49 = vpop.f32.mrb[23].mxu0 }
 0x10a   :  { %2264 = vmatmul.mubr.bf16.gmra.mrb[128].mxu0 %v4554_v45  ;;  %2047 = vmatmul.mubr.bf16.gmra.mrb[100].mxu1 %v4551_v47  ;;  %v5652_v47 = vpop.permute.xlu1 %2399 }
 0x10b   :  { %2271 = vmatprep.mubr.bf16.mxu0 %v4558_v48  ;;  %2054 = vmatprep.mubr.bf16.mxu1 %v4555_v50 }
 0x10d   :  { %v5572_v51 = vpop.f32.mrb[24].mxu0 }
 0x10e   :  { %v5574_v52 = vpop.f32.mrb[25].mxu0 }
 0x10f   :  { %v5579_v54 = vpop.f32.mrb[26].mxu0 }
 0x110   :  { %v5587_v57 = vpop.f32.mrb[27].mxu0 }
 0x112   :  { %2272 = vmatmul.mubr.bf16.gmra.mrb[132].mxu0 %v4560_v53  ;;  %2055 = vmatmul.mubr.bf16.gmra.mrb[104].mxu1 %v4557_v55  ;;  %v4578_v53 = vld [vmem:[%s6909_s3 + $0x288] ss:$16 sps:$4 sm:$0xff]  }
 0x113   :  { %2279 = vmatprep.mubr.bf16.mxu0 %v4564_v56  ;;  %2062 = vmatprep.mubr.bf16.mxu1 %v4561_v58  ;;  %v4575_v58 = vld [vmem:[%s6909_s3 + $0x3a0] ss:$16 sps:$4 sm:$0xff]  }
 0x115   :  { %v5592_v59 = vpop.f32.mrb[28].mxu0  ;;  %v1848_v60 = vpop.f32.mrb[0].mxu1 }
 0x116   :  { %v5594_v61 = vpop.f32.mrb[29].mxu0  ;;  %v5600_v63 = vadd.f32 %v1848_v60, %v5448_v3  ;;  %v1850_v1 = vpop.f32.mrb[1].mxu1  ;;  %v4582_v60 = vld [vmem:[%s6909_s3 + $0x2ac] ss:$16 sps:$4 sm:$0xff]  }
 0x117   :  { %v5602_v4 = vpop.f32.mrb[30].mxu0  ;;  %v1851_v7 = vpop.f32.mrb[2].mxu1 }
 0x118   :  { %v5610_v8 = vpop.f32.mrb[31].mxu0  ;;  %v5616_v3 = vadd.f32 %v1851_v7, %v5467_v9  ;;  %v1853_v13 = vpop.f32.mrb[3].mxu1 }
 0x119   :  { %v5678_v7 = vpop.permute.xlu0 %2484  ;;  %v5682_v13 = vpop.permute.xlu1 %2489 }
 0x11a   :  { %2280 = vmatmul.mubr.bf16.gmra.mrb[136].mxu0 %v4566_v62  ;;  %2063 = vmatmul.mubr.bf16.gmra.mrb[108].mxu1 %v4563_v5  ;;  %v4579_v5 = vld [vmem:[%s6909_s3 + $0x3c4] ss:$16 sps:$4 sm:$0xff]  }
 0x11b   :  { %2287 = vmatprep.mubr.bf16.mxu0 %v4570_v0  ;;  %2070 = vmatprep.mubr.bf16.mxu1 %v4567_v10 }
 0x11d   :  { %v5620_v16 = vpop.f32.mrb[32].mxu0  ;;  %v1856_v21 = vpop.f32.mrb[4].mxu1 }
 0x11e   :  { %v5624_v23 = vpop.f32.mrb[33].mxu0  ;;  %v5630_v9 = vadd.f32 %v5446_v2, %v1856_v21  ;;  %v1858_v26 = vpop.f32.mrb[5].mxu1 }
 0x11f   :  { %v5632_v29 = vpop.f32.mrb[34].mxu0  ;;  %v1859_v34 = vpop.f32.mrb[6].mxu1  ;;  %v4584_v26 = vld [vmem:[%s6909_s3 + $0x2a8] ss:$16 sps:$4 sm:$0xff]  }
 0x120   :  { %v5640_v37 = vpop.f32.mrb[35].mxu0  ;;  %v5646_v2 = vadd.f32 %v5456_v6, %v1859_v34  ;;  %v1861_v40 = vpop.f32.mrb[7].mxu1  ;;  %v4581_v34 = vld [vmem:[%s6909_s3 + $0x3c0] ss:$16 sps:$4 sm:$0xff]  }
 0x122   :  { %2288 = vmatmul.mubr.bf16.gmra.mrb[140].mxu0 %v4572_v24  ;;  %2071 = vmatmul.mubr.bf16.gmra.mrb[112].mxu1 %v4569_v31 }
 0x123   :  { %2295 = vmatprep.mubr.bf16.mxu0 %v4576_v32  ;;  %2078 = vmatprep.mubr.bf16.mxu1 %v4573_v39  ;;  %v4588_v39 = vld [vmem:[%s6909_s3 + $0x2cc] ss:$16 sps:$4 sm:$0xff]  }
 0x125   :  { %v5650_v45 = vpop.f32.mrb[36].mxu0  ;;  %v1864_v48 = vpop.f32.mrb[8].mxu1 }
 0x126   :  { %v5654_v50 = vpop.f32.mrb[37].mxu0  ;;  %v5660_v6 = vadd.f32 %v1864_v48, %v5474_v12  ;;  %v1866_v55 = vpop.f32.mrb[9].mxu1 }
 0x127   :  { %v5662_v56 = vpop.f32.mrb[38].mxu0  ;;  %v1867_v62 = vpop.f32.mrb[10].mxu1 }
 0x128   :  { %6915 = vst [vmem:[#allocation2_spill] sm:$0xff] %v5662_v56  ;;  %v5670_v1 = vpop.f32.mrb[39].mxu0  ;;  %v5676_v12 = vadd.f32 %v1867_v62, %v5487_v17  ;;  %v1869_v0 = vpop.f32.mrb[11].mxu1  ;;  %v4605_v56 = vld [vmem:[%s6909_s3 + $0x368] ss:$16 sps:$4 sm:$0xff]  }
 0x129   :  { %v5712_v62 = vpop.permute.xlu1 %2409 }
 0x12a   :  { %2296 = vmatmul.mubr.bf16.gmra.mrb[144].mxu0 %v4578_v53  ;;  %2079 = vmatmul.mubr.bf16.gmra.mrb[116].mxu1 %v4575_v58  ;;  %v4585_v53 = vld [vmem:[%s6909_s3 + $0x3e4] ss:$16 sps:$4 sm:$0xff]   ;;  %v5708_v58 = vpop.permute.xlu0 %2404 }
 0x12b   :  { %2303 = vmatprep.mubr.bf16.mxu0 %v4582_v60  ;;  %2086 = vmatprep.mubr.bf16.mxu1 %v4579_v5 }
 0x12d   :  { %v5680_v10 = vpop.f32.mrb[40].mxu0  ;;  %v1872_v21 = vpop.f32.mrb[12].mxu1 }
 0x12e   :  { %6916 = vst [vmem:[#allocation3_spill] sm:$0xff] %v5680_v10  ;;  %v5684_v24 = vpop.f32.mrb[41].mxu0  ;;  %v5690_v17 = vadd.f32 %v5472_v11, %v1872_v21  ;;  %v1874_v31 = vpop.f32.mrb[13].mxu1  ;;  %v4590_v21 = vld [vmem:[%s6909_s3 + $0x2c8] ss:$16 sps:$4 sm:$0xff]  }
 0x12f   :  { %6917 = vst [vmem:[#allocation4_spill] sm:$0xff] %v5684_v24  ;;  %v5692_v32 = vpop.f32.mrb[42].mxu0  ;;  %v1875_v40 = vpop.f32.mrb[14].mxu1  ;;  %v4596_v10 = vld [vmem:[%s6909_s3 + $0x308] ss:$16 sps:$4 sm:$0xff]  }
 0x130   :  { %6918 = vst [vmem:[#allocation5_spill] sm:$0xff] %v5692_v32  ;;  %v5700_v48 = vpop.f32.mrb[43].mxu0  ;;  %v5706_v11 = vadd.f32 %v5479_v14, %v1875_v40  ;;  %v1877_v55 = vpop.f32.mrb[15].mxu1  ;;  %v4599_v24 = vld [vmem:[%s6909_s3 + $0x328] ss:$16 sps:$4 sm:$0xff]  }
 0x131   :  { %6919 = vst [vmem:[#allocation6_spill] sm:$0xff] %v5700_v48 }
 0x132   :  { %2304 = vmatmul.mubr.bf16.gmra.mrb[148].mxu0 %v4584_v26  ;;  %2087 = vmatmul.mubr.bf16.gmra.mrb[120].mxu1 %v4581_v34  ;;  %v4587_v34 = vld [vmem:[%s6909_s3 + $0x3e0] ss:$16 sps:$4 sm:$0xff]  }
 0x133   :  { %2311 = vmatprep.mubr.bf16.mxu0 %v4588_v39  ;;  %2094 = vmatprep.mubr.bf16.mxu1 %v4585_v53  ;;  %v4591_v39 = vld [vmem:[%s6909_s3 + $0x2ec] ss:$16 sps:$4 sm:$0xff]  }
 0x135   :  { %v5710_v60 = vpop.f32.mrb[44].mxu0  ;;  %v1880_v5 = vpop.f32.mrb[16].mxu1 }
 0x136   :  { %6920 = vst [vmem:[#allocation7_spill] sm:$0xff] %v5710_v60  ;;  %v5714_v0 = vpop.f32.mrb[45].mxu0  ;;  %v5720_v14 = vadd.f32 %v1880_v5, %v5494_v20  ;;  %v1882_v26 = vpop.f32.mrb[17].mxu1 }
 0x137   :  { %6921 = vst [vmem:[#allocation8_spill] sm:$0xff] %v5714_v0  ;;  %v5722_v31 = vpop.f32.mrb[46].mxu0  ;;  %v1883_v40 = vpop.f32.mrb[18].mxu1 }
 0x138   :  { %6922 = vst [vmem:[#allocation9_spill] sm:$0xff] %v5722_v31  ;;  %v5730_v53 = vpop.f32.mrb[47].mxu0  ;;  %v5733_v55 = vadd.f32 %v1883_v40, %v5507_v25  ;;  %v1885_v60 = vpop.f32.mrb[19].mxu1 }
 0x139   :  { %6923 = vst [vmem:[#allocation10_spill] sm:$0xff] %v5730_v53  ;;  %v5735_v20 = vpop.permute.xlu0 %2494  ;;  %v5739_v26 = vpop.permute.xlu1 %2499  ;;  %v4593_v53 = vld [vmem:[%s6909_s3 + $0x2e8] ss:$16 sps:$4 sm:$0xff]  }
 0x13a   :  { %2312 = vmatmul.mubr.bf16.gmra.mrb[152].mxu0 %v4590_v21  ;;  %2095 = vmatmul.mubr.bf16.gmra.mrb[124].mxu1 %v4587_v34  ;;  %6924 = vst [vmem:[#allocation11_spill] sm:$0xff] %v5735_v20  ;;  %6926 = vst [vmem:[#allocation13_spill] sm:$0xff] %v5739_v26  ;;  %v4594_v34 = vld [vmem:[%s6909_s3 + $0x30c] ss:$16 sps:$4 sm:$0xff]  }
 0x13b   :  { %2319 = vmatprep.mubr.bf16.mxu0 %v4591_v39 }
 0x13d   :  { %v5737_v5 = vpop.f32.mrb[48].mxu0  ;;  %v1888_v31 = vpop.f32.mrb[20].mxu1 }
 0x13e   :  { %6925 = vst [vmem:[#allocation12_spill] sm:$0xff] %v5737_v5  ;;  %v5741_v0 = vpop.f32.mrb[49].mxu0  ;;  %v5747_v25 = vadd.f32 %v5492_v19, %v1888_v31  ;;  %v1890_v60 = vpop.f32.mrb[21].mxu1 }
 0x13f   :  { %6927 = vst [vmem:[#allocation14_spill] sm:$0xff] %v5741_v0  ;;  %v5749_v21 = vpop.f32.mrb[50].mxu0  ;;  %v1891_v39 = vpop.f32.mrb[22].mxu1 }
 0x140   :  { %6928 = vst [vmem:[#allocation15_spill] sm:$0xff] %v5749_v21  ;;  %v5754_v40 = vpop.f32.mrb[51].mxu0  ;;  %v5757_v5 = vadd.f32 %v5499_v22, %v1891_v39  ;;  %v1893_v0 = vpop.f32.mrb[23].mxu1 }
 0x141   :  { %6929 = vst [vmem:[#allocation16_spill] sm:$0xff] %v5754_v40  ;;  %v5759_v32 = vpop.permute.xlu0 %2414  ;;  %v5763_v31 = vpop.permute.xlu1 %2419 }
 0x142   :  { %2320 = vmatmul.mubr.bf16.gmra.mrb[156].mxu0 %v4593_v53  ;;  %v4597_v53 = vld [vmem:[%s6909_s3 + $0x32c] ss:$16 sps:$4 sm:$0xff]  }
 0x143   :  { %2327 = vmatprep.mubr.bf16.mxu0 %v4594_v34 }
 0x145   :  { %v5761_v19 = vpop.f32.mrb[52].mxu0  ;;  %v1896_v60 = vpop.f32.mrb[24].mxu1 }
 0x146   :  { %6930 = vst [vmem:[#allocation17_spill] sm:$0xff] %v5761_v19  ;;  %v5765_v21 = vpop.f32.mrb[53].mxu0  ;;  %v5771_v40 = vadd.f32 %v1896_v60, %v5514_v28  ;;  %v1898_v22 = vpop.f32.mrb[25].mxu1 }
 0x147   :  { %6931 = vst [vmem:[#allocation18_spill] sm:$0xff] %v5765_v21  ;;  %v5773_v0 = vpop.f32.mrb[54].mxu0  ;;  %v1899_v34 = vpop.f32.mrb[26].mxu1 }
 0x148   :  { %6932 = vst [vmem:[#allocation19_spill] sm:$0xff] %v5773_v0  ;;  %v5778_v39 = vpop.f32.mrb[55].mxu0  ;;  %v5781_v19 = vadd.f32 %v1899_v34, %v5527_v33  ;;  %v1901_v21 = vpop.f32.mrb[27].mxu1 }
 0x149   :  { %6933 = vst [vmem:[#allocation20_spill] sm:$0xff] %v5778_v39  ;;  %v5783_v48 = vpop.permute.xlu0 %2504  ;;  %v5787_v60 = vpop.permute.xlu1 %2509 }
 0x14a   :  { %2328 = vmatmul.mubr.bf16.gmra.mrb[160].mxu0 %v4596_v10  ;;  %6934 = vst [vmem:[#allocation21_spill] sm:$0xff] %v5783_v48  ;;  %6936 = vst [vmem:[#allocation23_spill] sm:$0xff] %v5787_v60  ;;  %v4600_v10 = vld [vmem:[%s6909_s3 + $0x34c] ss:$16 sps:$4 sm:$0xff]   ;;  %v4602_v48 = vld [vmem:[%s6909_s3 + $0x348] ss:$16 sps:$4 sm:$0xff]  }
 0x14b   :  { %2335 = vmatprep.mubr.bf16.mxu0 %v4597_v53 }
 0x14d   :  { %v5785_v28 = vpop.f32.mrb[56].mxu0  ;;  %v1904_v22 = vpop.f32.mrb[28].mxu1 }
 0x14e   :  { %6935 = vst [vmem:[#allocation22_spill] sm:$0xff] %v5785_v28  ;;  %v5789_v0 = vpop.f32.mrb[57].mxu0  ;;  %v5795_v39 = vadd.f32 %v5512_v27, %v1904_v22  ;;  %v1906_v33 = vpop.f32.mrb[29].mxu1 }
 0x14f   :  { %6937 = vst [vmem:[#allocation24_spill] sm:$0xff] %v5789_v0  ;;  %v5797_v21 = vpop.f32.mrb[58].mxu0  ;;  %v1907_v53 = vpop.f32.mrb[30].mxu1 }
 0x150   :  { %6938 = vst [vmem:[#allocation25_spill] sm:$0xff] %v5797_v21  ;;  %v5802_v34 = vpop.f32.mrb[59].mxu0  ;;  %v5805_v28 = vadd.f32 %v5519_v30, %v1907_v53  ;;  %v1909_v0 = vpop.f32.mrb[31].mxu1 }
 0x151   :  { %6939 = vst [vmem:[#allocation26_spill] sm:$0xff] %v5802_v34  ;;  %v5807_v60 = vpop.permute.xlu0 %2424  ;;  %v5811_v22 = vpop.permute.xlu1 %2429 }
 0x152   :  { %2336 = vmatmul.mubr.bf16.gmra.mrb[164].mxu0 %v4599_v24  ;;  %v4603_v24 = vld [vmem:[%s6909_s3 + $0x36c] ss:$16 sps:$4 sm:$0xff]  }
 0x153   :  { %2343 = vmatprep.mubr.bf16.mxu0 %v4600_v10 }
 0x155   :  { %v5809_v27 = vpop.f32.mrb[60].mxu0  ;;  %v1912_v33 = vpop.f32.mrb[32].mxu1 }
 0x156   :  { %6940 = vst [vmem:[#allocation27_spill] sm:$0xff] %v5809_v27  ;;  %v5813_v21 = vpop.f32.mrb[61].mxu0  ;;  %v5819_v34 = vadd.f32 %v1912_v33, %v5534_v36  ;;  %v1914_v30 = vpop.f32.mrb[33].mxu1 }
 0x157   :  { %6941 = vst [vmem:[#allocation28_spill] sm:$0xff] %v5813_v21  ;;  %v5821_v0 = vpop.f32.mrb[62].mxu0  ;;  %v1915_v10 = vpop.f32.mrb[34].mxu1 }
 0x158   :  { %6942 = vst [vmem:[#allocation29_spill] sm:$0xff] %v5821_v0  ;;  %v5826_v53 = vpop.f32.mrb[63].mxu0  ;;  %v5829_v27 = vadd.f32 %v1915_v10, %v5547_v41  ;;  %v1917_v21 = vpop.f32.mrb[35].mxu1 }
 0x159   :  { %6943 = vst [vmem:[#allocation30_spill] sm:$0xff] %v5826_v53  ;;  %v5831_v26 = vpop.permute.xlu0 %2514  ;;  %v5833_v33 = vpop.permute.xlu1 %2519 }
 0x15a   :  { %2344 = vmatmul.mubr.bf16.gmra.mrb[168].mxu0 %v4602_v48  ;;  %6944 = vst [vmem:[#allocation31_spill] sm:$0xff] %v5831_v26  ;;  %6945 = vst [vmem:[#allocation32_spill] sm:$0xff] %v5833_v33  ;;  %v4606_v48 = vld [vmem:[%s6909_s3 + $0x38c] ss:$16 sps:$4 sm:$0xff]  }
 0x15b   :  { %2351 = vmatprep.mubr.bf16.mxu0 %v4603_v24 }
 0x15d   :  { %v2137_v36 = vpop.f32.mrb[64].mxu0  ;;  %v1920_v30 = vpop.f32.mrb[36].mxu1 }
 0x15e   :  { %v2138_v0 = vadd.f32 %v2137_v36, %v5600_v63  ;;  %v2139_v20 = vpop.f32.mrb[65].mxu0  ;;  %v5840_v53 = vadd.f32 %v5532_v35, %v1920_v30  ;;  %v1922_v41 = vpop.f32.mrb[37].mxu1 }
 0x15f   :  { %v2140_v21 = vpop.f32.mrb[66].mxu0  ;;  %v1923_v24 = vpop.f32.mrb[38].mxu1 }
 0x160   :  { %v2141_v10 = vadd.f32 %v2140_v21, %v5616_v3  ;;  %v2142_v33 = vpop.f32.mrb[67].mxu0  ;;  %v5847_v63 = vadd.f32 %v5539_v38, %v1923_v24  ;;  %v1925_v20 = vpop.f32.mrb[39].mxu1  ;;  %v5850_v36 = vadd.f32 %v5622_v18, %v2138_v0  ;;  %v4608_v18 = vld [vmem:[%s6909_s3 + $0x388] ss:$16 sps:$4 sm:$0xff]  }
 0x161   :  { %v5857_v41 = vpop.permute.xlu0 %2434  ;;  %v5859_v3 = vpop.permute.xlu1 %2439 }
 0x162   :  { %v5853_v35 = vadd.f32 %v5652_v47, %v2141_v10  ;;  %2352 = vmatmul.mubr.bf16.gmra.mrb[172].mxu0 %v4605_v56 }
 0x163   :  { %2359 = vmatprep.mubr.bf16.mxu0 %v4606_v48  ;;  %v4609_v48 = vld [vmem:[%s6909_s3 + $0x3ac] ss:$16 sps:$4 sm:$0xff]  }
 0x165   :  { %v2145_v26 = vpop.f32.mrb[68].mxu0  ;;  %v1928_v33 = vpop.f32.mrb[40].mxu1 }
 0x166   :  { %v2146_v38 = vadd.f32 %v2145_v26, %v5630_v9  ;;  %v2147_v21 = vpop.f32.mrb[69].mxu0  ;;  %v5866_v47 = vadd.f32 %v1928_v33, %v5554_v44  ;;  %v1930_v56 = vpop.f32.mrb[41].mxu1 }
 0x167   :  { %v2148_v0 = vpop.f32.mrb[70].mxu0  ;;  %v1931_v24 = vpop.f32.mrb[42].mxu1 }
 0x168   :  { %v2149_v10 = vadd.f32 %v2148_v0, %v5646_v2  ;;  %v2150_v20 = vpop.f32.mrb[71].mxu0  ;;  %v5873_v9 = vadd.f32 %v1931_v24, %v5567_v49  ;;  %v1933_v26 = vpop.f32.mrb[43].mxu1  ;;  %v5876_v21 = vadd.f32 %v5708_v58, %v2146_v38  ;;  %v4611_v58 = vld [vmem:[%s6909_s3 + $0x3a8] ss:$16 sps:$4 sm:$0xff]  }
 0x169   :  { %v5883_v56 = vpop.permute.xlu0 %2524  ;;  %v5885_v2 = vpop.permute.xlu1 %2529 }
 0x16a   :  { %v5879_v44 = vadd.f32 %v5712_v62, %v2149_v10  ;;  %2360 = vmatmul.mubr.bf16.gmra.mrb[176].mxu0 %v4608_v18  ;;  %6946 = vst [vmem:[#allocation33_spill] sm:$0xff] %v5885_v2 }
 0x16b   :  { %2367 = vmatprep.mubr.bf16.mxu0 %v4609_v48  ;;  %v4612_v48 = vld [vmem:[%s6909_s3 + $0x3cc] ss:$16 sps:$4 sm:$0xff]  }
 0x16d   :  { %v2153_v30 = vpop.f32.mrb[72].mxu0  ;;  %v1936_v0 = vpop.f32.mrb[44].mxu1 }
 0x16e   :  { %v2154_v49 = vadd.f32 %v2153_v30, %v5660_v6  ;;  %v2155_v24 = vpop.f32.mrb[73].mxu0  ;;  %v5892_v62 = vadd.f32 %v5552_v43, %v1936_v0  ;;  %v1938_v38 = vpop.f32.mrb[45].mxu1 }
 0x16f   :  { %v2156_v18 = vpop.f32.mrb[74].mxu0  ;;  %v1939_v10 = vpop.f32.mrb[46].mxu1 }
 0x170   :  { %v2157_v20 = vadd.f32 %v2156_v18, %v5676_v12  ;;  %v2158_v26 = vpop.f32.mrb[75].mxu0  ;;  %v5899_v6 = vadd.f32 %v5559_v46, %v1939_v10  ;;  %v1941_v30 = vpop.f32.mrb[47].mxu1  ;;  %v5902_v24 = vadd.f32 %v5759_v32, %v2154_v49  ;;  %v4614_v32 = vld [vmem:[%s6909_s3 + $0x3c8] ss:$16 sps:$4 sm:$0xff]  }
 0x171   :  { %v2445_v38 = vpop.permute.xlu0 %2444  ;;  %v2450_v2 = vpop.permute.xlu1 %2449 }
 0x172   :  { %v5905_v43 = vadd.f32 %v5763_v31, %v2157_v20  ;;  %2368 = vmatmul.mubr.bf16.gmra.mrb[180].mxu0 %v4611_v58 }
 0x173   :  { %2375 = vmatprep.mubr.bf16.mxu0 %v4612_v48  ;;  %v4615_v48 = vld [vmem:[%s6909_s3 + $0x3ec] ss:$16 sps:$4 sm:$0xff]  }
 0x175   :  { %v2161_v33 = vpop.f32.mrb[76].mxu0  ;;  %v1944_v12 = vpop.f32.mrb[48].mxu1 }
 0x176   :  { %v2162_v18 = vadd.f32 %v2161_v33, %v5690_v17  ;;  %v2163_v46 = vpop.f32.mrb[77].mxu0  ;;  %v5914_v49 = vadd.f32 %v1944_v12, %v5574_v52  ;;  %v1946_v31 = vpop.f32.mrb[49].mxu1 }
 0x177   :  { %v2164_v58 = vpop.f32.mrb[78].mxu0  ;;  %v1947_v10 = vpop.f32.mrb[50].mxu1 }
 0x178   :  { %v2165_v20 = vadd.f32 %v2164_v58, %v5706_v11  ;;  %v2166_v26 = vpop.f32.mrb[79].mxu0  ;;  %v5921_v17 = vadd.f32 %v1947_v10, %v5587_v57  ;;  %v1949_v33 = vpop.f32.mrb[51].mxu1  ;;  %v5924_v30 = vadd.f32 %v5807_v60, %v2162_v18  ;;  %v4617_v60 = vld [vmem:[%s6909_s3 + $0x3e8] ss:$16 sps:$4 sm:$0xff]  }
 0x179   :  { %v5931_v46 = vpop.permute.xlu0 %2534  ;;  %v5933_v11 = vpop.permute.xlu1 %2539 }
 0x17a   :  { %v5927_v52 = vadd.f32 %v5811_v22, %v2165_v20  ;;  %2376 = vmatmul.mubr.bf16.gmra.mrb[184].mxu0 %v4614_v32 }
 0x17b   :  { %2383 = vmatprep.mubr.bf16.mxu0 %v4615_v48 }
 0x17d   :  { %v2169_v31 = vpop.f32.mrb[80].mxu0  ;;  %v1952_v58 = vpop.f32.mrb[52].mxu1 }
 0x17e   :  { %v2170_v57 = vadd.f32 %v2169_v31, %v5720_v14  ;;  %v2171_v10 = vpop.f32.mrb[81].mxu0  ;;  %v5940_v22 = vadd.f32 %v5572_v51, %v1952_v58  ;;  %v1954_v18 = vpop.f32.mrb[53].mxu1 }
 0x17f   :  { %v2172_v32 = vpop.f32.mrb[82].mxu0  ;;  %v1955_v48 = vpop.f32.mrb[54].mxu1 }
 0x180   :  { %v2173_v20 = vadd.f32 %v2172_v32, %v5733_v55  ;;  %v2174_v26 = vpop.f32.mrb[83].mxu0  ;;  %v5944_v33 = vadd.f32 %v5579_v54, %v1955_v48  ;;  %v1957_v12 = vpop.f32.mrb[55].mxu1  ;;  %v5947_v14 = vadd.f32 %v5857_v41, %v2170_v57 }
 0x181   :  { %v2455_v58 = vpop.permute.xlu0 %2454  ;;  %v2460_v18 = vpop.permute.xlu1 %2459 }
 0x182   :  { %v5950_v31 = vadd.f32 %v5859_v3, %v2173_v20  ;;  %2384 = vmatmul.mubr.bf16.gmra.mrb[188].mxu0 %v4617_v60 }
 0x185   :  { %v2177_v10 = vpop.f32.mrb[84].mxu0  ;;  %v1960_v0 = vpop.f32.mrb[56].mxu1 }
 0x186   :  { %v2178_v55 = vadd.f32 %v2177_v10, %v5747_v25  ;;  %v2179_v32 = vpop.f32.mrb[85].mxu0  ;;  %v5956_v54 = vadd.f32 %v1960_v0, %v5594_v61  ;;  %v1962_v12 = vpop.f32.mrb[57].mxu1 }
 0x187   :  { %v2180_v41 = vpop.f32.mrb[86].mxu0  ;;  %v1963_v57 = vpop.f32.mrb[58].mxu1 }
 0x188   :  { %v2181_v3 = vadd.f32 %v2180_v41, %v5757_v5  ;;  %v2182_v48 = vpop.f32.mrb[87].mxu0  ;;  %v5960_v60 = vadd.f32 %v1963_v57, %v5610_v8  ;;  %v1965_v20 = vpop.f32.mrb[59].mxu1  ;;  %v5962_v26 = vadd.f32 %v2445_v38, %v2178_v55 }
 0x189   :  { %v5968_v10 = vpop.permute.xlu0 %2544  ;;  %v5970_v0 = vpop.permute.xlu1 %2549 }
 0x18a   :  { %v5964_v51 = vadd.f32 %v2450_v2, %v2181_v3  ;;  %6947 = vst [vmem:[#allocation34_spill] sm:$0xff] %v5970_v0 }
 0x18d   :  { %v2185_v61 = vpop.f32.mrb[88].mxu0  ;;  %v1968_v32 = vpop.f32.mrb[60].mxu1 }
 0x18e   :  { %v2186_v5 = vadd.f32 %v2185_v61, %v5771_v40  ;;  %v2187_v12 = vpop.f32.mrb[89].mxu0  ;;  %v5974_v8 = vadd.f32 %v5592_v59, %v1968_v32  ;;  %v1970_v41 = vpop.f32.mrb[61].mxu1 }
 0x18f   :  { %v2188_v38 = vpop.f32.mrb[90].mxu0  ;;  %v1971_v55 = vpop.f32.mrb[62].mxu1 }
 0x190   :  { %v2189_v2 = vadd.f32 %v2188_v38, %v5781_v19  ;;  %v2190_v57 = vpop.f32.mrb[91].mxu0  ;;  %v5978_v3 = vadd.f32 %v5602_v4, %v1971_v55  ;;  %v1973_v48 = vpop.f32.mrb[63].mxu1  ;;  %v5980_v20 = vadd.f32 %v2455_v58, %v2186_v5 }
 0x191   :  { %v2465_v61 = vpop.permute.xlu0 %2464  ;;  %v2470_v32 = vpop.permute.xlu1 %2469 }
 0x192   :  { %v5982_v25 = vadd.f32 %v2460_v18, %v2189_v2 }
 0x194   :  { %v2782_v40 = vpack.c.bf16 %v5982_v25, %v5980_v20 }
 0x195   :  { %v2193_v59 = vpop.f32.mrb[92].mxu0  ;;  %v1976_v12 = vpop.f32.mrb[64].mxu1 }
 0x196   :  { %v2194_v41 = vadd.f32 %v2193_v59, %v5795_v39  ;;  %v2195_v0 = vpop.f32.mrb[93].mxu0  ;;  %v5988_v19 = vadd.f32 %v1976_v12, %v5624_v23  ;;  %v1978_v4 = vpop.f32.mrb[65].mxu1 }
 0x197   :  { %v2196_v38 = vpop.f32.mrb[94].mxu0  ;;  %v1979_v55 = vpop.f32.mrb[66].mxu1 }
 0x198   :  { %v2197_v58 = vadd.f32 %v2196_v38, %v5805_v28  ;;  %v2198_v18 = vpop.f32.mrb[95].mxu0  ;;  %v5992_v5 = vadd.f32 %v1979_v55, %v5640_v37  ;;  %v1981_v2 = vpop.f32.mrb[67].mxu1  ;;  %v5994_v57 = vadd.f32 %v2465_v61, %v2194_v41 }
 0x19a   :  { %v5996_v48 = vadd.f32 %v2470_v32, %v2197_v58 }
 0x19c   :  { %v2783_v39 = vpack.c.bf16 %v5996_v48, %v5994_v57 }
 0x19d   :  { %v2201_v0 = vpop.f32.mrb[96].mxu0  ;;  %v1984_v23 = vpop.f32.mrb[68].mxu1 }
 0x19e   :  { %v2202_v59 = vadd.f32 %v2201_v0, %v5819_v34  ;;  %v2203_v12 = vpop.f32.mrb[97].mxu0  ;;  %v6002_v4 = vadd.f32 %v5620_v16, %v1984_v23  ;;  %v1986_v28 = vpop.f32.mrb[69].mxu1 }
 0x19f   :  { %v2204_v38 = vpop.f32.mrb[98].mxu0  ;;  %v1987_v37 = vpop.f32.mrb[70].mxu1 }
 0x1a0   :  { %v2205_v55 = vadd.f32 %v2204_v38, %v5829_v27  ;;  %v2206_v61 = vpop.f32.mrb[99].mxu0  ;;  %v6006_v32 = vadd.f32 %v5632_v29, %v1987_v37  ;;  %v1989_v41 = vpop.f32.mrb[71].mxu1  ;;  %v2728_v58 = vadd.f32 %v5618_v15, %v2202_v59  ;;  %v6948_v29 = vpack.c.bf16 %v5853_v35, %v5850_v36 }
 0x1a1   :  { %v6010_v34 = vpop.permute.xlu0 %2634  ;;  %v6012_v0 = vpop.permute.xlu1 %2639 }
 0x1a2   :  { %v2729_v18 = vadd.f32 %v5648_v42, %v2205_v55 }
 0x1a4   :  { %v2784_v2 = vpack.c.bf16 %v2729_v18, %v2728_v58 }
 0x1a5   :  { %v2209_v16 = vpop.f32.mrb[100].mxu0  ;;  %v1992_v23 = vpop.f32.mrb[72].mxu1 }
 0x1a6   :  { %4656 = vtanh.bf16 %v2784_v2  ;;  %v2210_v12 = vadd.f32 %v2209_v16, %v5840_v53  ;;  %v2211_v27 = vpop.f32.mrb[101].mxu0  ;;  %v6019_v28 = vadd.f32 %v1992_v23, %v5654_v50  ;;  %v1994_v15 = vpop.f32.mrb[73].mxu1 }
 0x1a7   :  { %4658 = vtanh.bf16 %v6948_v29  ;;  %v2212_v42 = vpop.f32.mrb[102].mxu0  ;;  %v1995_v59 = vpop.f32.mrb[74].mxu1  ;;  %v6950_v15 = vld [vmem:[#allocation2_spill] sm:$0xff] }
 0x1a8   :  { %v2213_v38 = vadd.f32 %v2212_v42, %v5847_v63  ;;  %v2214_v37 = vpop.f32.mrb[103].mxu0  ;;  %v6023_v55 = vadd.f32 %v1995_v59, %v5670_v1  ;;  %v1997_v61 = vpop.f32.mrb[75].mxu1  ;;  %v2730_v53 = vadd.f32 %v5678_v7, %v2210_v12  ;;  %v6949_v1 = vpack.c.bf16 %v5879_v44, %v5876_v21  ;;  %v6951_v44 = vld [vmem:[#allocation11_spill] sm:$0xff] }
 0x1a9   :  { %v6027_v58 = vpop.permute.xlu0 %2554  ;;  %v6029_v35 = vpop.permute.xlu1 %2559 }
 0x1aa   :  { %v2731_v41 = vadd.f32 %v5682_v13, %v2213_v38 }
 0x1ac   :  { %v2785_v36 = vpack.c.bf16 %v2731_v41, %v2730_v53 }
 0x1ad   :  { %v2217_v50 = vpop.f32.mrb[104].mxu0  ;;  %v2000_v18 = vpop.f32.mrb[76].mxu1 }
 0x1ae   :  { %4660 = vtanh.bf16 %v2785_v36  ;;  %v2218_v2 = vadd.f32 %v2217_v50, %v5866_v47  ;;  %v2219_v63 = vpop.f32.mrb[105].mxu0  ;;  %v6036_v16 = vadd.f32 %v5650_v45, %v2000_v18  ;;  %v2002_v7 = vpop.f32.mrb[77].mxu1  ;;  %v4620_v47 = vld [vmem:[%s6911_s6 + $0x4] ss:$16 sps:$4 sm:$0xff]   ;;  %v6952_v45 = vld [vmem:[#allocation13_spill] sm:$0xff] }
 0x1af   :  { %4662 = vtanh.bf16 %v6949_v1  ;;  %v2220_v13 = vpop.f32.mrb[106].mxu0  ;;  %v2003_v23 = vpop.f32.mrb[78].mxu1  ;;  %2892 = vmatprep.mubr.bf16.mxu1 %v4620_v47  ;;  %v6953_v63 = vpack.c.bf16 %v5905_v43, %v5902_v24 }
 0x1b0   :  { %v2221_v12 = vadd.f32 %v2220_v13, %v5873_v9  ;;  %v2222_v27 = vpop.f32.mrb[107].mxu0  ;;  %v6040_v42 = vadd.f32 %v6950_v15, %v2003_v23  ;;  %v2005_v59 = vpop.f32.mrb[79].mxu1  ;;  %v2732_v38 = vadd.f32 %v6951_v44, %v2218_v2  ;;  %v6954_v2 = vld [vmem:[#allocation4_spill] sm:$0xff]  ;;  %v6955_v15 = vld [vmem:[#allocation6_spill] sm:$0xff] }
 0x1b1   :  { %v4657_v29 = vpop.eup %4656  ;;  %v6047_v61 = vpop.permute.xlu0 %2644 }
 0x1b2   :  { %v4659_v21 = vpop.eup %4658  ;;  %v2733_v37 = vadd.f32 %v6952_v45, %v2221_v12  ;;  %4073 = vmatprep.subr.bf16.mxu1 %v4657_v29  ;;  %v6049_v53 = vpop.permute.xlu1 %2649 }
 0x1b3   :  { %4074 = vmatpush3.bf16.msra.mxu1 %v4659_v21  ;;  %v6956_v21 = vld [vmem:[#allocation21_spill] sm:$0xff] }
 0x1b4   :  { %v2786_v9 = vpack.c.bf16 %v2733_v37, %v2732_v38  ;;  %v6957_v38 = vld [vmem:[#allocation23_spill] sm:$0xff] }
 0x1b5   :  { %v2225_v41 = vpop.f32.mrb[108].mxu0  ;;  %v2008_v36 = vpop.f32.mrb[80].mxu1 }
 0x1b6   :  { %4664 = vtanh.bf16 %v2786_v9  ;;  %v2226_v50 = vadd.f32 %v2225_v41, %v5892_v62  ;;  %v2227_v18 = vpop.f32.mrb[109].mxu0  ;;  %v6056_v1 = vadd.f32 %v2008_v36, %v6954_v2  ;;  %v2010_v7 = vpop.f32.mrb[81].mxu1 }
 0x1b7   :  { %4666 = vtanh.bf16 %v6953_v63  ;;  %v2228_v13 = vpop.f32.mrb[110].mxu0  ;;  %v2011_v23 = vpop.f32.mrb[82].mxu1  ;;  %v6958_v18 = vpack.c.bf16 %v5927_v52, %v5924_v30 }
 0x1b8   :  { %v2229_v12 = vadd.f32 %v2228_v13, %v5899_v6  ;;  %v2230_v27 = vpop.f32.mrb[111].mxu0  ;;  %v6060_v59 = vadd.f32 %v2011_v23, %v6955_v15  ;;  %v2013_v47 = vpop.f32.mrb[83].mxu1  ;;  %v2734_v44 = vadd.f32 %v6956_v21, %v2226_v50  ;;  %v6959_v50 = vld [vmem:[#allocation3_spill] sm:$0xff] }
 0x1b9   :  { %v4661_v29 = vpop.eup %4660  ;;  %v6064_v43 = vpop.permute.xlu0 %2564 }
 0x1ba   :  { %v4663_v62 = vpop.eup %4662  ;;  %v2735_v24 = vadd.f32 %v6957_v38, %v2229_v12  ;;  %4075 = vmatprep.subr.bf16.mxu1 %v4661_v29  ;;  %v6066_v37 = vpop.permute.xlu1 %2569  ;;  %v6960_v29 = vld [vmem:[#allocation5_spill] sm:$0xff] }
 0x1bb   :  { %4076 = vmatpush3.bf16.msra.mxu1 %v4663_v62  ;;  %v6961_v62 = vld [vmem:[#allocation31_spill] sm:$0xff] }
 0x1bc   :  { %v2787_v45 = vpack.c.bf16 %v2735_v24, %v2734_v44  ;;  %v6962_v44 = vld [vmem:[#allocation32_spill] sm:$0xff] }
 0x1bd   :  { %v2233_v9 = vpop.f32.mrb[112].mxu0  ;;  %v2016_v6 = vpop.f32.mrb[84].mxu1 }
 0x1be   :  { %4668 = vtanh.bf16 %v2787_v45  ;;  %v2234_v41 = vadd.f32 %v2233_v9, %v5914_v49  ;;  %v2235_v36 = vpop.f32.mrb[113].mxu0  ;;  %v6073_v63 = vadd.f32 %v6959_v50, %v2016_v6  ;;  %v2018_v2 = vpop.f32.mrb[85].mxu1 }
 0x1bf   :  { %4670 = vtanh.bf16 %v6958_v18  ;;  %v2236_v7 = vpop.f32.mrb[114].mxu0  ;;  %v2019_v13 = vpop.f32.mrb[86].mxu1  ;;  %v6963_v36 = vpack.c.bf16 %v5950_v31, %v5947_v14 }
 0x1c0   :  { %v2237_v23 = vadd.f32 %v2236_v7, %v5921_v17  ;;  %v2238_v12 = vpop.f32.mrb[115].mxu0  ;;  %v6077_v15 = vadd.f32 %v6960_v29, %v2019_v13  ;;  %v2021_v47 = vpop.f32.mrb[87].mxu1  ;;  %v2736_v21 = vadd.f32 %v6961_v62, %v2234_v41  ;;  %v6964_v41 = vld [vmem:[#allocation8_spill] sm:$0xff]  ;;  %v6966_v62 = vld [vmem:[#allocation33_spill] sm:$0xff] }
 0x1c1   :  { %v4665_v27 = vpop.eup %4664  ;;  %v6081_v52 = vpop.permute.xlu0 %2654 }
 0x1c2   :  { %v4667_v49 = vpop.eup %4666  ;;  %v2737_v30 = vadd.f32 %v6962_v44, %v2237_v23  ;;  %4077 = vmatprep.subr.bf16.mxu1 %v4665_v27  ;;  %v6083_v24 = vpop.permute.xlu1 %2659  ;;  %v6965_v27 = vld [vmem:[#allocation10_spill] sm:$0xff] }
 0x1c3   :  { %4078 = vmatpush3.bf16.msra.mxu1 %v4667_v49 }
 0x1c4   :  { %v2788_v38 = vpack.c.bf16 %v2737_v30, %v2736_v21 }
 0x1c5   :  { %v2241_v45 = vpop.f32.mrb[116].mxu0  ;;  %v2024_v17 = vpop.f32.mrb[88].mxu1 }
 0x1c6   :  { %4672 = vtanh.bf16 %v2788_v38  ;;  %v2242_v9 = vadd.f32 %v2241_v45, %v5940_v22  ;;  %v2243_v6 = vpop.f32.mrb[117].mxu0  ;;  %v6090_v18 = vadd.f32 %v2024_v17, %v6964_v41  ;;  %v2026_v50 = vpop.f32.mrb[89].mxu1  ;;  %v6967_v17 = vpack.c.bf16 %v5964_v51, %v5962_v26 }
 0x1c7   :  { %4674 = vtanh.bf16 %v6963_v36  ;;  %v2244_v2 = vpop.f32.mrb[118].mxu0  ;;  %v2027_v7 = vpop.f32.mrb[90].mxu1 }
 0x1c8   :  { %v2245_v13 = vadd.f32 %v2244_v2, %v5944_v33  ;;  %v2246_v23 = vpop.f32.mrb[119].mxu0  ;;  %v6094_v29 = vadd.f32 %v2027_v7, %v6965_v27  ;;  %v2029_v47 = vpop.f32.mrb[91].mxu1  ;;  %v2738_v49 = vadd.f32 %v5883_v56, %v2242_v9  ;;  %v6968_v56 = vld [vmem:[#allocation7_spill] sm:$0xff] }
 0x1c9   :  { %v4669_v12 = vpop.eup %4668  ;;  %v6098_v31 = vpop.permute.xlu0 %2574 }
 0x1ca   :  { %v4671_v22 = vpop.eup %4670  ;;  %v2739_v14 = vadd.f32 %v6966_v62, %v2245_v13  ;;  %4079 = vmatprep.subr.bf16.mxu1 %v4669_v12  ;;  %v6100_v44 = vpop.permute.xlu1 %2579  ;;  %v6969_v13 = vld [vmem:[#allocation9_spill] sm:$0xff] }
 0x1cb   :  { %4080 = vmatpush3.bf16.msra.mxu1 %v4671_v22 }
 0x1cc   :  { %v2789_v21 = vpack.c.bf16 %v2739_v14, %v2738_v49 }
 0x1cd   :  { %v2249_v30 = vpop.f32.mrb[120].mxu0  ;;  %v2032_v33 = vpop.f32.mrb[92].mxu1 }
 0x1ce   :  { %4676 = vtanh.bf16 %v2789_v21  ;;  %v2250_v38 = vadd.f32 %v2249_v30, %v5956_v54  ;;  %v2251_v45 = vpop.f32.mrb[121].mxu0  ;;  %v6107_v9 = vadd.f32 %v6968_v56, %v2032_v33  ;;  %v2034_v6 = vpop.f32.mrb[93].mxu1  ;;  %v6971_v56 = vld [vmem:[#allocation16_spill] sm:$0xff] }
 0x1cf   :  { %4678 = vtanh.bf16 %v6967_v17  ;;  %v2252_v36 = vpop.f32.mrb[122].mxu0  ;;  %v2035_v41 = vpop.f32.mrb[94].mxu1 }
 0x1d0   :  { %v2253_v50 = vadd.f32 %v2252_v36, %v5960_v60  ;;  %v2254_v2 = vpop.f32.mrb[123].mxu0  ;;  %v6111_v23 = vadd.f32 %v6969_v13, %v2035_v41  ;;  %v2037_v12 = vpop.f32.mrb[95].mxu1  ;;  %v2740_v27 = vadd.f32 %v5931_v46, %v2250_v38  ;;  %v6970_v46 = vld [vmem:[#allocation14_spill] sm:$0xff] }
 0x1d1   :  { %v4673_v7 = vpop.eup %4672  ;;  %v6115_v26 = vpop.permute.xlu0 %2664 }
 0x1d2   :  { %v4675_v54 = vpop.eup %4674  ;;  %v2741_v51 = vadd.f32 %v5933_v11, %v2253_v50  ;;  %4081 = vmatprep.subr.bf16.mxu1 %v4673_v7  ;;  %v6117_v22 = vpop.permute.xlu1 %2669  ;;  %v6972_v50 = vld [vmem:[#allocation34_spill] sm:$0xff] }
 0x1d3   :  { %4082 = vmatpush3.bf16.msra.mxu1 %v4675_v54 }
 0x1d4   :  { %v2790_v47 = vpack.c.bf16 %v2741_v51, %v2740_v27 }
 0x1d5   :  { %v2257_v49 = vpop.f32.mrb[124].mxu0  ;;  %v2040_v60 = vpop.f32.mrb[96].mxu1 }
 0x1d6   :  { %4680 = vtanh.bf16 %v2790_v47  ;;  %v2258_v62 = vadd.f32 %v2257_v49, %v5974_v8  ;;  %v2259_v14 = vpop.f32.mrb[125].mxu0  ;;  %v6124_v21 = vadd.f32 %v2040_v60, %v6970_v46  ;;  %v2042_v11 = vpop.f32.mrb[97].mxu1 }
 0x1d7   :  { %4682 = vtanh.bf16 %v2782_v40  ;;  %v2260_v30 = vpop.f32.mrb[126].mxu0  ;;  %v2043_v33 = vpop.f32.mrb[98].mxu1  ;;  %v6974_v14 = vld [vmem:[#allocation15_spill] sm:$0xff] }
 0x1d8   :  { %v2261_v38 = vadd.f32 %v2260_v30, %v5978_v3  ;;  %v2262_v45 = vpop.f32.mrb[127].mxu0  ;;  %v6128_v6 = vadd.f32 %v2043_v33, %v6971_v56  ;;  %v2045_v36 = vpop.f32.mrb[99].mxu1  ;;  %v2742_v41 = vadd.f32 %v5968_v10, %v2258_v62  ;;  %v6973_v10 = vld [vmem:[#allocation12_spill] sm:$0xff]  ;;  %v6975_v56 = vld [vmem:[#allocation18_spill] sm:$0xff] }
 0x1d9   :  { %v4677_v17 = vpop.eup %4676  ;;  %v6132_v20 = vpop.permute.xlu0 %2584 }
 0x1da   :  { %v4679_v8 = vpop.eup %4678  ;;  %v2743_v25 = vadd.f32 %v6972_v50, %v2261_v38  ;;  %4083 = vmatprep.subr.bf16.mxu1 %v4677_v17  ;;  %v6134_v2 = vpop.permute.xlu1 %2589 }
 0x1db   :  { %4084 = vmatpush3.bf16.msra.mxu1 %v4679_v8 }
 0x1dc   :  { %v2791_v40 = vpack.c.bf16 %v2743_v25, %v2742_v41 }
 0x1dd   :  { %v2265_v7 = vpop.f32.mrb[128].mxu0  ;;  %v2048_v3 = vpop.f32.mrb[100].mxu1 }
 0x1de   :  { %4684 = vtanh.bf16 %v2791_v40  ;;  %v2266_v13 = vadd.f32 %v2265_v7, %v5988_v19  ;;  %v2267_v12 = vpop.f32.mrb[129].mxu0  ;;  %v6141_v54 = vadd.f32 %v6973_v10, %v2048_v3  ;;  %v2050_v27 = vpop.f32.mrb[101].mxu1  ;;  %v6976_v40 = vld [vmem:[#allocation20_spill] sm:$0xff] }
 0x1df   :  { %4686 = vtanh.bf16 %v2783_v39  ;;  %v2268_v51 = vpop.f32.mrb[130].mxu0  ;;  %v2051_v47 = vpop.f32.mrb[102].mxu1  ;;  %v4618_v10 = vld [vmem:[%s6911_s6] ss:$16 sps:$4 sm:$0xff]  }
 0x1e0   :  { %v2269_v49 = vadd.f32 %v2268_v51, %v5992_v5  ;;  %v2270_v60 = vpop.f32.mrb[131].mxu0  ;;  %v6145_v46 = vadd.f32 %v6974_v14, %v2051_v47  ;;  %v2053_v11 = vpop.f32.mrb[103].mxu1  ;;  %v6148_v30 = vadd.f32 %v6027_v58, %v2266_v13 }
 0x1e1   :  { %v4681_v62 = vpop.eup %4680  ;;  %v6153_v48 = vpop.permute.xlu0 %2674 }
 0x1e2   :  { %v4683_v19 = vpop.eup %4682  ;;  %v6151_v57 = vadd.f32 %v6029_v35, %v2269_v49  ;;  %4085 = vmatprep.subr.bf16.mxu1 %v4681_v62  ;;  %v6157_v39 = vpop.permute.xlu1 %2679  ;;  %v6977_v62 = vld [vmem:[#allocation17_spill] sm:$0xff] }
 0x1e3   :  { %4086 = vmatpush3.bf16.msra.mxu1 %v4683_v19 }
 0x1e4   :  { %v2792_v5 = vpack.c.bf16 %v6151_v57, %v6148_v30 }
 0x1e5   :  { %v2273_v33 = vpop.f32.mrb[132].mxu0  ;;  %v2056_v38 = vpop.f32.mrb[104].mxu1 }
 0x1e6   :  { %v2274_v45 = vadd.f32 %v2273_v33, %v6002_v4  ;;  %v2275_v17 = vpop.f32.mrb[133].mxu0  ;;  %v6161_v58 = vadd.f32 %v2056_v38, %v6975_v56  ;;  %v2058_v36 = vpop.f32.mrb[105].mxu1 }
 0x1e7   :  { %v2276_v35 = vpop.f32.mrb[134].mxu0  ;;  %v2059_v8 = vpop.f32.mrb[106].mxu1  ;;  %v6978_v17 = vld [vmem:[#allocation19_spill] sm:$0xff] }
 0x1e8   :  { %v2277_v41 = vadd.f32 %v2276_v35, %v6006_v32  ;;  %v2278_v50 = vpop.f32.mrb[135].mxu0  ;;  %v6165_v7 = vadd.f32 %v2059_v8, %v6976_v40  ;;  %v2061_v3 = vpop.f32.mrb[107].mxu1  ;;  %v6168_v12 = vadd.f32 %v6064_v43, %v2274_v45  ;;  %v4623_v32 = vld [vmem:[%s6911_s6 + $0xc] ss:$16 sps:$4 sm:$0xff]  }
 0x1e9   :  { %v4685_v25 = vpop.eup %4684  ;;  %v2595_v27 = vpop.permute.xlu0 %2594 }
 0x1ea   :  { %v4687_v13 = vpop.eup %4686  ;;  %v6171_v4 = vadd.f32 %v6066_v37, %v2277_v41  ;;  %4087 = vmatprep.subr.bf16.mxu1 %v4685_v25  ;;  %v2600_v47 = vpop.permute.xlu1 %2599 }
 0x1eb   :  { %4088 = vmatpush3.bf16.msra.mxu1 %v4687_v13  ;;  %v6979_v13 = vld [vmem:[#allocation24_spill] sm:$0xff] }
 0x1ed   :  { %v2281_v43 = vpop.f32.mrb[136].mxu0  ;;  %v2064_v49 = vpop.f32.mrb[108].mxu1 }
 0x1ee   :  { %v2282_v37 = vadd.f32 %v2281_v43, %v6019_v28  ;;  %v2283_v60 = vpop.f32.mrb[137].mxu0  ;;  %2893 = vmatmul.mubr.bf16.vlgmr.msra.gmra.mrb[128].mxu1 %v4618_v10  ;;  %v6183_v14 = vadd.f32 %v6977_v62, %v2064_v49  ;;  %v2066_v11 = vpop.f32.mrb[109].mxu1 }
 0x1ef   :  { %v2284_v19 = vpop.f32.mrb[138].mxu0  ;;  %2933 = vmatprep.mubr.bf16.mxu1 %v4623_v32  ;;  %v2067_v33 = vpop.f32.mrb[110].mxu1 }
 0x1f0   :  { %v2285_v38 = vadd.f32 %v2284_v19, %v6023_v55  ;;  %v2286_v45 = vpop.f32.mrb[139].mxu0  ;;  %v6187_v56 = vadd.f32 %v6978_v17, %v2067_v33  ;;  %v2069_v36 = vpop.f32.mrb[111].mxu1  ;;  %v6190_v35 = vadd.f32 %v6098_v31, %v2282_v37  ;;  %v6980_v37 = vld [vmem:[#allocation26_spill] sm:$0xff] }
 0x1f1   :  { %v6195_v8 = vpop.permute.xlu0 %2684  ;;  %v6199_v50 = vpop.permute.xlu1 %2689 }
 0x1f2   :  { %v6193_v28 = vadd.f32 %v6100_v44, %v2285_v38 }
 0x1f5   :  { %v2289_v25 = vpop.f32.mrb[140].mxu0  ;;  %v2072_v55 = vpop.f32.mrb[112].mxu1 }
 0x1f6   :  { %v2290_v40 = vadd.f32 %v2289_v25, %v6036_v16  ;;  %v2291_v3 = vpop.f32.mrb[141].mxu0  ;;  %v6203_v10 = vadd.f32 %v2072_v55, %v6979_v13  ;;  %v2074_v31 = vpop.f32.mrb[113].mxu1  ;;  %v6981_v25 = vld [vmem:[#allocation22_spill] sm:$0xff] }
 0x1f7   :  { %v2292_v32 = vpop.f32.mrb[142].mxu0  ;;  %v2075_v43 = vpop.f32.mrb[114].mxu1  ;;  %v6982_v31 = vld [vmem:[#allocation25_spill] sm:$0xff] }
 0x1f8   :  { %v2293_v44 = vadd.f32 %v2292_v32, %v6040_v42  ;;  %v2294_v49 = vpop.f32.mrb[143].mxu0  ;;  %v6207_v60 = vadd.f32 %v2075_v43, %v6980_v37  ;;  %v2077_v62 = vpop.f32.mrb[115].mxu1  ;;  %v6210_v11 = vadd.f32 %v6132_v20, %v2290_v40 }
 0x1f9   :  { %v2605_v16 = vpop.permute.xlu0 %2604  ;;  %v2610_v38 = vpop.permute.xlu1 %2609 }
 0x1fa   :  { %v6213_v19 = vadd.f32 %v6134_v2, %v2293_v44 }
 0x1fd   :  { %v2297_v45 = vpop.f32.mrb[144].mxu0  ;;  %v2080_v17 = vpop.f32.mrb[116].mxu1 }
 0x1fe   :  { %v2298_v42 = vadd.f32 %v2297_v45, %v6056_v1  ;;  %v2299_v36 = vpop.f32.mrb[145].mxu0  ;;  %v6219_v55 = vadd.f32 %v6981_v25, %v2080_v17  ;;  %v2082_v3 = vpop.f32.mrb[117].mxu1  ;;  %v6983_v25 = vld [vmem:[#allocation28_spill] sm:$0xff] }
 0x1ff   :  { %v2300_v13 = vpop.f32.mrb[146].mxu0  ;;  %v2083_v20 = vpop.f32.mrb[118].mxu1 }
 0x200   :  { %v2301_v40 = vadd.f32 %v2300_v13, %v6060_v59  ;;  %v2302_v2 = vpop.f32.mrb[147].mxu0  ;;  %v6223_v32 = vadd.f32 %v6982_v31, %v2083_v20  ;;  %v2085_v43 = vpop.f32.mrb[119].mxu1  ;;  %v6225_v44 = vadd.f32 %v2595_v27, %v2298_v42 }
 0x201   :  { %v6229_v37 = vpop.permute.xlu0 %2694  ;;  %v6233_v62 = vpop.permute.xlu1 %2699 }
 0x202   :  { %v6227_v49 = vadd.f32 %v2600_v47, %v2301_v40  ;;  %v6984_v40 = vld [vmem:[#allocation30_spill] sm:$0xff] }
 0x205   :  { %v2305_v45 = vpop.f32.mrb[148].mxu0  ;;  %v2088_v17 = vpop.f32.mrb[120].mxu1 }
 0x206   :  { %v2306_v59 = vadd.f32 %v2305_v45, %v6073_v63  ;;  %v2307_v36 = vpop.f32.mrb[149].mxu0  ;;  %v6237_v3 = vadd.f32 %v2088_v17, %v6983_v25  ;;  %v2090_v13 = vpop.f32.mrb[121].mxu1 }
 0x207   :  { %v2308_v27 = vpop.f32.mrb[150].mxu0  ;;  %v2091_v42 = vpop.f32.mrb[122].mxu1 }
 0x208   :  { %v2309_v47 = vadd.f32 %v2308_v27, %v6077_v15  ;;  %v2310_v20 = vpop.f32.mrb[151].mxu0  ;;  %v6241_v2 = vadd.f32 %v2091_v42, %v6984_v40  ;;  %v2093_v31 = vpop.f32.mrb[123].mxu1  ;;  %v6243_v43 = vadd.f32 %v2605_v16, %v2306_v59  ;;  %v6985_v15 = vld [vmem:[#allocation27_spill] sm:$0xff]  ;;  %v6986_v59 = vld [vmem:[#allocation29_spill] sm:$0xff] }
 0x209   :  { %v2615_v33 = vpop.permute.xlu0 %2614  ;;  %v2620_v45 = vpop.permute.xlu1 %2619 }
 0x20a   :  { %v6245_v1 = vadd.f32 %v2610_v38, %v2309_v47 }
 0x20d   :  { %v2313_v17 = vpop.f32.mrb[152].mxu0  ;;  %v2096_v36 = vpop.f32.mrb[124].mxu1 }
 0x20e   :  { %v2314_v25 = vadd.f32 %v2313_v17, %v6090_v18  ;;  %v2315_v13 = vpop.f32.mrb[153].mxu0  ;;  %v6251_v27 = vadd.f32 %v6985_v15, %v2096_v36  ;;  %v2098_v42 = vpop.f32.mrb[125].mxu1 }
 0x20f   :  { %v2316_v20 = vpop.f32.mrb[154].mxu0  ;;  %v2099_v40 = vpop.f32.mrb[126].mxu1 }
 0x210   :  { %v2317_v16 = vadd.f32 %v2316_v20, %v6094_v29  ;;  %v2318_v38 = vpop.f32.mrb[155].mxu0  ;;  %v6255_v47 = vadd.f32 %v6986_v59, %v2099_v40  ;;  %v2101_v31 = vpop.f32.mrb[127].mxu1  ;;  %v6257_v63 = vadd.f32 %v2615_v33, %v2314_v25 }
 0x211   :  { %v6261_v51 = vpop.permute.xlu0 %2704  ;;  %v6263_v18 = vpop.permute.xlu1 %2709 }
 0x212   :  { %v6259_v41 = vadd.f32 %v2620_v45, %v2317_v16 }
 0x215   :  { %v2321_v36 = vpop.f32.mrb[156].mxu0  ;;  %v2625_v40 = vpop.permute.xlu0 %2624 }
 0x216   :  { %v2322_v13 = vadd.f32 %v2321_v36, %v6107_v9  ;;  %v2323_v29 = vpop.f32.mrb[157].mxu0  ;;  %v2630_v33 = vpop.permute.xlu1 %2629 }
 0x217   :  { %v2324_v15 = vpop.f32.mrb[158].mxu0 }
 0x218   :  { %v2325_v42 = vadd.f32 %v2324_v15, %v6111_v23  ;;  %v2326_v20 = vpop.f32.mrb[159].mxu0  ;;  %v6269_v25 = vadd.f32 %v2625_v40, %v2322_v13 }
 0x21a   :  { %v6271_v45 = vadd.f32 %v2630_v33, %v2325_v42 }
 0x21c   :  { %v2799_v16 = vpack.c.bf16 %v6271_v45, %v6269_v25  ;;  %v314_v45 = vld [vmem:[%s6912_s7 + $0xc0] sm:$0xff] }
 0x21d   :  { %v2329_v38 = vpop.f32.mrb[160].mxu0 }
 0x21e   :  { %v2330_v59 = vadd.f32 %v2329_v38, %v6124_v21  ;;  %v2331_v31 = vpop.f32.mrb[161].mxu0 }
 0x21f   :  { %v2332_v17 = vpop.f32.mrb[162].mxu0 }
 0x220   :  { %v2333_v9 = vadd.f32 %v2332_v17, %v6128_v6  ;;  %v2334_v36 = vpop.f32.mrb[163].mxu0  ;;  %v2760_v23 = vadd.f32 %v6010_v34, %v2330_v59 }
 0x222   :  { %v2761_v29 = vadd.f32 %v6012_v0, %v2333_v9 }
 0x224   :  { %v2800_v15 = vpack.c.bf16 %v2761_v29, %v2760_v23 }
 0x225   :  { %v2337_v13 = vpop.f32.mrb[164].mxu0 }
 0x226   :  { %4688 = vtanh.bf16 %v2800_v15  ;;  %v2338_v42 = vadd.f32 %v2337_v13, %v6141_v54  ;;  %v2339_v20 = vpop.f32.mrb[165].mxu0  ;;  %v6987_v54 = vpack.c.bf16 %v6171_v4, %v6168_v12  ;;  %v6988_v12 = vpack.c.bf16 %v6193_v28, %v6190_v35 }
 0x227   :  { %4690 = vtanh.bf16 %v2792_v5  ;;  %v2340_v21 = vpop.f32.mrb[166].mxu0  ;;  %v6989_v35 = vpack.c.bf16 %v6213_v19, %v6210_v11  ;;  %v6990_v11 = vpack.c.bf16 %v6227_v49, %v6225_v44  ;;  %v6991_v44 = vpack.c.bf16 %v6245_v1, %v6243_v43 }
 0x228   :  { %v2341_v40 = vadd.f32 %v2340_v21, %v6145_v46  ;;  %v2342_v33 = vpop.f32.mrb[167].mxu0  ;;  %v2762_v6 = vadd.f32 %v6047_v61, %v2338_v42  ;;  %v6992_v1 = vpack.c.bf16 %v6259_v41, %v6257_v63 }
 0x22a   :  { %v2763_v34 = vadd.f32 %v6049_v53, %v2341_v40 }
 0x22c   :  { %v2801_v17 = vpack.c.bf16 %v2763_v34, %v2762_v6 }
 0x22d   :  { %v2345_v0 = vpop.f32.mrb[168].mxu0 }
 0x22e   :  { %4692 = vtanh.bf16 %v2801_v17  ;;  %v2346_v38 = vadd.f32 %v2345_v0, %v6161_v58  ;;  %v2347_v59 = vpop.f32.mrb[169].mxu0 }
 0x22f   :  { %4694 = vtanh.bf16 %v6987_v54  ;;  %v2348_v30 = vpop.f32.mrb[170].mxu0 }
 0x230   :  { %v2349_v57 = vadd.f32 %v2348_v30, %v6165_v7  ;;  %v2350_v5 = vpop.f32.mrb[171].mxu0  ;;  %v2764_v61 = vadd.f32 %v6081_v52, %v2346_v38 }
 0x231   :  { %v4689_v46 = vpop.eup %4688 }
 0x232   :  { %v4691_v31 = vpop.eup %4690  ;;  %v2765_v53 = vadd.f32 %v6083_v24, %v2349_v57  ;;  %4095 = vmatprep.subr.bf16.mxu1 %v4689_v46 }
 0x233   :  { %4096 = vmatpush3.bf16.msra.mxu1 %v4691_v31 }
 0x234   :  { %v2802_v9 = vpack.c.bf16 %v2765_v53, %v2764_v61 }
 0x235   :  { %v2353_v36 = vpop.f32.mrb[172].mxu0 }
 0x236   :  { %4696 = vtanh.bf16 %v2802_v9  ;;  %v2354_v58 = vadd.f32 %v2353_v36, %v6183_v14  ;;  %v2355_v23 = vpop.f32.mrb[173].mxu0 }
 0x237   :  { %4698 = vtanh.bf16 %v6988_v12  ;;  %v2356_v7 = vpop.f32.mrb[174].mxu0 }
 0x238   :  { %v2357_v4 = vadd.f32 %v2356_v7, %v6187_v56  ;;  %v2358_v29 = vpop.f32.mrb[175].mxu0  ;;  %v2766_v24 = vadd.f32 %v6115_v26, %v2354_v58 }
 0x239   :  { %v4693_v15 = vpop.eup %4692 }
 0x23a   :  { %v4695_v52 = vpop.eup %4694  ;;  %v2767_v13 = vadd.f32 %v6117_v22, %v2357_v4  ;;  %4097 = vmatprep.subr.bf16.mxu1 %v4693_v15 }
 0x23b   :  { %4098 = vmatpush3.bf16.msra.mxu1 %v4695_v52 }
 0x23c   :  { %v2803_v42 = vpack.c.bf16 %v2767_v13, %v2766_v24 }
 0x23d   :  { %v2361_v20 = vpop.f32.mrb[176].mxu0 }
 0x23e   :  { %4700 = vtanh.bf16 %v2803_v42  ;;  %v2362_v14 = vadd.f32 %v2361_v20, %v6203_v10  ;;  %v2363_v21 = vpop.f32.mrb[177].mxu0  ;;  %v422_v42 = vld [vmem:[%s6913_s2] sm:$0xff] }
 0x23f   :  { %4702 = vtanh.bf16 %v6989_v35  ;;  %v2364_v56 = vpop.f32.mrb[178].mxu0  ;;  %v423_v21 = vld [vmem:[%s6913_s2 + $0x8] sm:$0xff]  ;;  %vm2942_vm2 = vcmp.eq.f32.partialorder %v422_v42, 0.0  ;;  %v310_v42 = vld [vmem:[%s6912_s7 + $0xa0] sm:$0xff] }
 0x240   :  { %v2365_v28 = vadd.f32 %v2364_v56, %v6207_v60  ;;  %v2366_v40 = vpop.f32.mrb[179].mxu0  ;;  %v2768_v22 = vadd.f32 %v6153_v48, %v2362_v14  ;;  %vm2943_vm3 = vcmp.eq.f32.partialorder %v423_v21, 0.0  ;;  %v336_v21 = vld [vmem:[%s6912_s7 + $0x170] sm:$0xff] }
 0x241   :  { %v4697_v33 = vpop.eup %4696 }
 0x242   :  { %v4699_v26 = vpop.eup %4698  ;;  %v2769_v6 = vadd.f32 %v6157_v39, %v2365_v28  ;;  %4099 = vmatprep.subr.bf16.mxu1 %v4697_v33 }
 0x243   :  { %4100 = vmatpush3.bf16.msra.mxu1 %v4699_v26 }
 0x244   :  { %v2804_v34 = vpack.c.bf16 %v2769_v6, %v2768_v22 }
 0x245   :  { %v2369_v17 = vpop.f32.mrb[180].mxu0 }
 0x246   :  { %4704 = vtanh.bf16 %v2804_v34  ;;  %v2370_v10 = vadd.f32 %v2369_v17, %v6219_v55  ;;  %v2371_v0 = vpop.f32.mrb[181].mxu0 }
 0x247   :  { %4706 = vtanh.bf16 %v6990_v11  ;;  %v2372_v60 = vpop.f32.mrb[182].mxu0 }
 0x248   :  { %v2373_v19 = vadd.f32 %v2372_v60, %v6223_v32  ;;  %v2374_v38 = vpop.f32.mrb[183].mxu0  ;;  %v2770_v39 = vadd.f32 %v6195_v8, %v2370_v10 }
 0x249   :  { %v4701_v59 = vpop.eup %4700 }
 0x24a   :  { %v4703_v48 = vpop.eup %4702  ;;  %v2771_v54 = vadd.f32 %v6199_v50, %v2373_v19  ;;  %4101 = vmatprep.subr.bf16.mxu1 %v4701_v59 }
 0x24b   :  { %4102 = vmatpush3.bf16.msra.mxu1 %v4703_v48 }
 0x24c   :  { %v2805_v30 = vpack.c.bf16 %v2771_v54, %v2770_v39 }
 0x24d   :  { %v2377_v57 = vpop.f32.mrb[184].mxu0 }
 0x24e   :  { %4708 = vtanh.bf16 %v2805_v30  ;;  %v2378_v55 = vadd.f32 %v2377_v57, %v6237_v3  ;;  %v2379_v5 = vpop.f32.mrb[185].mxu0  ;;  %v315_v57 = vld [vmem:[%s6912_s7 + $0xc8] sm:$0xff] }
 0x24f   :  { %4710 = vtanh.bf16 %v6991_v44  ;;  %v2380_v32 = vpop.f32.mrb[186].mxu0  ;;  %v316_v5 = vld [vmem:[%s6912_s7 + $0xd0] sm:$0xff] }
 0x250   :  { %v2381_v49 = vadd.f32 %v2380_v32, %v6241_v2  ;;  %v2382_v46 = vpop.f32.mrb[187].mxu0  ;;  %v2772_v50 = vadd.f32 %v6229_v37, %v2378_v55  ;;  %v291_v55 = vld [vmem:[%s6912_s7 + $0x8] sm:$0xff]  ;;  %v292_v44 = vld [vmem:[%s6912_s7 + $0x10] sm:$0xff]  ;;  %v317_v32 = vld [vmem:[%s6912_s7 + $0xd8] sm:$0xff] }
 0x251   :  { %v4705_v31 = vpop.eup %4704  ;;  %v318_v46 = vld [vmem:[%s6912_s7 + $0xe0] sm:$0xff] }
 0x252   :  { %v4707_v8 = vpop.eup %4706  ;;  %v2773_v61 = vadd.f32 %v6233_v62, %v2381_v49  ;;  %4103 = vmatprep.subr.bf16.mxu1 %v4705_v31  ;;  %v293_v49 = vld [vmem:[%s6912_s7 + $0x18] sm:$0xff]  ;;  %v294_v31 = vld [vmem:[%s6912_s7 + $0x20] sm:$0xff] }
 0x253   :  { %4104 = vmatpush3.bf16.msra.mxu1 %v4707_v8  ;;  %v319_v8 = vld [vmem:[%s6912_s7 + $0xe8] sm:$0xff] }
 0x254   :  { %v2806_v53 = vpack.c.bf16 %v2773_v61, %v2772_v50  ;;  %v295_v50 = vld [vmem:[%s6912_s7 + $0x28] sm:$0xff]  ;;  %v320_v61 = vld [vmem:[%s6912_s7 + $0xf0] sm:$0xff] }
 0x255   :  { %v2385_v9 = vpop.f32.mrb[188].mxu0 }
 0x256   :  { %4712 = vtanh.bf16 %v2806_v53  ;;  %v2386_v3 = vadd.f32 %v2385_v9, %v6251_v27  ;;  %v2387_v36 = vpop.f32.mrb[189].mxu0  ;;  %v296_v53 = vld [vmem:[%s6912_s7 + $0x30] sm:$0xff]  ;;  %v321_v9 = vld [vmem:[%s6912_s7 + $0xf8] sm:$0xff] }
 0x257   :  { %4714 = vtanh.bf16 %v6992_v1  ;;  %v2388_v2 = vpop.f32.mrb[190].mxu0  ;;  %v322_v36 = vld [vmem:[%s6912_s7 + $0x100] sm:$0xff] }
 0x258   :  { %v2389_v43 = vadd.f32 %v2388_v2, %v6255_v47  ;;  %v2390_v58 = vpop.f32.mrb[191].mxu0  ;;  %v2774_v62 = vadd.f32 %v6261_v51, %v2386_v3  ;;  %v4621_v51 = vld [vmem:[%s6911_s6 + $0x8] ss:$16 sps:$4 sm:$0xff]   ;;  %v298_v1 = vld [vmem:[%s6912_s7 + $0x40] sm:$0xff] }
 0x259   :  { %v4709_v23 = vpop.eup %4708  ;;  %v297_v3 = vld [vmem:[%s6912_s7 + $0x38] sm:$0xff]  ;;  %v323_v2 = vld [vmem:[%s6912_s7 + $0x108] sm:$0xff]  ;;  %v324_v58 = vld [vmem:[%s6912_s7 + $0x110] sm:$0xff] }
 0x25a   :  { %v4711_v37 = vpop.eup %4710  ;;  %v2775_v12 = vadd.f32 %v6263_v18, %v2389_v43  ;;  %4105 = vmatprep.subr.bf16.mxu1 %v4709_v23  ;;  %v299_v43 = vld [vmem:[%s6912_s7 + $0x48] sm:$0xff]  ;;  %v300_v23 = vld [vmem:[%s6912_s7 + $0x50] sm:$0xff] }
 0x25b   :  { %4106 = vmatpush3.bf16.msra.mxu1 %v4711_v37  ;;  %v325_v37 = vld [vmem:[%s6912_s7 + $0x118] sm:$0xff] }
 0x25c   :  { %v2807_v7 = vpack.c.bf16 %v2775_v12, %v2774_v62  ;;  %v301_v62 = vld [vmem:[%s6912_s7 + $0x58] sm:$0xff]  ;;  %v326_v12 = vld [vmem:[%s6912_s7 + $0x120] sm:$0xff] }
 0x25e   :  { %4716 = vtanh.bf16 %v2807_v7  ;;  %v302_v7 = vld [vmem:[%s6912_s7 + $0x60] sm:$0xff] }
 0x25f   :  { %4718 = vtanh.bf16 %v2799_v16  ;;  %v290_v16 = vld [vmem:[%s6912_s7] sm:$0xff] }
 0x260   :  { %4255 = vmatprep.mubr.msk.f32.mxu0 %vm2966_vm1, %v290_v16  ;;  %v333_v16 = vld [vmem:[%s6912_s7 + $0x158] sm:$0xff] }
 0x261   :  { %v4713_v41 = vpop.eup %4712 }
 0x262   :  { %v4715_v63 = vpop.eup %4714  ;;  %4107 = vmatprep.subr.bf16.mxu1 %v4713_v41  ;;  %v327_v41 = vld [vmem:[%s6912_s7 + $0x128] sm:$0xff] }
 0x263   :  { %4108 = vmatpush3.bf16.msra.mxu1 %v4715_v63  ;;  %v303_v63 = vld [vmem:[%s6912_s7 + $0x68] sm:$0xff] }
 0x269   :  { %v4717_v27 = vpop.eup %4716 }
 0x26a   :  { %v4719_v47 = vpop.eup %4718  ;;  %4109 = vmatprep.subr.bf16.mxu1 %v4717_v27  ;;  %v328_v27 = vld [vmem:[%s6912_s7 + $0x130] sm:$0xff] }
 0x26b   :  { %4110 = vmatpush3.bf16.msra.mxu1 %v4719_v47  ;;  %v304_v47 = vld [vmem:[%s6912_s7 + $0x70] sm:$0xff] }
 0x26e   :  { %2934 = vmatmul.mubr.bf16.vlgmr.msra.gmra.mrb[132].mxu1 %v4621_v51  ;;  %v329_v51 = vld [vmem:[%s6912_s7 + $0x138] sm:$0xff] }
 0x26f   :  { %4291 = vmatprep.mubr.msk.f32.mxu1 %vm2966_vm1, %v314_v45  ;;  %v308_v45 = vld [vmem:[%s6912_s7 + $0x90] sm:$0xff] }
 0x2c1   :  { %v4089_v18 = vpop.f32.mrb[128].mxu1 }
 0x2c2   :  { %v4090_v4 = vpop.f32.mrb[129].mxu1 }
 0x2c3   :  { %v4091_v29 = vadd.f32 %v4090_v4, %v4089_v18  ;;  %v4092_v15 = vpop.f32.mrb[130].mxu1  ;;  %v305_v18 = vld [vmem:[%s6912_s7 + $0x78] sm:$0xff]  ;;  %v330_v4 = vld [vmem:[%s6912_s7 + $0x140] sm:$0xff] }
 0x2c4   :  { %v4093_v52 = vpop.f32.mrb[131].mxu1 }
 0x2c5   :  { %v4094_v25 = vadd.f32 %v4093_v52, %v4092_v15  ;;  %v331_v15 = vld [vmem:[%s6912_s7 + $0x148] sm:$0xff] }
 0x2c6   :  { %v307_v52 = vld [vmem:[%s6912_s7 + $0x88] sm:$0xff] }
 0x341   :  { %v4111_v24 = vpop.f32.mrb[132].mxu1 }
 0x342   :  { %v4112_v13 = vpop.f32.mrb[133].mxu1 }
 0x343   :  { %v4113_v20 = vadd.f32 %v4112_v13, %v4111_v24  ;;  %v4114_v14 = vpop.f32.mrb[134].mxu1  ;;  %v309_v24 = vld [vmem:[%s6912_s7 + $0x98] sm:$0xff]  ;;  %v334_v13 = vld [vmem:[%s6912_s7 + $0x160] sm:$0xff] }
 0x344   :  { %v4115_v35 = vpop.f32.mrb[135].mxu1 }
 0x345   :  { %v2936_v56 = vadd.f32 %v4113_v20, %v4091_v29  ;;  %v4116_v28 = vadd.f32 %v4115_v35, %v4114_v14  ;;  %v306_v29 = vld [vmem:[%s6912_s7 + $0x80] sm:$0xff]  ;;  %v335_v20 = vld [vmem:[%s6912_s7 + $0x168] sm:$0xff]  ;;  %v312_v35 = vld [vmem:[%s6912_s7 + $0xb0] sm:$0xff] }
 0x346   :  { %v311_v14 = vld [vmem:[%s6912_s7 + $0xa8] sm:$0xff] }
 0x347   :  { %v2939_v40 = vadd.f32 %v4116_v28, %v4094_v25  ;;  %v2944_v33 = vsel %vm2942_vm2, -1e+09, %v2936_v56  ;;  %v332_v25 = vld [vmem:[%s6912_s7 + $0x150] sm:$0xff]  ;;  %v337_v56 = vld [vmem:[%s6912_s7 + $0x178] sm:$0xff] }
 0x348   :  { %v313_v28 = vld [vmem:[%s6912_s7 + $0xb8] sm:$0xff] }
 0x349   :  { %v2945_v26 = vsel %vm2943_vm3, -1e+09, %v2939_v40  ;;  %v338_v40 = vld [vmem:[%s6912_s7 + $0x180] sm:$0xff] }
 0x34a   :  { %v2946_v22 = vmax.f32 %v2944_v33, %v2945_v26 }
 0x34c   :  { %v2947_v6 = vrot.slane %v2946_v22, 4 }
 0x34e   :  { %v2948_v34 = vmax.f32 %v2946_v22, %v2947_v6  ;;  %v341_v22 = vld [vmem:[%s6912_s7 + $0x198] sm:$0xff]  ;;  %v342_v6 = vld [vmem:[%s6912_s7 + $0x1a0] sm:$0xff] }
 0x350   :  { %v2949_v17 = vrot.slane %v2948_v34, 2 }
 0x352   :  { %v2950_v10 = vmax.f32 %v2948_v34, %v2949_v17  ;;  %v343_v34 = vld [vmem:[%s6912_s7 + $0x1a8] sm:$0xff]  ;;  %v344_v17 = vld [vmem:[%s6912_s7 + $0x1b0] sm:$0xff] }
 0x354   :  { %v2951_v0 = vrot.slane %v2950_v10, 1 }
 0x356   :  { %v2952_v11 = vmax.f32 %v2950_v10, %v2951_v0  ;;  %v345_v10 = vld [vmem:[%s6912_s7 + $0x1b8] sm:$0xff]  ;;  %v346_v0 = vld [vmem:[%s6912_s7 + $0x1c0] sm:$0xff] }
 0x358   :  { %v2953_v60 = vsub.f32 %v2944_v33, %v2952_v11  ;;  %v2954_v19 = vsub.f32 %v2945_v26, %v2952_v11  ;;  %v339_v33 = vld [vmem:[%s6912_s7 + $0x188] sm:$0xff]  ;;  %v340_v26 = vld [vmem:[%s6912_s7 + $0x190] sm:$0xff] }
 0x359   :  { %v347_v11 = vld [vmem:[%s6912_s7 + $0x1c8] sm:$0xff] }
 0x35a   :  { %v2955_v38 = vmul.f32 1.442695, %v2953_v60  ;;  %v2957_v59 = vmul.f32 1.442695, %v2954_v19  ;;  %v348_v60 = vld [vmem:[%s6912_s7 + $0x1d0] sm:$0xff]  ;;  %v349_v19 = vld [vmem:[%s6912_s7 + $0x1d8] sm:$0xff] }
 0x35c   :  { %4720 = vpow2.f32 %v2955_v38  ;;  %v350_v38 = vld [vmem:[%s6912_s7 + $0x1e0] sm:$0xff] }
 0x35d   :  { %4722 = vpow2.f32 %v2957_v59  ;;  %v351_v59 = vld [vmem:[%s6912_s7 + $0x1e8] sm:$0xff] }
 0x366   :  { %v4721_v48 = vpop.eup %4720 }
 0x367   :  { %v4723_v39 = vpop.eup %4722 }
 0x368   :  { %v6348_v54 = vadd.f32 %v4723_v39, %v4721_v48  ;;  %v4351_v30 = vpack.c.bf16 %v4723_v39, %v4721_v48  ;;  %v352_v48 = vld [vmem:[%s6912_s7 + $0x1f0] sm:$0xff]  ;;  %v353_v39 = vld [vmem:[%s6912_s7 + $0x1f8] sm:$0xff] }
 0x36a   :  { %4352 = vmatprep.subr.bf16.mxu0 %v4351_v30  ;;  %4355 = vmatprep.subr.bf16.mxu1 %v4351_v30 }
 0x36b   :  { %4354 = vmatpush3.bf16.msra.mxu0 %v4351_v30  ;;  %4356 = vmatpush3.bf16.msra.mxu1 %v4351_v30 }
 0x36e   :  { %4292 = vmatmul.mubr.msk.f32.vlgmr.msra.gmra.mrb[136].mxu1 %vm2966_vm1, %v315_v57  ;;  %4256 = vmatmul.mubr.msk.f32.vlgmr.msra.gmra.mrb[192].mxu0 %vm2966_vm1, %v291_v55 }
 0x36f   :  { %4294 = vmatprep.mubr.msk.f32.mxu1 %vm2966_vm1, %v316_v5  ;;  %4258 = vmatprep.mubr.msk.f32.mxu0 %vm2966_vm1, %v292_v44  ;;  %v4726_v44 = vld [vmem:[%s6907_s0] sm:$0xff]  }
 0x372   :  { %4295 = vmatmul.mubr.msk.f32.gmra.mrb[138].mxu1 %vm2966_vm1, %v317_v32  ;;  %4259 = vmatmul.mubr.msk.f32.gmra.mrb[194].mxu0 %vm2966_vm1, %v293_v49  ;;  %v3545_v32 = vunpack.c.h.bf16 %v4726_v44  ;;  %v3544_v49 = vunpack.c.l.bf16 %v4726_v44 }
 0x373   :  { %4297 = vmatprep.mubr.msk.f32.mxu1 %vm2966_vm1, %v318_v46  ;;  %4261 = vmatprep.mubr.msk.f32.mxu0 %vm2966_vm1, %v294_v31 }
 0x376   :  { %4298 = vmatmul.mubr.msk.f32.gmra.mrb[140].mxu1 %vm2966_vm1, %v319_v8  ;;  %4262 = vmatmul.mubr.msk.f32.gmra.mrb[196].mxu0 %vm2966_vm1, %v295_v50  ;;  %v4727_v50 = vld [vmem:[%s6907_s0 + $0x10] sm:$0xff]  }
 0x377   :  { %4300 = vmatprep.mubr.msk.f32.mxu1 %vm2966_vm1, %v320_v61  ;;  %4264 = vmatprep.mubr.msk.f32.mxu0 %vm2966_vm1, %v296_v53  ;;  %v3549_v61 = vunpack.c.h.bf16 %v4727_v50 }
 0x37a   :  { %4301 = vmatmul.mubr.msk.f32.gmra.mrb[142].mxu1 %vm2966_vm1, %v321_v9  ;;  %4265 = vmatmul.mubr.msk.f32.gmra.mrb[198].mxu0 %vm2966_vm1, %v297_v3  ;;  %v3548_v9 = vunpack.c.l.bf16 %v4727_v50 }
 0x37b   :  { %4303 = vmatprep.mubr.msk.f32.mxu1 %vm2966_vm1, %v322_v36  ;;  %4267 = vmatprep.mubr.msk.f32.mxu0 %vm2966_vm1, %v298_v1  ;;  %v4728_v36 = vld [vmem:[%s6907_s0 + $0x8] sm:$0xff]  }
 0x37c   :  { %v3547_v1 = vunpack.c.h.bf16 %v4728_v36 }
 0x37e   :  { %4304 = vmatmul.mubr.msk.f32.gmra.mrb[144].mxu1 %vm2966_vm1, %v323_v2  ;;  %4268 = vmatmul.mubr.msk.f32.gmra.mrb[200].mxu0 %vm2966_vm1, %v299_v43  ;;  %v3546_v43 = vunpack.c.l.bf16 %v4728_v36 }
 0x37f   :  { %4306 = vmatprep.mubr.msk.f32.mxu1 %vm2966_vm1, %v324_v58  ;;  %4270 = vmatprep.mubr.msk.f32.mxu0 %vm2966_vm1, %v300_v23 }
 0x382   :  { %4307 = vmatmul.mubr.msk.f32.gmra.mrb[146].mxu1 %vm2966_vm1, %v325_v37  ;;  %4271 = vmatmul.mubr.msk.f32.gmra.mrb[202].mxu0 %vm2966_vm1, %v301_v62 }
 0x383   :  { %4309 = vmatprep.mubr.msk.f32.mxu1 %vm2966_vm1, %v326_v12  ;;  %4273 = vmatprep.mubr.msk.f32.mxu0 %vm2966_vm1, %v302_v7  ;;  %v4729_v12 = vld [vmem:[%s6907_s0 + $0x18] sm:$0xff]  }
 0x384   :  { %v3551_v7 = vunpack.c.h.bf16 %v4729_v12 }
 0x386   :  { %4310 = vmatmul.mubr.msk.f32.gmra.mrb[148].mxu1 %vm2966_vm1, %v327_v41  ;;  %4274 = vmatmul.mubr.msk.f32.gmra.mrb[204].mxu0 %vm2966_vm1, %v303_v63 }
 0x387   :  { %4312 = vmatprep.mubr.msk.f32.mxu1 %vm2966_vm1, %v328_v27  ;;  %4276 = vmatprep.mubr.msk.f32.mxu0 %vm2966_vm1, %v304_v47  ;;  %v3550_v27 = vunpack.c.l.bf16 %v4729_v12 }
 0x38a   :  { %4313 = vmatmul.mubr.msk.f32.gmra.mrb[150].mxu1 %vm2966_vm1, %v329_v51  ;;  %4277 = vmatmul.mubr.msk.f32.gmra.mrb[206].mxu0 %vm2966_vm1, %v305_v18 }
 0x38b   :  { %4315 = vmatprep.mubr.msk.f32.mxu1 %vm2966_vm1, %v330_v4  ;;  %4279 = vmatprep.mubr.msk.f32.mxu0 %vm2966_vm1, %v306_v29 }
 0x38e   :  { %4316 = vmatmul.mubr.msk.f32.gmra.mrb[152].mxu1 %vm2966_vm1, %v331_v15  ;;  %4280 = vmatmul.mubr.msk.f32.gmra.mrb[208].mxu0 %vm2966_vm1, %v307_v52 }
 0x38f   :  { %4318 = vmatprep.mubr.msk.f32.mxu1 %vm2966_vm1, %v332_v25  ;;  %4282 = vmatprep.mubr.msk.f32.mxu0 %vm2966_vm1, %v308_v45  ;;  %v4730_v45 = vld [vmem:[%s6907_s0 + $0x20] sm:$0xff]  }
 0x392   :  { %4319 = vmatmul.mubr.msk.f32.gmra.mrb[154].mxu1 %vm2966_vm1, %v333_v16  ;;  %4283 = vmatmul.mubr.msk.f32.gmra.mrb[210].mxu0 %vm2966_vm1, %v309_v24  ;;  %v3553_v16 = vunpack.c.h.bf16 %v4730_v45 }
 0x393   :  { %4321 = vmatprep.mubr.msk.f32.mxu1 %vm2966_vm1, %v334_v13  ;;  %4285 = vmatprep.mubr.msk.f32.mxu0 %vm2966_vm1, %v310_v42  ;;  %v3552_v42 = vunpack.c.l.bf16 %v4730_v45 }
 0x396   :  { %4322 = vmatmul.mubr.msk.f32.gmra.mrb[156].mxu1 %vm2966_vm1, %v335_v20  ;;  %4286 = vmatmul.mubr.msk.f32.gmra.mrb[212].mxu0 %vm2966_vm1, %v311_v14  ;;  %v2960_v14 = vrot.slane %v6348_v54, 4 }
 0x397   :  { %4324 = vmatprep.mubr.msk.f32.mxu1 %vm2966_vm1, %v336_v21  ;;  %4288 = vmatprep.mubr.msk.f32.mxu0 %vm2966_vm1, %v312_v35 }
 0x39a   :  { %4325 = vmatmul.mubr.msk.f32.gmra.mrb[158].mxu1 %vm2966_vm1, %v337_v56  ;;  %4289 = vmatmul.mubr.msk.f32.gmra.mrb[214].mxu0 %vm2966_vm1, %v313_v28 }
 0x39b   :  { %4327 = vmatprep.mubr.msk.f32.mxu1 %vm2966_vm1, %v338_v40 }
 0x39e   :  { %4328 = vmatmul.mubr.msk.f32.gmra.mrb[160].mxu1 %vm2966_vm1, %v339_v33  ;;  %v4731_v33 = vld [vmem:[%s6907_s0 + $0x28] sm:$0xff]  }
 0x39f   :  { %4330 = vmatprep.mubr.msk.f32.mxu1 %vm2966_vm1, %v340_v26  ;;  %v3555_v26 = vunpack.c.h.bf16 %v4731_v33 }
 0x3a2   :  { %4331 = vmatmul.mubr.msk.f32.gmra.mrb[162].mxu1 %vm2966_vm1, %v341_v22 }
 0x3a3   :  { %4333 = vmatprep.mubr.msk.f32.mxu1 %vm2966_vm1, %v342_v6 }
 0x3a6   :  { %4334 = vmatmul.mubr.msk.f32.gmra.mrb[164].mxu1 %vm2966_vm1, %v343_v34  ;;  %v3554_v34 = vunpack.c.l.bf16 %v4731_v33 }
 0x3a7   :  { %4336 = vmatprep.mubr.msk.f32.mxu1 %vm2966_vm1, %v344_v17 }
 0x3aa   :  { %4337 = vmatmul.mubr.msk.f32.gmra.mrb[166].mxu1 %vm2966_vm1, %v345_v10  ;;  %v2961_v10 = vadd.f32 %v2960_v14, %v6348_v54 }
 0x3ab   :  { %4339 = vmatprep.mubr.msk.f32.mxu1 %vm2966_vm1, %v346_v0 }
 0x3ae   :  { %4340 = vmatmul.mubr.msk.f32.gmra.mrb[168].mxu1 %vm2966_vm1, %v347_v11 }
 0x3af   :  { %4342 = vmatprep.mubr.msk.f32.mxu1 %vm2966_vm1, %v348_v60 }
 0x3b2   :  { %4343 = vmatmul.mubr.msk.f32.gmra.mrb[170].mxu1 %vm2966_vm1, %v349_v19 }
 0x3b3   :  { %4345 = vmatprep.mubr.msk.f32.mxu1 %vm2966_vm1, %v350_v38 }
 0x3b6   :  { %4346 = vmatmul.mubr.msk.f32.gmra.mrb[172].mxu1 %vm2966_vm1, %v351_v59  ;;  %v4732_v59 = vld [vmem:[%s6907_s0 + $0x30] sm:$0xff]  }
 0x3b7   :  { %4348 = vmatprep.mubr.msk.f32.mxu1 %vm2966_vm1, %v352_v48  ;;  %v3557_v48 = vunpack.c.h.bf16 %v4732_v59 }
 0x3ba   :  { %4349 = vmatmul.mubr.msk.f32.gmra.mrb[174].mxu1 %vm2966_vm1, %v353_v39 }
 0x441   :  { %v4257_v30 = vpop.f32.mrb[192].mxu0  ;;  %v6598_v57 = vpop.f32.mrb[136].mxu1 }
 0x442   :  { %v3225_v55 = vpop.f32.mrb[193].mxu0  ;;  %v6600_v5 = vpop.f32.mrb[137].mxu1  ;;  %v3609_v3 = vmul.f32 %v4257_v30, %v3545_v32  ;;  %v2962_v32 = vrot.slane %v2961_v10, 2 }
 0x443   :  { %v3608_v2 = vmul.f32 %v3544_v49, %v3225_v55  ;;  %v3556_v55 = vunpack.c.l.bf16 %v4732_v59  ;;  %v6700_v59 = vld [vmem:[%s6907_s0 + $0x80] sm:$0xff]  }
 0x445   :  { %v4260_v46 = vpop.f32.mrb[194].mxu0  ;;  %v6605_v31 = vpop.f32.mrb[138].mxu1 }
 0x446   :  { %v3235_v8 = vpop.f32.mrb[195].mxu0  ;;  %v6610_v53 = vpop.f32.mrb[139].mxu1  ;;  %v3611_v47 = vmul.f32 %v4260_v46, %v3547_v1 }
 0x447   :  { %v3610_v18 = vmul.f32 %v3546_v43, %v3235_v8  ;;  %v6652_v43 = vadd.f32 %v2962_v32, %v2961_v10 }
 0x449   :  { %v4263_v58 = vpop.f32.mrb[196].mxu0  ;;  %v6615_v23 = vpop.f32.mrb[140].mxu1 }
 0x44a   :  { %v3613_v37 = vmul.f32 %v4263_v58, %v3549_v61  ;;  %v3245_v62 = vpop.f32.mrb[197].mxu0  ;;  %v6620_v41 = vpop.f32.mrb[141].mxu1  ;;  %v4733_v61 = vld [vmem:[%s6907_s0 + $0x38] sm:$0xff]  }
 0x44b   :  { %v3612_v63 = vmul.f32 %v3548_v9, %v3245_v62  ;;  %v3559_v9 = vunpack.c.h.bf16 %v4733_v61  ;;  %v3558_v1 = vunpack.c.l.bf16 %v4733_v61  ;;  %v6716_v61 = vld [vmem:[%s6907_s0 + $0x90] sm:$0xff]  }
 0x44c   :  { %v3687_v51 = vadd.f32 %v3613_v37, %v3609_v3 }
 0x44d   :  { %v3672_v4 = vadd.f32 %v3612_v63, %v3608_v2  ;;  %v4266_v29 = vpop.f32.mrb[198].mxu0  ;;  %v6622_v15 = vpop.f32.mrb[142].mxu1  ;;  %v4734_v63 = vld [vmem:[%s6907_s0 + $0x40] sm:$0xff]  }
 0x44e   :  { %v3615_v52 = vmul.f32 %v4266_v29, %v3551_v7  ;;  %v3255_v25 = vpop.f32.mrb[199].mxu0  ;;  %v6627_v24 = vpop.f32.mrb[143].mxu1 }
 0x44f   :  { %v3614_v13 = vmul.f32 %v3550_v27, %v3255_v25  ;;  %v3561_v27 = vunpack.c.h.bf16 %v4734_v63 }
 0x450   :  { %v3717_v20 = vadd.f32 %v3615_v52, %v3611_v47  ;;  %v6665_v52 = vld [vmem:[%s6907_s0 + $0x60] sm:$0xff]  }
 0x451   :  { %v3702_v21 = vadd.f32 %v3614_v13, %v3610_v18  ;;  %v4269_v35 = vpop.f32.mrb[200].mxu0  ;;  %v6630_v56 = vpop.f32.mrb[144].mxu1  ;;  %v3560_v18 = vunpack.c.l.bf16 %v4734_v63  ;;  %v3569_v25 = vunpack.c.h.bf16 %v6665_v52  ;;  %v3568_v45 = vunpack.c.l.bf16 %v6665_v52 }
 0x452   :  { %v3617_v28 = vmul.f32 %v4269_v35, %v3553_v16  ;;  %v3265_v40 = vpop.f32.mrb[201].mxu0  ;;  %v6635_v22 = vpop.f32.mrb[145].mxu1 }
 0x453   :  { %v3616_v6 = vmul.f32 %v3552_v42, %v3265_v40  ;;  %v4737_v40 = vld [vmem:[%s6907_s0 + $0x48] sm:$0xff]  }
 0x454   :  { %v3688_v17 = vadd.f32 %v3687_v51, %v3617_v28  ;;  %v3563_v33 = vunpack.c.h.bf16 %v4737_v40 }
 0x455   :  { %v3673_v0 = vadd.f32 %v3672_v4, %v3616_v6  ;;  %v4272_v11 = vpop.f32.mrb[202].mxu0  ;;  %v6638_v60 = vpop.f32.mrb[146].mxu1  ;;  %v6686_v6 = vld [vmem:[%s6907_s0 + $0x70] sm:$0xff]  }
 0x456   :  { %v3619_v19 = vmul.f32 %v4272_v11, %v3555_v26  ;;  %v3275_v38 = vpop.f32.mrb[203].mxu0  ;;  %v6643_v39 = vpop.f32.mrb[147].mxu1  ;;  %v6693_v11 = vld [vmem:[%s6907_s0 + $0x78] sm:$0xff]  }
 0x457   :  { %v3618_v30 = vmul.f32 %v3554_v34, %v3275_v38  ;;  %v3573_v34 = vunpack.c.h.bf16 %v6686_v6 }
 0x458   :  { %v3718_v44 = vadd.f32 %v3717_v20, %v3619_v19  ;;  %v6674_v20 = vld [vmem:[%s6907_s0 + $0x68] sm:$0xff]   ;;  %v3575_v19 = vunpack.c.h.bf16 %v6693_v11 }
 0x459   :  { %v3703_v49 = vadd.f32 %v3702_v21, %v3618_v30  ;;  %v4275_v46 = vpop.f32.mrb[204].mxu0  ;;  %v6645_v54 = vpop.f32.mrb[148].mxu1  ;;  %v3571_v14 = vunpack.c.h.bf16 %v6674_v20  ;;  %v3570_v21 = vunpack.c.l.bf16 %v6674_v20 }
 0x45a   :  { %v3621_v8 = vmul.f32 %v4275_v46, %v3557_v48  ;;  %v3285_v50 = vpop.f32.mrb[205].mxu0  ;;  %v6650_v3 = vpop.f32.mrb[149].mxu1  ;;  %v3577_v48 = vunpack.c.h.bf16 %v6700_v59 }
 0x45b   :  { %v3620_v36 = vmul.f32 %v3556_v55, %v3285_v50  ;;  %v3576_v55 = vunpack.c.l.bf16 %v6700_v59 }
 0x45c   :  { %v3689_v2 = vadd.f32 %v3688_v17, %v3621_v8  ;;  %v3572_v17 = vunpack.c.l.bf16 %v6686_v6 }
 0x45d   :  { %v3674_v58 = vadd.f32 %v3673_v0, %v3620_v36  ;;  %v4278_v37 = vpop.f32.mrb[206].mxu0  ;;  %v6654_v62 = vpop.f32.mrb[150].mxu1  ;;  %v3562_v0 = vunpack.c.l.bf16 %v4737_v40  ;;  %v6763_v40 = vld [vmem:[%s6907_s0 + $0xb8] sm:$0xff]  }
 0x45e   :  { %v3623_v12 = vmul.f32 %v4278_v37, %v3559_v9  ;;  %v3295_v7 = vpop.f32.mrb[207].mxu0  ;;  %v6659_v47 = vpop.f32.mrb[151].mxu1  ;;  %v4743_v37 = vld [vmem:[%s6907_s0 + $0x50] sm:$0xff]  }
 0x45f   :  { %v3622_v51 = vmul.f32 %v3558_v1, %v3295_v7  ;;  %v6728_v7 = vld [vmem:[%s6907_s0 + $0x98] sm:$0xff]  }
 0x460   :  { %v3719_v4 = vadd.f32 %v3718_v44, %v3623_v12  ;;  %v6707_v44 = vld [vmem:[%s6907_s0 + $0x88] sm:$0xff]   ;;  %v3565_v12 = vunpack.c.h.bf16 %v4743_v37 }
 0x461   :  { %v3704_v16 = vadd.f32 %v3703_v49, %v3622_v51  ;;  %v4281_v13 = vpop.f32.mrb[208].mxu0  ;;  %v6669_v42 = vpop.f32.mrb[152].mxu1  ;;  %v3632_v49 = vmul.f32 %v3568_v45, %v6600_v5  ;;  %v6800_v45 = vld [vmem:[%s6907_s0 + $0xd8] sm:$0xff]  }
 0x462   :  { %v3625_v35 = vmul.f32 %v4281_v13, %v3561_v27  ;;  %v3305_v28 = vpop.f32.mrb[209].mxu0  ;;  %v6681_v26 = vpop.f32.mrb[153].mxu1  ;;  %v3598_v9 = vunpack.c.l.bf16 %v6800_v45 }
 0x463   :  { %v3624_v10 = vmul.f32 %v3560_v18, %v3305_v28  ;;  %v3564_v18 = vunpack.c.l.bf16 %v4743_v37  ;;  %v3633_v28 = vmul.f32 %v6598_v57, %v3569_v25  ;;  %v6790_v57 = vld [vmem:[%s6907_s0 + $0xd0] sm:$0xff]  }
 0x464   :  { %v3690_v30 = vadd.f32 %v3689_v2, %v3625_v35  ;;  %v6735_v35 = vld [vmem:[%s6907_s0 + $0xa0] sm:$0xff]   ;;  %v3597_v25 = vunpack.c.h.bf16 %v6790_v57 }
 0x465   :  { %v3675_v46 = vadd.f32 %v3674_v58, %v3624_v10  ;;  %v4284_v8 = vpop.f32.mrb[210].mxu0  ;;  %v6711_v50 = vpop.f32.mrb[154].mxu1 }
 0x466   :  { %v3627_v1 = vmul.f32 %v4284_v8, %v3563_v33  ;;  %v3315_v2 = vpop.f32.mrb[211].mxu0  ;;  %v6723_v58 = vpop.f32.mrb[155].mxu1  ;;  %v6742_v33 = vld [vmem:[%s6907_s0 + $0xa8] sm:$0xff]  }
 0x467   :  { %v3626_v27 = vmul.f32 %v3562_v0, %v3315_v2  ;;  %v6751_v2 = vld [vmem:[%s6907_s0 + $0xb0] sm:$0xff]  }
 0x468   :  { %v3720_v13 = vadd.f32 %v3719_v4, %v3627_v1 }
 0x469   :  { %v3705_v0 = vadd.f32 %v3704_v16, %v3626_v27  ;;  %v4287_v8 = vpop.f32.mrb[212].mxu0  ;;  %v6746_v1 = vpop.f32.mrb[156].mxu1  ;;  %v4748_v16 = vld [vmem:[%s6907_s0 + $0x58] sm:$0xff]  }
 0x46a   :  { %v3629_v51 = vmul.f32 %v4287_v8, %v3565_v12  ;;  %v3325_v63 = vpop.f32.mrb[213].mxu0  ;;  %v3567_v27 = vunpack.c.h.bf16 %v4748_v16  ;;  %v3566_v10 = vunpack.c.l.bf16 %v4748_v16  ;;  %v6758_v4 = vpop.f32.mrb[157].mxu1  ;;  %v6770_v12 = vld [vmem:[%s6907_s0 + $0xc0] sm:$0xff]  }
 0x46b   :  { %v3628_v37 = vmul.f32 %v3564_v18, %v3325_v63  ;;  %v6780_v63 = vld [vmem:[%s6907_s0 + $0xc8] sm:$0xff]  }
 0x46c   :  { %v3691_v32 = vadd.f32 %v3690_v30, %v3629_v51  ;;  %v3637_v51 = vmul.f32 %v6615_v23, %v3573_v34  ;;  %v3635_v23 = vmul.f32 %v6605_v31, %v3571_v14  ;;  %v3641_v34 = vmul.f32 %v6630_v56, %v3577_v48 }
 0x46d   :  { %v3676_v8 = vadd.f32 %v3675_v46, %v3628_v37  ;;  %v4290_v16 = vpop.f32.mrb[214].mxu0  ;;  %v4326_v36 = vpop.f32.mrb[158].mxu1  ;;  %v3599_v46 = vunpack.c.h.bf16 %v6800_v45  ;;  %v3636_v37 = vmul.f32 %v3572_v17, %v6620_v41  ;;  %v3640_v41 = vmul.f32 %v3576_v55, %v6635_v22 }
 0x46e   :  { %v3692_v29 = vadd.f32 %v3691_v32, %v3633_v28  ;;  %v3631_v18 = vmul.f32 %v4290_v16, %v3567_v27  ;;  %v3335_v52 = vpop.f32.mrb[215].mxu0  ;;  %v3455_v5 = vpop.f32.mrb[159].mxu1  ;;  %v3634_v27 = vmul.f32 %v3570_v21, %v6610_v53  ;;  %v3639_v31 = vmul.f32 %v6622_v15, %v3575_v19 }
 0x46f   :  { %v3677_v30 = vadd.f32 %v3676_v8, %v3632_v49  ;;  %v3630_v38 = vmul.f32 %v3566_v10, %v3335_v52  ;;  %v6993_v14 = vunpack.c.h.bf16 %v6716_v61  ;;  %v6994_v53 = vunpack.c.l.bf16 %v6693_v11 }
 0x470   :  { %v3693_v32 = vadd.f32 %v3692_v29, %v3637_v51  ;;  %v3721_v28 = vadd.f32 %v3720_v13, %v3631_v18  ;;  %v6995_v22 = vunpack.c.l.bf16 %v6716_v61  ;;  %v6996_v55 = vunpack.c.h.bf16 %v6707_v44 }
 0x471   :  { %v3678_v6 = vadd.f32 %v3677_v30, %v3636_v37  ;;  %v3706_v17 = vadd.f32 %v3705_v0, %v3630_v38  ;;  %v4329_v49 = vpop.f32.mrb[160].mxu1  ;;  %v3645_v56 = vmul.f32 %v6645_v54, %v6993_v14  ;;  %v3638_v20 = vmul.f32 %v6994_v53, %v6627_v24 }
 0x472   :  { %v3694_v29 = vadd.f32 %v3693_v32, %v3641_v34  ;;  %v3722_v48 = vadd.f32 %v3721_v28, %v3635_v23  ;;  %v3465_v13 = vpop.f32.mrb[161].mxu1  ;;  %v3644_v21 = vmul.f32 %v6995_v22, %v6650_v3  ;;  %v3643_v15 = vmul.f32 %v6638_v60, %v6996_v55 }
 0x473   :  { %v3679_v38 = vadd.f32 %v3678_v6, %v3640_v41  ;;  %v3707_v59 = vadd.f32 %v3706_v17, %v3634_v27  ;;  %v6997_v19 = vunpack.c.h.bf16 %v6735_v35  ;;  %v6998_v11 = vunpack.c.l.bf16 %v6707_v44 }
 0x474   :  { %v3695_v10 = vadd.f32 %v3694_v29, %v3645_v56  ;;  %v3723_v0 = vadd.f32 %v3722_v48, %v3639_v31  ;;  %v6999_v61 = vunpack.c.l.bf16 %v6735_v35  ;;  %v7000_v30 = vunpack.c.h.bf16 %v6728_v7 }
 0x475   :  { %v3649_v54 = vmul.f32 %v6669_v42, %v6997_v19  ;;  %v3642_v24 = vmul.f32 %v6998_v11, %v6643_v39  ;;  %v3680_v8 = vadd.f32 %v3679_v38, %v3644_v21  ;;  %v3708_v16 = vadd.f32 %v3707_v59, %v3638_v20  ;;  %v4332_v18 = vpop.f32.mrb[162].mxu1 }
 0x476   :  { %v3648_v3 = vmul.f32 %v6999_v61, %v6681_v26  ;;  %v3647_v60 = vmul.f32 %v6654_v62, %v7000_v30  ;;  %v7001_v42 = vunpack.c.h.bf16 %v6751_v2  ;;  %v3724_v37 = vadd.f32 %v3723_v0, %v3643_v15  ;;  %v3475_v23 = vpop.f32.mrb[163].mxu1 }
 0x477   :  { %v3696_v51 = vadd.f32 %v3695_v10, %v3649_v54  ;;  %v7002_v39 = vunpack.c.l.bf16 %v6728_v7  ;;  %v7003_v26 = vunpack.c.l.bf16 %v6751_v2  ;;  %v3709_v32 = vadd.f32 %v3708_v16, %v3642_v24 }
 0x478   :  { %v3653_v52 = vmul.f32 %v6746_v1, %v7001_v42  ;;  %v3681_v35 = vadd.f32 %v3680_v8, %v3648_v3  ;;  %v7004_v28 = vunpack.c.h.bf16 %v6742_v33  ;;  %v3725_v41 = vadd.f32 %v3724_v37, %v3647_v60  ;;  %v4755_v60 = vld [vmem:[%s6907_s0 + $0xe8] sm:$0xff]  }
 0x479   :  { %v3646_v44 = vmul.f32 %v7002_v39, %v6659_v47  ;;  %v3652_v34 = vmul.f32 %v7003_v26, %v6758_v4  ;;  %v7005_v1 = vunpack.c.h.bf16 %v6770_v12  ;;  %v7006_v17 = vunpack.c.l.bf16 %v6742_v33  ;;  %v4335_v4 = vpop.f32.mrb[164].mxu1 }
 0x47a   :  { %v3651_v62 = vmul.f32 %v6711_v50, %v7004_v28  ;;  %v3697_v27 = vadd.f32 %v3696_v51, %v3653_v52  ;;  %v7007_v14 = vunpack.c.l.bf16 %v6770_v12  ;;  %v7008_v56 = vunpack.c.h.bf16 %v6763_v40  ;;  %v3485_v20 = vpop.f32.mrb[165].mxu1 }
 0x47b   :  { %v3657_v6 = vmul.f32 %v4329_v49, %v7005_v1  ;;  %v3650_v7 = vmul.f32 %v7006_v17, %v6723_v58  ;;  %v3682_v47 = vadd.f32 %v3681_v35, %v3652_v34  ;;  %v3710_v31 = vadd.f32 %v3709_v32, %v3646_v44 }
 0x47c   :  { %v3656_v2 = vmul.f32 %v7007_v14, %v3465_v13  ;;  %v3655_v29 = vmul.f32 %v4326_v36, %v7008_v56  ;;  %v3726_v48 = vadd.f32 %v3725_v41, %v3651_v62  ;;  %v3661_v53 = vmul.f32 %v4335_v4, %v3597_v25  ;;  %v4757_v41 = vld [vmem:[%s6907_s0 + $0xf8] sm:$0xff]  }
 0x47d   :  { %v3698_v50 = vadd.f32 %v3697_v27, %v3657_v6  ;;  %v7009_v22 = vunpack.c.l.bf16 %v6763_v40  ;;  %v3711_v21 = vadd.f32 %v3710_v31, %v3650_v7  ;;  %v7010_v58 = vunpack.c.l.bf16 %v6790_v57  ;;  %v4338_v25 = vpop.f32.mrb[166].mxu1  ;;  %v4754_v57 = vld [vmem:[%s6907_s0 + $0xe0] sm:$0xff]  }
 0x47e   :  { %v3683_v38 = vadd.f32 %v3682_v47, %v3656_v2  ;;  %v3727_v59 = vadd.f32 %v3726_v48, %v3655_v29  ;;  %v7011_v12 = vunpack.c.h.bf16 %v6780_v63  ;;  %v7012_v36 = vunpack.c.l.bf16 %v6780_v63 }
 0x47f   :  { %v3654_v49 = vmul.f32 %v7009_v22, %v3455_v5  ;;  %v3660_v33 = vmul.f32 %v7010_v58, %v3485_v20  ;;  %v3699_v55 = vadd.f32 %v3698_v50, %v3661_v53  ;;  %v3663_v40 = vmul.f32 %v4338_v25, %v3599_v46  ;;  %v3495_v5 = vpop.f32.mrb[167].mxu1 }
 0x480   :  { %v3659_v13 = vmul.f32 %v4332_v18, %v7011_v12  ;;  %v3658_v19 = vmul.f32 %v7012_v36, %v3475_v23  ;;  %v3601_v0 = vunpack.c.h.bf16 %v4754_v57  ;;  %v7013_v11 = vrot.slane %v6652_v43, 1 }
 0x481   :  { %v3712_v15 = vadd.f32 %v3711_v21, %v3654_v49  ;;  %v3684_v54 = vadd.f32 %v3683_v38, %v3660_v33  ;;  %v3662_v63 = vmul.f32 %v3598_v9, %v3495_v5  ;;  %v3600_v3 = vunpack.c.l.bf16 %v4754_v57  ;;  %v4341_v18 = vpop.f32.mrb[168].mxu1  ;;  %v4756_v9 = vld [vmem:[%s6907_s0 + $0xf0] sm:$0xff]  }
 0x482   :  { %v3728_v10 = vadd.f32 %v3727_v59, %v3659_v13  ;;  %v2965_v24 = vadd.f32 %v7013_v11, %v6652_v43  ;;  %v3665_v30 = vmul.f32 %v4341_v18, %v3601_v0  ;;  %v3505_v46 = vpop.f32.mrb[169].mxu1  ;;  %v3603_v51 = vunpack.c.h.bf16 %v4755_v60 }
 0x483   :  { %v3713_v61 = vadd.f32 %v3712_v15, %v3658_v19  ;;  %v3664_v42 = vmul.f32 %v3600_v3, %v3505_v46  ;;  %v3602_v52 = vunpack.c.l.bf16 %v4755_v60  ;;  %v3605_v44 = vunpack.c.h.bf16 %v4756_v9 }
 0x484   :  { %v3729_v8 = vadd.f32 %v3728_v10, %v3663_v40  ;;  %4724 = vrcp.f32 %v2965_v24  ;;  %v3700_v37 = vadd.f32 %v3699_v55, %v3665_v30  ;;  %v3604_v26 = vunpack.c.l.bf16 %v4756_v9 }
 0x485   :  { %v3714_v16 = vadd.f32 %v3713_v61, %v3662_v63  ;;  %v3685_v43 = vadd.f32 %v3684_v54, %v3664_v42  ;;  %v4344_v23 = vpop.f32.mrb[170].mxu1  ;;  %v3607_v1 = vunpack.c.h.bf16 %v4757_v41  ;;  %v3606_v17 = vunpack.c.l.bf16 %v4757_v41 }
 0x486   :  { %v3667_v39 = vmul.f32 %v4344_v23, %v3603_v51  ;;  %v3515_v45 = vpop.f32.mrb[171].mxu1 }
 0x487   :  { %v3666_v35 = vmul.f32 %v3602_v52, %v3515_v45 }
 0x488   :  { %v3730_v34 = vadd.f32 %v3729_v8, %v3667_v39 }
 0x489   :  { %v3715_v32 = vadd.f32 %v3714_v16, %v3666_v35  ;;  %v4347_v28 = vpop.f32.mrb[172].mxu1 }
 0x48a   :  { %v3669_v62 = vmul.f32 %v4347_v28, %v3605_v44  ;;  %v3525_v27 = vpop.f32.mrb[173].mxu1 }
 0x48b   :  { %v3668_v6 = vmul.f32 %v3604_v26, %v3525_v27 }
 0x48c   :  { %v3701_v7 = vadd.f32 %v3700_v37, %v3669_v62 }
 0x48d   :  { %v3686_v31 = vadd.f32 %v3685_v43, %v3668_v6  ;;  %v4350_v14 = vpop.f32.mrb[174].mxu1 }
 0x48e   :  { %v4725_v47 = vpop.eup %4724  ;;  %v3671_v4 = vmul.f32 %v4350_v14, %v3607_v1  ;;  %v3535_v56 = vpop.f32.mrb[175].mxu1 }
 0x48f   :  { %v3734_v2 = vmul.f32 %v4725_v47, %v3701_v7  ;;  %v3733_v29 = vmul.f32 %v4725_v47, %v3686_v31  ;;  %v3670_v48 = vmul.f32 %v3606_v17, %v3535_v56 }
 0x490   :  { %v3731_v50 = vadd.f32 %v3730_v34, %v3671_v4 }
 0x491   :  { %3738 = vst [vmem:[%s6914_s8 + $0x8] sm:$0xff] %v3734_v2  ;;  %3737 = vst [vmem:[%s6914_s8] sm:$0xff] %v3733_v29  ;;  %v3716_v53 = vadd.f32 %v3715_v32, %v3670_v48 }
 0x492   :  { %v3736_v20 = vmul.f32 %v4725_v47, %v3731_v50 }
 0x493   :  { %v3735_v22 = vmul.f32 %v4725_v47, %v3716_v53 }
 0x494   :  { %3740 = vst [vmem:[%s6914_s8 + $0x18] sm:$0xff] %v3736_v20 }
 0x495   :  { %3739 = vst [vmem:[%s6914_s8 + $0x10] sm:$0xff] %v3735_v22 }

</bundles_post_ra>
